<compile_context>
chip_gen: v5e
topology: v5e:2x2
jax: 0.10.0
libtpu: 0.0.40
codegen_flags: <defaults>
</compile_context>

<pallas_src>
import functools
import math

import jax
import jax.numpy as jnp
from jax import lax
from jax.experimental import pallas as pl
from jax.experimental.pallas import tpu as pltpu


# ----------------------------------------------------------------------------
# Tiled matmul + bias kernel (used for gi precompute, decoder fc)
# ----------------------------------------------------------------------------
def matmul_bias_kernel(x_ref, w_ref, b_ref, o_ref, acc_ref):
    @pl.when(pl.program_id(2) == 0)
    def _():
        acc_ref[...] = jnp.zeros_like(acc_ref)

    acc_ref[...] += jnp.dot(x_ref[...], w_ref[...],
                            preferred_element_type=jnp.float32)

    @pl.when(pl.program_id(2) == pl.num_programs(2) - 1)
    def _():
        o_ref[...] = (acc_ref[...] + b_ref[...]).astype(o_ref.dtype)


def _pick_tile(dim, pref, step):
    """Largest tile <= pref that divides dim and is a multiple of `step`;
    falls back to the full dim (full-extent blocks are always legal)."""
    if dim <= pref:
        return dim
    for t in range(pref, step - 1, -step):
        if dim % t == 0:
            return t
    return dim


def linear(x, w, b):
    """x:(M,K), w:(K,N), b:(N,) -> (M,N) f32. bf16 MXU matmul, f32 accumulate."""
    M, K = x.shape
    N = w.shape[1]
    tm = _pick_tile(M, 256, 8)
    tn = _pick_tile(N, 256, 128)
    tk = _pick_tile(K, 256, 128)
    return pl.pallas_call(
        matmul_bias_kernel,
        out_shape=jax.ShapeDtypeStruct((M, N), jnp.float32),
        grid_spec=pltpu.PrefetchScalarGridSpec(
            num_scalar_prefetch=0,
            grid=(M // tm, N // tn, K // tk),
            in_specs=[
                pl.BlockSpec((tm, tk), lambda i, j, k: (i, k)),
                pl.BlockSpec((tk, tn), lambda i, j, k: (k, j)),
                pl.BlockSpec((1, tn), lambda i, j, k: (0, j)),
            ],
            out_specs=pl.BlockSpec((tm, tn), lambda i, j, k: (i, j)),
            scratch_shapes=[pltpu.VMEM((tm, tn), jnp.float32)],
        ),
        compiler_params=pltpu.CompilerParams(
            dimension_semantics=("parallel", "parallel", "arbitrary"),
            vmem_limit_bytes=48 * 1024 * 1024),
    )(x.astype(jnp.bfloat16), w.astype(jnp.bfloat16),
      b.reshape(1, N).astype(jnp.float32))


# ----------------------------------------------------------------------------
# GRU recurrence kernel: grid = (directions, time-chunks)
# ----------------------------------------------------------------------------
def gru_chunk_kernel(gi_ref, wh_ref, bh_ref, out_ref, hT_ref, h_scr, *, t_chunk):
    """Runs t_chunk GRU steps per grid invocation.

    gi_ref : (t_chunk, B, 3H)  precomputed x @ W_ih + b_ih  (gate order r,z,n)
    wh_ref : (H, 3H)           hidden->gates weights (bf16)
    bh_ref : (1, 3H)           hidden bias (f32)
    out_ref: (t_chunk, B, H)   per-timestep hidden states
    hT_ref : (B, H)            final hidden state (written on last chunk only)
    h_scr  : VMEM (B, H)       carried hidden state

    Grid axis 0 is direction: d == 0 runs forward in time, d == 1 reversed
    (the index_map already hands this kernel the correct time chunk; only the
    local iteration order differs).
    """
    d = pl.program_id(0)
    c = pl.program_id(1)
    H = h_scr.shape[-1]

    @pl.when(c == 0)
    def _():
        h_scr[...] = jnp.zeros_like(h_scr)   # initial_state = None -> zeros

    wh = wh_ref[...]
    bh = bh_ref[...]
    rev = d == 1
    base = jnp.where(rev, t_chunk - 1, 0)
    sign = jnp.where(rev, -1, 1)

    def step(i, h):
        tl = base + sign * i                  # local time index within chunk
        gi = gi_ref[tl]                       # (B, 3H) f32
        gh = jnp.dot(h.astype(jnp.bfloat16), wh,
                     preferred_element_type=jnp.float32) + bh
        r = jax.nn.sigmoid(gi[:, 0:H] + gh[:, 0:H])
        zg = jax.nn.sigmoid(gi[:, H:2 * H] + gh[:, H:2 * H])
        n = jnp.tanh(gi[:, 2 * H:3 * H] + r * gh[:, 2 * H:3 * H])
        h_new = (1.0 - zg) * n + zg * h       # elementwise math stays f32
        out_ref[tl] = h_new
        return h_new

    h = lax.fori_loop(0, t_chunk, step, h_scr[...], unroll=True)
    h_scr[...] = h

    @pl.when(c == pl.num_programs(1) - 1)
    def _():
        hT_ref[...] = h


def _pick_chunk(seq_len, max_chunk=32):
    for c in range(min(seq_len, max_chunk), 0, -1):
        if seq_len % c == 0:
            return c
    return 1


def gru_layer(x_tbf, wi, wh, bi, bh):
    """One (possibly bidirectional) GRU layer.

    x_tbf : (S, B, In) f32, time-major
    wi    : (D, In, 3H) bf16   wh: (D, H, 3H) bf16
    bi    : (D, 1, 3H) f32     bh: (D, 1, 3H) f32
    Direction 0 is forward in time, direction 1 (if D == 2) is reversed.
    Returns out: (D, S, B, H) f32 (original time order), hT: (D, B, H) f32.
    """
    S, B, In = x_tbf.shape
    D, H, H3 = wh.shape
    t_chunk = _pick_chunk(S)
    nc = S // t_chunk

    # Hoist x @ W_ih + b_ih out of the recurrence: one big MXU matmul per dir.
    x_flat = x_tbf.reshape(S * B, In)
    gi = jnp.stack(
        [linear(x_flat, wi[d], bi[d, 0]).reshape(S, B, H3) for d in range(D)],
        axis=0)                                            # (D, S, B, 3H) f32

    def io_map(d, c):
        # forward (d==0): chunk c ; reversed (d==1): chunk nc-1-c
        return (d, c + d * (nc - 1 - 2 * c), 0, 0)

    out, hT = pl.pallas_call(
        functools.partial(gru_chunk_kernel, t_chunk=t_chunk),
        out_shape=(jax.ShapeDtypeStruct((D, S, B, H), jnp.float32),
                   jax.ShapeDtypeStruct((D, B, H), jnp.float32)),
        grid_spec=pltpu.PrefetchScalarGridSpec(
            num_scalar_prefetch=0,
            grid=(D, nc),
            in_specs=[
                pl.BlockSpec((pl.Squeezed(), t_chunk, B, H3), io_map),
                pl.BlockSpec((pl.Squeezed(), H, H3), lambda d, c: (d, 0, 0)),
                pl.BlockSpec((pl.Squeezed(), 1, H3), lambda d, c: (d, 0, 0)),
            ],
            out_specs=[
                pl.BlockSpec((pl.Squeezed(), t_chunk, B, H), io_map),
                pl.BlockSpec((pl.Squeezed(), B, H), lambda d, c: (d, 0, 0)),
            ],
            scratch_shapes=[pltpu.VMEM((B, H), jnp.float32)],
        ),
        compiler_params=pltpu.CompilerParams(
            # direction axis is independent (megacore-parallel on v7x);
            # the time axis carries the recurrence.
            dimension_semantics=("parallel", "arbitrary")),
    )(gi, wh, bh)
    return out, hT


# ----------------------------------------------------------------------------
# Fused context_to_mu / context_to_logvar / reparametrize kernel
# ----------------------------------------------------------------------------
def latent_head_kernel(ctx_ref, w_ref, b_ref, eps_ref, mu_ref, lv_ref, z_ref,
                       *, latent):
    g = jnp.dot(ctx_ref[...].astype(jnp.bfloat16), w_ref[...],
                preferred_element_type=jnp.float32) + b_ref[...]
    mu = g[:, :latent]
    lv = g[:, latent:]
    mu_ref[...] = mu
    lv_ref[...] = lv
    z_ref[...] = eps_ref[...] * jnp.exp(0.5 * lv) + mu


def latent_head(context, w_head, b_head, eps):
    B = context.shape[0]
    L2 = w_head.shape[1]
    latent = L2 // 2
    mu, lv, z = pl.pallas_call(
        functools.partial(latent_head_kernel, latent=latent),
        out_shape=(jax.ShapeDtypeStruct((B, latent), jnp.float32),
                   jax.ShapeDtypeStruct((B, latent), jnp.float32),
                   jax.ShapeDtypeStruct((B, latent), jnp.float32)),
    )(context, w_head.astype(jnp.bfloat16),
      b_head.reshape(1, L2).astype(jnp.float32), eps)
    return mu, lv, z


# ----------------------------------------------------------------------------
# Parameters (shapes mirror the PyTorch module; matmul weights stored bf16)
# ----------------------------------------------------------------------------
def init_params(key, *, vocab_size, embed_size, encoder_size, encoder_num_layers,
                decoder_size, decoder_num_layers, latent_size):
    def nrm(k, shape, dtype=jnp.float32, scale=0.1):
        return (scale * jax.random.normal(k, shape, jnp.float32)).astype(dtype)

    keys = iter(jax.random.split(key, 512))

    def gru_params(num_dirs, in_dim, hidden):
        return dict(
            wi=nrm(next(keys), (num_dirs, in_dim, 3 * hidden), jnp.bfloat16),
            wh=nrm(next(keys), (num_dirs, hidden, 3 * hidden), jnp.bfloat16),
            bi=nrm(next(keys), (num_dirs, 1, 3 * hidden)),
            bh=nrm(next(keys), (num_dirs, 1, 3 * hidden)),
        )

    p = {}
    p['embed'] = nrm(next(keys), (vocab_size, embed_size))        # nn.Embedding

    p['enc'] = []                                                  # bidirectional GRU
    in_dim = embed_size
    for _ in range(encoder_num_layers):
        p['enc'].append(gru_params(2, in_dim, encoder_size))
        in_dim = 2 * encoder_size

    # context_to_mu | context_to_logvar concatenated along output dim
    p['w_head'] = nrm(next(keys), (2 * encoder_size, 2 * latent_size), jnp.bfloat16)
    p['b_head'] = nrm(next(keys), (2 * latent_size,))

    p['dec'] = []                                                  # unidirectional GRU
    in_dim = embed_size + latent_size
    for _ in range(decoder_num_layers):
        p['dec'].append(gru_params(1, in_dim, decoder_size))
        in_dim = decoder_size

    p['w_fc'] = nrm(next(keys), (decoder_size, vocab_size), jnp.bfloat16)
    p['b_fc'] = nrm(next(keys), (vocab_size,))
    return p


# ----------------------------------------------------------------------------
# VAE forward (mirrors VAE.forward with z=None)
# ----------------------------------------------------------------------------
def encoder_forward(params, emb):               # emb: (B, S, E)
    x = jnp.transpose(emb, (1, 0, 2))           # time-major (S, B, E)
    h_last = None
    for layer in params['enc']:
        out, hT = gru_layer(x, layer['wi'], layer['wh'], layer['bi'], layer['bh'])
        x = jnp.concatenate([out[0], out[1]], axis=-1)   # next-layer input (S,B,2H)
        h_last = hT
    # nn.GRU(bidirectional): last layer's (fwd, bwd) final states, cat on dim 1
    return jnp.concatenate([h_last[0], h_last[1]], axis=1)          # (B, 2H)


def decoder_forward(params, emb_dec, z):        # emb_dec: (B, S, E), z: (B, L)
    B, S, _ = emb_dec.shape
    z_rep = jnp.broadcast_to(z[:, None, :], (B, S, z.shape[-1]))
    x = jnp.concatenate([emb_dec, z_rep], axis=2)
    x = jnp.transpose(x, (1, 0, 2))             # (S, B, E + L)
    finals = []
    for layer in params['dec']:
        out, hT = gru_layer(x, layer['wi'], layer['wh'], layer['bi'], layer['bh'])
        x = out[0]                              # (S, B, H)
        finals.append(hT[0])
    final_state = jnp.stack(finals, axis=0)     # (num_layers, B, H)
    H = x.shape[-1]
    flat = jnp.transpose(x, (1, 0, 2)).reshape(B * S, H)
    logits = linear(flat, params['w_fc'], params['b_fc'])           # (B*S, V)
    return logits.reshape(B, S, -1), final_state


def vae_forward(params, encoder_input, decoder_input, eps):
    # inference
    emb_enc = jnp.take(params['embed'], encoder_input, axis=0)      # (B, S, E)
    context = encoder_forward(params, emb_enc)
    mu, logvar, z = latent_head(context, params['w_head'], params['b_head'], eps)
    # generate (F.dropout training=False since z is not None -> identity)
    emb_dec = jnp.take(params['embed'], decoder_input, axis=0)
    out, final_state = decoder_forward(params, emb_dec, z)
    return out, final_state, mu, logvar


# ----------------------------------------------------------------------------
# CDVAE forward (two VAEs + CE / KLD / cross-domain KLD losses)
# ----------------------------------------------------------------------------
def _cross_entropy(logits, targets):
    V = logits.shape[-1]
    lf = logits.reshape(-1, V)
    tf = targets.reshape(-1)
    logp = jax.nn.log_softmax(lf, axis=-1)
    nll = -jnp.take_along_axis(logp, tf[:, None], axis=1)[:, 0]
    return jnp.mean(nll)


def _latent_loss(mu, logvar):
    return jnp.mean(-0.5 * jnp.sum(logvar - mu ** 2 - jnp.exp(logvar) + 1.0, axis=1))


def _cd_latent_loss(mu1, lv1, mu2, lv2):
    return 0.5 * jnp.sum(lv2 - lv1 + jnp.exp(lv1) / (jnp.exp(lv2) + 1e-8)
                         + (mu1 - mu2) ** 2 / (jnp.exp(lv2) + 1e-8) - 1.0)


@jax.jit
def cdvae_forward(params_ru, params_en, drop_prob,
                  encoder_input_ru, encoder_input_en,
                  decoder_input_ru, decoder_input_en,
                  target_ru, target_en, eps_ru, eps_en):
    # drop_prob is accepted for signature fidelity; dropout runs with
    # training=False inside generate() so it is an identity here.
    del drop_prob
    out_ru, _, mu_ru, lv_ru = vae_forward(params_ru, encoder_input_ru,
                                          decoder_input_ru, eps_ru)
    out_en, _, mu_en, lv_en = vae_forward(params_en, encoder_input_en,
                                          decoder_input_en, eps_en)
    ce_ru = _cross_entropy(out_ru, target_ru)
    ce_en = _cross_entropy(out_en, target_en)
    kld_ru = _latent_loss(mu_ru, lv_ru)
    kld_en = _latent_loss(mu_en, lv_en)
    cd_kld_ru = _cd_latent_loss(mu_ru, lv_ru, mu_en, lv_en)
    cd_kld_en = _cd_latent_loss(mu_en, lv_en, mu_ru, lv_ru)
    loss_ru = 850.0 * ce_ru + kld_ru + cd_kld_ru
    loss_en = 850.0 * ce_en + kld_en + cd_kld_en
    return (loss_ru, ce_ru, kld_ru, cd_kld_ru), (loss_en, ce_en, kld_en, cd_kld_en)


# ----------------------------------------------------------------------------
if __name__ == "__main__":
    VOCAB, EMBED = 32, 16
    ENC_SIZE, ENC_LAYERS = 16, 1
    DEC_SIZE, DEC_LAYERS = 16, 1
    LATENT = 8
    BATCH, SEQ = 2, 8

    root = jax.random.PRNGKey(0)
    k_pru, k_pen, k_in = jax.random.split(root, 3)
    cfg = dict(vocab_size=VOCAB, embed_size=EMBED,
               encoder_size=ENC_SIZE, encoder_num_layers=ENC_LAYERS,
               decoder_size=DEC_SIZE, decoder_num_layers=DEC_LAYERS,
               latent_size=LATENT)
    params_ru = init_params(k_pru, **cfg)
    params_en = init_params(k_pen, **cfg)

    ks = jax.random.split(k_in, 8)

    def ids(k):
        return jax.random.randint(k, (BATCH, SEQ), 0, VOCAB, dtype=jnp.int32)

    enc_ru, enc_en, dec_ru, dec_en, tgt_ru, tgt_en = (ids(k) for k in ks[:6])
    eps_ru = jax.random.normal(ks[6], (BATCH, LATENT), jnp.float32)
    eps_en = jax.random.normal(ks[7], (BATCH, LATENT), jnp.float32)

    losses_ru, losses_en = cdvae_forward(
        params_ru, params_en, jnp.float32(0.3),
        enc_ru, enc_en, dec_ru, dec_en, tgt_ru, tgt_en, eps_ru, eps_en)
    jax.block_until_ready((losses_ru, losses_en))

    for v in (*losses_ru, *losses_en):
        assert v.shape == ()
        assert bool(jnp.isfinite(v))
    print("KERNEL_OK")
</pallas_src>

<mosaic_0001>
module attributes {stable_mosaic.version = 11 : i64} {
  func.func @matmul_bias_kernel(%arg0: i32, %arg1: i32, %arg2: i32, %arg3: memref<16x16xbf16, #tpu.memory_space<vmem>>, %arg4: memref<16x48xbf16, #tpu.memory_space<vmem>>, %arg5: memref<1x48xf32, #tpu.memory_space<vmem>>, %arg6: memref<16x48xf32, #tpu.memory_space<vmem>>, %arg7: memref<16x48xf32, #tpu.memory_space<vmem>>) attributes {dimension_semantics = [#tpu.dimension_semantics<parallel>, #tpu.dimension_semantics<parallel>, #tpu.dimension_semantics<arbitrary>], iteration_bounds = array<i64: 1, 1, 1>, scalar_prefetch = 0 : i64, scratch_operands = 1 : i64, tpu.core_type = #tpu.core_type<tc>, window_params = [{transform_indices = @transform_0, window_bounds = array<i64: 16, 16>}, {transform_indices = @transform_1, window_bounds = array<i64: 16, 48>}, {transform_indices = @transform_2, window_bounds = array<i64: 1, 48>}, {transform_indices = @transform_3, window_bounds = array<i64: 16, 48>}]} {
    %c0_i32 = arith.constant 0 : i32
    %0 = arith.cmpi eq, %arg2, %c0_i32 : i32
    %1 = arith.extui %0 : i1 to i32
    %c0_i32_0 = arith.constant 0 : i32
    %2 = arith.cmpi ne, %1, %c0_i32_0 : i32
    scf.if %2 {
      %cst_10 = arith.constant 0.000000e+00 : f32
      %12 = vector.broadcast %cst_10 : f32 to vector<16x48xf32>
      %c0_11 = arith.constant 0 : index
      %c0_12 = arith.constant 0 : index
      %13 = vector.load %arg7[%c0_11, %c0_12] : memref<16x48xf32, #tpu.memory_space<vmem>>, vector<16x48xf32>
      tpu.vector_store %arg7[%c0_11, %c0_12], %12 {strides = array<i32>} : memref<16x48xf32, #tpu.memory_space<vmem>>, vector<16x48xf32>,
    } else {
    }
    %c0 = arith.constant 0 : index
    %c0_1 = arith.constant 0 : index
    %3 = vector.load %arg7[%c0, %c0_1] : memref<16x48xf32, #tpu.memory_space<vmem>>, vector<16x48xf32>
    %c0_2 = arith.constant 0 : index
    %c0_3 = arith.constant 0 : index
    %4 = vector.load %arg3[%c0_2, %c0_3] : memref<16x16xbf16, #tpu.memory_space<vmem>>, vector<16x16xbf16>
    %c0_4 = arith.constant 0 : index
    %c0_5 = arith.constant 0 : index
    %5 = vector.load %arg4[%c0_4, %c0_5] : memref<16x48xbf16, #tpu.memory_space<vmem>>, vector<16x48xbf16>
    %cst = arith.constant dense<0.000000e+00> : vector<16x48xf32>
    %6 = tpu.matmul %4, %5, %cst {dimension_numbers = #tpu.dot_dimension_numbers<[1], [0], [0], [1], [0, 0, 1, 1], [], []>} : vector<16x16xbf16>, vector<16x48xbf16>, vector<16x48xf32> -> vector<16x48xf32>
    %7 = arith.addf %3, %6 : vector<16x48xf32>
    %c0_6 = arith.constant 0 : index
    %c0_7 = arith.constant 0 : index
    %8 = vector.load %arg7[%c0_6, %c0_7] : memref<16x48xf32, #tpu.memory_space<vmem>>, vector<16x48xf32>
    tpu.vector_store %arg7[%c0_6, %c0_7], %7 {strides = array<i32>} : memref<16x48xf32, #tpu.memory_space<vmem>>, vector<16x48xf32>,
    %c0_i32_8 = arith.constant 0 : i32
    %9 = arith.cmpi eq, %arg2, %c0_i32_8 : i32
    %10 = arith.extui %9 : i1 to i32
    %c0_i32_9 = arith.constant 0 : i32
    %11 = arith.cmpi ne, %10, %c0_i32_9 : i32
    scf.if %11 {
      %c0_10 = arith.constant 0 : index
      %c0_11 = arith.constant 0 : index
      %12 = vector.load %arg7[%c0_10, %c0_11] : memref<16x48xf32, #tpu.memory_space<vmem>>, vector<16x48xf32>
      %c0_12 = arith.constant 0 : index
      %c0_13 = arith.constant 0 : index
      %13 = vector.load %arg5[%c0_12, %c0_13] : memref<1x48xf32, #tpu.memory_space<vmem>>, vector<1x48xf32>
      %14 = vector.broadcast %13 : vector<1x48xf32> to vector<16x48xf32>
      %15 = arith.addf %12, %14 : vector<16x48xf32>
      %c0_14 = arith.constant 0 : index
      %c0_15 = arith.constant 0 : index
      %16 = vector.load %arg6[%c0_14, %c0_15] : memref<16x48xf32, #tpu.memory_space<vmem>>, vector<16x48xf32>
      tpu.vector_store %arg6[%c0_14, %c0_15], %15 {strides = array<i32>} : memref<16x48xf32, #tpu.memory_space<vmem>>, vector<16x48xf32>,
    } else {
    }
    return
  }
  func.func @transform_0(%arg0: i32, %arg1: i32, %arg2: i32) -> (i32, i32) {
    %c0_i32 = arith.constant 0 : i32
    return %arg0, %arg2 : i32, i32
  }
  func.func @transform_1(%arg0: i32, %arg1: i32, %arg2: i32) -> (i32, i32) {
    %c0_i32 = arith.constant 0 : i32
    return %arg2, %arg1 : i32, i32
  }
  func.func @transform_2(%arg0: i32, %arg1: i32, %arg2: i32) -> (i32, i32) {
    %c0_i32 = arith.constant 0 : i32
    %c0_i32_0 = arith.constant 0 : i32
    return %c0_i32, %arg1 : i32, i32
  }
  func.func @transform_3(%arg0: i32, %arg1: i32, %arg2: i32) -> (i32, i32) {
    %c0_i32 = arith.constant 0 : i32
    return %arg0, %arg1 : i32, i32
  }
}

module attributes {stable_mosaic.version = 11 : i64} {
  func.func @latent_head_kernel(%arg0: memref<2x32xf32, #tpu.memory_space<vmem>>, %arg1: memref<32x16xbf16, #tpu.memory_space<vmem>>, %arg2: memref<1x16xf32, #tpu.memory_space<vmem>>, %arg3: memref<2x8xf32, #tpu.memory_space<vmem>>, %arg4: memref<2x8xf32, #tpu.memory_space<vmem>>, %arg5: memref<2x8xf32, #tpu.memory_space<vmem>>, %arg6: memref<2x8xf32, #tpu.memory_space<vmem>>) attributes {dimension_semantics = [], scalar_prefetch = 0 : i64, scratch_operands = 0 : i64, tpu.core_type = #tpu.core_type<tc>} {
    %c0 = arith.constant 0 : index
    %c0_0 = arith.constant 0 : index
    %0 = vector.load %arg0[%c0, %c0_0] : memref<2x32xf32, #tpu.memory_space<vmem>>, vector<2x32xf32>
    %1 = arith.truncf %0 : vector<2x32xf32> to vector<2x32xbf16>
    %c0_1 = arith.constant 0 : index
    %c0_2 = arith.constant 0 : index
    %2 = vector.load %arg1[%c0_1, %c0_2] : memref<32x16xbf16, #tpu.memory_space<vmem>>, vector<32x16xbf16>
    %cst = arith.constant dense<0.000000e+00> : vector<2x16xf32>
    %3 = tpu.matmul %1, %2, %cst {dimension_numbers = #tpu.dot_dimension_numbers<[1], [0], [0], [1], [0, 0, 1, 1], [], []>} : vector<2x32xbf16>, vector<32x16xbf16>, vector<2x16xf32> -> vector<2x16xf32>
    %c0_3 = arith.constant 0 : index
    %c0_4 = arith.constant 0 : index
    %4 = vector.load %arg2[%c0_3, %c0_4] : memref<1x16xf32, #tpu.memory_space<vmem>>, vector<1x16xf32>
    %5 = vector.broadcast %4 : vector<1x16xf32> to vector<2x16xf32>
    %6 = arith.addf %3, %5 : vector<2x16xf32>
    %7 = vector.extract_strided_slice %6 {offsets = [0, 0], sizes = [2, 8], strides = [1, 1]} : vector<2x16xf32> to vector<2x8xf32>
    %8 = vector.extract_strided_slice %6 {offsets = [0, 8], sizes = [2, 8], strides = [1, 1]} : vector<2x16xf32> to vector<2x8xf32>
    %c0_5 = arith.constant 0 : index
    %c0_6 = arith.constant 0 : index
    %9 = vector.load %arg4[%c0_5, %c0_6] : memref<2x8xf32, #tpu.memory_space<vmem>>, vector<2x8xf32>
    tpu.vector_store %arg4[%c0_5, %c0_6], %7 {strides = array<i32>} : memref<2x8xf32, #tpu.memory_space<vmem>>, vector<2x8xf32>,
    %c0_7 = arith.constant 0 : index
    %c0_8 = arith.constant 0 : index
    %10 = vector.load %arg5[%c0_7, %c0_8] : memref<2x8xf32, #tpu.memory_space<vmem>>, vector<2x8xf32>
    tpu.vector_store %arg5[%c0_7, %c0_8], %8 {strides = array<i32>} : memref<2x8xf32, #tpu.memory_space<vmem>>, vector<2x8xf32>,
    %c0_9 = arith.constant 0 : index
    %c0_10 = arith.constant 0 : index
    %11 = vector.load %arg3[%c0_9, %c0_10] : memref<2x8xf32, #tpu.memory_space<vmem>>, vector<2x8xf32>
    %cst_11 = arith.constant 5.000000e-01 : f32
    %12 = vector.broadcast %cst_11 : f32 to vector<2x8xf32>
    %13 = arith.mulf %12, %8 : vector<2x8xf32>
    %14 = math.exp %13 : vector<2x8xf32>
    %15 = arith.mulf %11, %14 : vector<2x8xf32>
    %16 = arith.addf %15, %7 : vector<2x8xf32>
    %c0_12 = arith.constant 0 : index
    %c0_13 = arith.constant 0 : index
    %17 = vector.load %arg6[%c0_12, %c0_13] : memref<2x8xf32, #tpu.memory_space<vmem>>, vector<2x8xf32>
    tpu.vector_store %arg6[%c0_12, %c0_13], %16 {strides = array<i32>} : memref<2x8xf32, #tpu.memory_space<vmem>>, vector<2x8xf32>,
    return
  }
}

module attributes {stable_mosaic.version = 11 : i64} {
  func.func @gru_chunk_kernel(%arg0: i32, %arg1: i32, %arg2: memref<1x8x2x48xf32, #tpu.memory_space<vmem>>, %arg3: memref<1x16x48xbf16, #tpu.memory_space<vmem>>, %arg4: memref<1x1x48xf32, #tpu.memory_space<vmem>>, %arg5: memref<1x8x2x16xf32, #tpu.memory_space<vmem>>, %arg6: memref<1x2x16xf32, #tpu.memory_space<vmem>>, %arg7: memref<2x16xf32, #tpu.memory_space<vmem>>) attributes {dimension_semantics = [#tpu.dimension_semantics<parallel>, #tpu.dimension_semantics<arbitrary>], iteration_bounds = array<i64: 2, 1>, scalar_prefetch = 0 : i64, scratch_operands = 1 : i64, tpu.core_type = #tpu.core_type<tc>, window_params = [{transform_indices = @transform_0, window_bounds = array<i64: 1, 8, 2, 48>}, {transform_indices = @transform_1, window_bounds = array<i64: 1, 16, 48>}, {transform_indices = @transform_2, window_bounds = array<i64: 1, 1, 48>}, {transform_indices = @transform_3, window_bounds = array<i64: 1, 8, 2, 16>}, {transform_indices = @transform_4, window_bounds = array<i64: 1, 2, 16>}]} {
    %c0_i32 = arith.constant 0 : i32
    %0 = arith.cmpi eq, %arg1, %c0_i32 : i32
    %1 = arith.extui %0 : i1 to i32
    %c0_i32_0 = arith.constant 0 : i32
    %2 = arith.cmpi ne, %1, %c0_i32_0 : i32
    scf.if %2 {
      %cst_96 = arith.constant 0.000000e+00 : f32
      %327 = vector.broadcast %cst_96 : f32 to vector<2x16xf32>
      %c0_97 = arith.constant 0 : index
      %c0_98 = arith.constant 0 : index
      %328 = vector.load %arg7[%c0_97, %c0_98] : memref<2x16xf32, #tpu.memory_space<vmem>>, vector<2x16xf32>
      tpu.vector_store %arg7[%c0_97, %c0_98], %327 {strides = array<i32>} : memref<2x16xf32, #tpu.memory_space<vmem>>, vector<2x16xf32>,
    } else {
    }
    %c0 = arith.constant 0 : index
    %c0_1 = arith.constant 0 : index
    %c0_2 = arith.constant 0 : index
    %3 = vector.load %arg3[%c0, %c0_1, %c0_2] : memref<1x16x48xbf16, #tpu.memory_space<vmem>>, vector<1x16x48xbf16>
    %4 = vector.shape_cast %3 : vector<1x16x48xbf16> to vector<16x48xbf16>
    %c0_3 = arith.constant 0 : index
    %c0_4 = arith.constant 0 : index
    %c0_5 = arith.constant 0 : index
    %5 = vector.load %arg4[%c0_3, %c0_4, %c0_5] : memref<1x1x48xf32, #tpu.memory_space<vmem>>, vector<1x1x48xf32>
    %6 = vector.shape_cast %5 : vector<1x1x48xf32> to vector<1x48xf32>
    %c1_i32 = arith.constant 1 : i32
    %7 = arith.cmpi eq, %arg0, %c1_i32 : i32
    %c7_i32 = arith.constant 7 : i32
    %c0_i32_6 = arith.constant 0 : i32
    %8 = arith.select %7, %c7_i32, %c0_i32_6 : i32
    %c-1_i32 = arith.constant -1 : i32
    %c1_i32_7 = arith.constant 1 : i32
    %9 = arith.select %7, %c-1_i32, %c1_i32_7 : i32
    %c0_8 = arith.constant 0 : index
    %c0_9 = arith.constant 0 : index
    %10 = vector.load %arg7[%c0_8, %c0_9] : memref<2x16xf32, #tpu.memory_space<vmem>>, vector<2x16xf32>
    %c0_i32_10 = arith.constant 0 : i32
    %11 = arith.muli %9, %c0_i32_10 : i32
    %12 = arith.addi %8, %11 : i32
    %c0_11 = arith.constant 0 : index
    %13 = arith.index_cast %12 : i32 to index
    %c0_12 = arith.constant 0 : index
    %c0_13 = arith.constant 0 : index
    %14 = vector.load %arg2[%c0_11, %13, %c0_12, %c0_13] : memref<1x8x2x48xf32, #tpu.memory_space<vmem>>, vector<1x1x2x48xf32>
    %15 = vector.shape_cast %14 : vector<1x1x2x48xf32> to vector<2x48xf32>
    %16 = arith.truncf %10 : vector<2x16xf32> to vector<2x16xbf16>
    %cst = arith.constant dense<0.000000e+00> : vector<2x48xf32>
    %17 = tpu.matmul %16, %4, %cst {dimension_numbers = #tpu.dot_dimension_numbers<[1], [0], [0], [1], [0, 0, 1, 1], [], []>} : vector<2x16xbf16>, vector<16x48xbf16>, vector<2x48xf32> -> vector<2x48xf32>
    %18 = vector.broadcast %6 : vector<1x48xf32> to vector<2x48xf32>
    %19 = arith.addf %17, %18 : vector<2x48xf32>
    %20 = vector.extract_strided_slice %15 {offsets = [0, 0], sizes = [2, 16], strides = [1, 1]} : vector<2x48xf32> to vector<2x16xf32>
    %21 = vector.extract_strided_slice %19 {offsets = [0, 0], sizes = [2, 16], strides = [1, 1]} : vector<2x48xf32> to vector<2x16xf32>
    %22 = arith.addf %20, %21 : vector<2x16xf32>
    %23 = arith.negf %22 : vector<2x16xf32>
    %24 = math.exp %23 : vector<2x16xf32>
    %cst_14 = arith.constant 1.000000e+00 : f32
    %25 = vector.broadcast %cst_14 : f32 to vector<2x16xf32>
    %26 = arith.addf %25, %24 : vector<2x16xf32>
    %27 = arith.divf %25, %26 : vector<2x16xf32>
    %28 = vector.extract_strided_slice %15 {offsets = [0, 16], sizes = [2, 16], strides = [1, 1]} : vector<2x48xf32> to vector<2x16xf32>
    %29 = vector.extract_strided_slice %19 {offsets = [0, 16], sizes = [2, 16], strides = [1, 1]} : vector<2x48xf32> to vector<2x16xf32>
    %30 = arith.addf %28, %29 : vector<2x16xf32>
    %31 = arith.negf %30 : vector<2x16xf32>
    %32 = math.exp %31 : vector<2x16xf32>
    %cst_15 = arith.constant 1.000000e+00 : f32
    %33 = vector.broadcast %cst_15 : f32 to vector<2x16xf32>
    %34 = arith.addf %33, %32 : vector<2x16xf32>
    %35 = arith.divf %33, %34 : vector<2x16xf32>
    %36 = vector.extract_strided_slice %15 {offsets = [0, 32], sizes = [2, 16], strides = [1, 1]} : vector<2x48xf32> to vector<2x16xf32>
    %37 = vector.extract_strided_slice %19 {offsets = [0, 32], sizes = [2, 16], strides = [1, 1]} : vector<2x48xf32> to vector<2x16xf32>
    %38 = arith.mulf %27, %37 : vector<2x16xf32>
    %39 = arith.addf %36, %38 : vector<2x16xf32>
    %40 = math.tanh %39 : vector<2x16xf32>
    %cst_16 = arith.constant 1.000000e+00 : f32
    %41 = vector.broadcast %cst_16 : f32 to vector<2x16xf32>
    %42 = arith.subf %41, %35 : vector<2x16xf32>
    %43 = arith.mulf %42, %40 : vector<2x16xf32>
    %44 = arith.mulf %35, %10 : vector<2x16xf32>
    %45 = arith.addf %43, %44 : vector<2x16xf32>
    %c0_17 = arith.constant 0 : index
    %46 = arith.index_cast %12 : i32 to index
    %c0_18 = arith.constant 0 : index
    %c0_19 = arith.constant 0 : index
    %47 = vector.load %arg5[%c0_17, %46, %c0_18, %c0_19] : memref<1x8x2x16xf32, #tpu.memory_space<vmem>>, vector<1x1x2x16xf32>
    %48 = vector.shape_cast %47 : vector<1x1x2x16xf32> to vector<2x16xf32>
    %49 = vector.shape_cast %45 : vector<2x16xf32> to vector<1x1x2x16xf32>
    tpu.vector_store %arg5[%c0_17, %46, %c0_18, %c0_19], %49 {strides = array<i32>} : memref<1x8x2x16xf32, #tpu.memory_space<vmem>>, vector<1x1x2x16xf32>,
    %c1_i32_20 = arith.constant 1 : i32
    %50 = arith.muli %9, %c1_i32_20 : i32
    %51 = arith.addi %8, %50 : i32
    %c0_21 = arith.constant 0 : index
    %52 = arith.index_cast %51 : i32 to index
    %c0_22 = arith.constant 0 : index
    %c0_23 = arith.constant 0 : index
    %53 = vector.load %arg2[%c0_21, %52, %c0_22, %c0_23] : memref<1x8x2x48xf32, #tpu.memory_space<vmem>>, vector<1x1x2x48xf32>
    %54 = vector.shape_cast %53 : vector<1x1x2x48xf32> to vector<2x48xf32>
    %55 = arith.truncf %45 : vector<2x16xf32> to vector<2x16xbf16>
    %cst_24 = arith.constant dense<0.000000e+00> : vector<2x48xf32>
    %56 = tpu.matmul %55, %4, %cst_24 {dimension_numbers = #tpu.dot_dimension_numbers<[1], [0], [0], [1], [0, 0, 1, 1], [], []>} : vector<2x16xbf16>, vector<16x48xbf16>, vector<2x48xf32> -> vector<2x48xf32>
    %57 = vector.broadcast %6 : vector<1x48xf32> to vector<2x48xf32>
    %58 = arith.addf %56, %57 : vector<2x48xf32>
    %59 = vector.extract_strided_slice %54 {offsets = [0, 0], sizes = [2, 16], strides = [1, 1]} : vector<2x48xf32> to vector<2x16xf32>
    %60 = vector.extract_strided_slice %58 {offsets = [0, 0], sizes = [2, 16], strides = [1, 1]} : vector<2x48xf32> to vector<2x16xf32>
    %61 = arith.addf %59, %60 : vector<2x16xf32>
    %62 = arith.negf %61 : vector<2x16xf32>
    %63 = math.exp %62 : vector<2x16xf32>
    %cst_25 = arith.constant 1.000000e+00 : f32
    %64 = vector.broadcast %cst_25 : f32 to vector<2x16xf32>
    %65 = arith.addf %64, %63 : vector<2x16xf32>
    %66 = arith.divf %64, %65 : vector<2x16xf32>
    %67 = vector.extract_strided_slice %54 {offsets = [0, 16], sizes = [2, 16], strides = [1, 1]} : vector<2x48xf32> to vector<2x16xf32>
    %68 = vector.extract_strided_slice %58 {offsets = [0, 16], sizes = [2, 16], strides = [1, 1]} : vector<2x48xf32> to vector<2x16xf32>
    %69 = arith.addf %67, %68 : vector<2x16xf32>
    %70 = arith.negf %69 : vector<2x16xf32>
    %71 = math.exp %70 : vector<2x16xf32>
    %cst_26 = arith.constant 1.000000e+00 : f32
    %72 = vector.broadcast %cst_26 : f32 to vector<2x16xf32>
    %73 = arith.addf %72, %71 : vector<2x16xf32>
    %74 = arith.divf %72, %73 : vector<2x16xf32>
    %75 = vector.extract_strided_slice %54 {offsets = [0, 32], sizes = [2, 16], strides = [1, 1]} : vector<2x48xf32> to vector<2x16xf32>
    %76 = vector.extract_strided_slice %58 {offsets = [0, 32], sizes = [2, 16], strides = [1, 1]} : vector<2x48xf32> to vector<2x16xf32>
    %77 = arith.mulf %66, %76 : vector<2x16xf32>
    %78 = arith.addf %75, %77 : vector<2x16xf32>
    %79 = math.tanh %78 : vector<2x16xf32>
    %cst_27 = arith.constant 1.000000e+00 : f32
    %80 = vector.broadcast %cst_27 : f32 to vector<2x16xf32>
    %81 = arith.subf %80, %74 : vector<2x16xf32>
    %82 = arith.mulf %81, %79 : vector<2x16xf32>
    %83 = arith.mulf %74, %45 : vector<2x16xf32>
    %84 = arith.addf %82, %83 : vector<2x16xf32>
    %c0_28 = arith.constant 0 : index
    %85 = arith.index_cast %51 : i32 to index
    %c0_29 = arith.constant 0 : index
    %c0_30 = arith.constant 0 : index
    %86 = vector.load %arg5[%c0_28, %85, %c0_29, %c0_30] : memref<1x8x2x16xf32, #tpu.memory_space<vmem>>, vector<1x1x2x16xf32>
    %87 = vector.shape_cast %86 : vector<1x1x2x16xf32> to vector<2x16xf32>
    %88 = vector.shape_cast %84 : vector<2x16xf32> to vector<1x1x2x16xf32>
    tpu.vector_store %arg5[%c0_28, %85, %c0_29, %c0_30], %88 {strides = array<i32>} : memref<1x8x2x16xf32, #tpu.memory_space<vmem>>, vector<1x1x2x16xf32>,
    %c2_i32 = arith.constant 2 : i32
    %89 = arith.muli %9, %c2_i32 : i32
    %90 = arith.addi %8, %89 : i32
    %c0_31 = arith.constant 0 : index
    %91 = arith.index_cast %90 : i32 to index
    %c0_32 = arith.constant 0 : index
    %c0_33 = arith.constant 0 : index
    %92 = vector.load %arg2[%c0_31, %91, %c0_32, %c0_33] : memref<1x8x2x48xf32, #tpu.memory_space<vmem>>, vector<1x1x2x48xf32>
    %93 = vector.shape_cast %92 : vector<1x1x2x48xf32> to vector<2x48xf32>
    %94 = arith.truncf %84 : vector<2x16xf32> to vector<2x16xbf16>
    %cst_34 = arith.constant dense<0.000000e+00> : vector<2x48xf32>
    %95 = tpu.matmul %94, %4, %cst_34 {dimension_numbers = #tpu.dot_dimension_numbers<[1], [0], [0], [1], [0, 0, 1, 1], [], []>} : vector<2x16xbf16>, vector<16x48xbf16>, vector<2x48xf32> -> vector<2x48xf32>
    %96 = vector.broadcast %6 : vector<1x48xf32> to vector<2x48xf32>
    %97 = arith.addf %95, %96 : vector<2x48xf32>
    %98 = vector.extract_strided_slice %93 {offsets = [0, 0], sizes = [2, 16], strides = [1, 1]} : vector<2x48xf32> to vector<2x16xf32>
    %99 = vector.extract_strided_slice %97 {offsets = [0, 0], sizes = [2, 16], strides = [1, 1]} : vector<2x48xf32> to vector<2x16xf32>
    %100 = arith.addf %98, %99 : vector<2x16xf32>
    %101 = arith.negf %100 : vector<2x16xf32>
    %102 = math.exp %101 : vector<2x16xf32>
    %cst_35 = arith.constant 1.000000e+00 : f32
    %103 = vector.broadcast %cst_35 : f32 to vector<2x16xf32>
    %104 = arith.addf %103, %102 : vector<2x16xf32>
    %105 = arith.divf %103, %104 : vector<2x16xf32>
    %106 = vector.extract_strided_slice %93 {offsets = [0, 16], sizes = [2, 16], strides = [1, 1]} : vector<2x48xf32> to vector<2x16xf32>
    %107 = vector.extract_strided_slice %97 {offsets = [0, 16], sizes = [2, 16], strides = [1, 1]} : vector<2x48xf32> to vector<2x16xf32>
    %108 = arith.addf %106, %107 : vector<2x16xf32>
    %109 = arith.negf %108 : vector<2x16xf32>
    %110 = math.exp %109 : vector<2x16xf32>
    %cst_36 = arith.constant 1.000000e+00 : f32
    %111 = vector.broadcast %cst_36 : f32 to vector<2x16xf32>
    %112 = arith.addf %111, %110 : vector<2x16xf32>
    %113 = arith.divf %111, %112 : vector<2x16xf32>
    %114 = vector.extract_strided_slice %93 {offsets = [0, 32], sizes = [2, 16], strides = [1, 1]} : vector<2x48xf32> to vector<2x16xf32>
    %115 = vector.extract_strided_slice %97 {offsets = [0, 32], sizes = [2, 16], strides = [1, 1]} : vector<2x48xf32> to vector<2x16xf32>
    %116 = arith.mulf %105, %115 : vector<2x16xf32>
    %117 = arith.addf %114, %116 : vector<2x16xf32>
    %118 = math.tanh %117 : vector<2x16xf32>
    %cst_37 = arith.constant 1.000000e+00 : f32
    %119 = vector.broadcast %cst_37 : f32 to vector<2x16xf32>
    %120 = arith.subf %119, %113 : vector<2x16xf32>
    %121 = arith.mulf %120, %118 : vector<2x16xf32>
    %122 = arith.mulf %113, %84 : vector<2x16xf32>
    %123 = arith.addf %121, %122 : vector<2x16xf32>
    %c0_38 = arith.constant 0 : index
    %124 = arith.index_cast %90 : i32 to index
    %c0_39 = arith.constant 0 : index
    %c0_40 = arith.constant 0 : index
    %125 = vector.load %arg5[%c0_38, %124, %c0_39, %c0_40] : memref<1x8x2x16xf32, #tpu.memory_space<vmem>>, vector<1x1x2x16xf32>
    %126 = vector.shape_cast %125 : vector<1x1x2x16xf32> to vector<2x16xf32>
    %127 = vector.shape_cast %123 : vector<2x16xf32> to vector<1x1x2x16xf32>
    tpu.vector_store %arg5[%c0_38, %124, %c0_39, %c0_40], %127 {strides = array<i32>} : memref<1x8x2x16xf32, #tpu.memory_space<vmem>>, vector<1x1x2x16xf32>,
    %c3_i32 = arith.constant 3 : i32
    %128 = arith.muli %9, %c3_i32 : i32
    %129 = arith.addi %8, %128 : i32
    %c0_41 = arith.constant 0 : index
    %130 = arith.index_cast %129 : i32 to index
    %c0_42 = arith.constant 0 : index
    %c0_43 = arith.constant 0 : index
    %131 = vector.load %arg2[%c0_41, %130, %c0_42, %c0_43] : memref<1x8x2x48xf32, #tpu.memory_space<vmem>>, vector<1x1x2x48xf32>
    %132 = vector.shape_cast %131 : vector<1x1x2x48xf32> to vector<2x48xf32>
    %133 = arith.truncf %123 : vector<2x16xf32> to vector<2x16xbf16>
    %cst_44 = arith.constant dense<0.000000e+00> : vector<2x48xf32>
    %134 = tpu.matmul %133, %4, %cst_44 {dimension_numbers = #tpu.dot_dimension_numbers<[1], [0], [0], [1], [0, 0, 1, 1], [], []>} : vector<2x16xbf16>, vector<16x48xbf16>, vector<2x48xf32> -> vector<2x48xf32>
    %135 = vector.broadcast %6 : vector<1x48xf32> to vector<2x48xf32>
    %136 = arith.addf %134, %135 : vector<2x48xf32>
    %137 = vector.extract_strided_slice %132 {offsets = [0, 0], sizes = [2, 16], strides = [1, 1]} : vector<2x48xf32> to vector<2x16xf32>
    %138 = vector.extract_strided_slice %136 {offsets = [0, 0], sizes = [2, 16], strides = [1, 1]} : vector<2x48xf32> to vector<2x16xf32>
    %139 = arith.addf %137, %138 : vector<2x16xf32>
    %140 = arith.negf %139 : vector<2x16xf32>
    %141 = math.exp %140 : vector<2x16xf32>
    %cst_45 = arith.constant 1.000000e+00 : f32
    %142 = vector.broadcast %cst_45 : f32 to vector<2x16xf32>
    %143 = arith.addf %142, %141 : vector<2x16xf32>
    %144 = arith.divf %142, %143 : vector<2x16xf32>
    %145 = vector.extract_strided_slice %132 {offsets = [0, 16], sizes = [2, 16], strides = [1, 1]} : vector<2x48xf32> to vector<2x16xf32>
    %146 = vector.extract_strided_slice %136 {offsets = [0, 16], sizes = [2, 16], strides = [1, 1]} : vector<2x48xf32> to vector<2x16xf32>
    %147 = arith.addf %145, %146 : vector<2x16xf32>
    %148 = arith.negf %147 : vector<2x16xf32>
    %149 = math.exp %148 : vector<2x16xf32>
    %cst_46 = arith.constant 1.000000e+00 : f32
    %150 = vector.broadcast %cst_46 : f32 to vector<2x16xf32>
    %151 = arith.addf %150, %149 : vector<2x16xf32>
    %152 = arith.divf %150, %151 : vector<2x16xf32>
    %153 = vector.extract_strided_slice %132 {offsets = [0, 32], sizes = [2, 16], strides = [1, 1]} : vector<2x48xf32> to vector<2x16xf32>
    %154 = vector.extract_strided_slice %136 {offsets = [0, 32], sizes = [2, 16], strides = [1, 1]} : vector<2x48xf32> to vector<2x16xf32>
    %155 = arith.mulf %144, %154 : vector<2x16xf32>
    %156 = arith.addf %153, %155 : vector<2x16xf32>
    %157 = math.tanh %156 : vector<2x16xf32>
    %cst_47 = arith.constant 1.000000e+00 : f32
    %158 = vector.broadcast %cst_47 : f32 to vector<2x16xf32>
    %159 = arith.subf %158, %152 : vector<2x16xf32>
    %160 = arith.mulf %159, %157 : vector<2x16xf32>
    %161 = arith.mulf %152, %123 : vector<2x16xf32>
    %162 = arith.addf %160, %161 : vector<2x16xf32>
    %c0_48 = arith.constant 0 : index
    %163 = arith.index_cast %129 : i32 to index
    %c0_49 = arith.constant 0 : index
    %c0_50 = arith.constant 0 : index
    %164 = vector.load %arg5[%c0_48, %163, %c0_49, %c0_50] : memref<1x8x2x16xf32, #tpu.memory_space<vmem>>, vector<1x1x2x16xf32>
    %165 = vector.shape_cast %164 : vector<1x1x2x16xf32> to vector<2x16xf32>
    %166 = vector.shape_cast %162 : vector<2x16xf32> to vector<1x1x2x16xf32>
    tpu.vector_store %arg5[%c0_48, %163, %c0_49, %c0_50], %166 {strides = array<i32>} : memref<1x8x2x16xf32, #tpu.memory_space<vmem>>, vector<1x1x2x16xf32>,
    %c4_i32 = arith.constant 4 : i32
    %167 = arith.muli %9, %c4_i32 : i32
    %168 = arith.addi %8, %167 : i32
    %c0_51 = arith.constant 0 : index
    %169 = arith.index_cast %168 : i32 to index
    %c0_52 = arith.constant 0 : index
    %c0_53 = arith.constant 0 : index
    %170 = vector.load %arg2[%c0_51, %169, %c0_52, %c0_53] : memref<1x8x2x48xf32, #tpu.memory_space<vmem>>, vector<1x1x2x48xf32>
    %171 = vector.shape_cast %170 : vector<1x1x2x48xf32> to vector<2x48xf32>
    %172 = arith.truncf %162 : vector<2x16xf32> to vector<2x16xbf16>
    %cst_54 = arith.constant dense<0.000000e+00> : vector<2x48xf32>
    %173 = tpu.matmul %172, %4, %cst_54 {dimension_numbers = #tpu.dot_dimension_numbers<[1], [0], [0], [1], [0, 0, 1, 1], [], []>} : vector<2x16xbf16>, vector<16x48xbf16>, vector<2x48xf32> -> vector<2x48xf32>
    %174 = vector.broadcast %6 : vector<1x48xf32> to vector<2x48xf32>
    %175 = arith.addf %173, %174 : vector<2x48xf32>
    %176 = vector.extract_strided_slice %171 {offsets = [0, 0], sizes = [2, 16], strides = [1, 1]} : vector<2x48xf32> to vector<2x16xf32>
    %177 = vector.extract_strided_slice %175 {offsets = [0, 0], sizes = [2, 16], strides = [1, 1]} : vector<2x48xf32> to vector<2x16xf32>
    %178 = arith.addf %176, %177 : vector<2x16xf32>
    %179 = arith.negf %178 : vector<2x16xf32>
    %180 = math.exp %179 : vector<2x16xf32>
    %cst_55 = arith.constant 1.000000e+00 : f32
    %181 = vector.broadcast %cst_55 : f32 to vector<2x16xf32>
    %182 = arith.addf %181, %180 : vector<2x16xf32>
    %183 = arith.divf %181, %182 : vector<2x16xf32>
    %184 = vector.extract_strided_slice %171 {offsets = [0, 16], sizes = [2, 16], strides = [1, 1]} : vector<2x48xf32> to vector<2x16xf32>
    %185 = vector.extract_strided_slice %175 {offsets = [0, 16], sizes = [2, 16], strides = [1, 1]} : vector<2x48xf32> to vector<2x16xf32>
    %186 = arith.addf %184, %185 : vector<2x16xf32>
    %187 = arith.negf %186 : vector<2x16xf32>
    %188 = math.exp %187 : vector<2x16xf32>
    %cst_56 = arith.constant 1.000000e+00 : f32
    %189 = vector.broadcast %cst_56 : f32 to vector<2x16xf32>
    %190 = arith.addf %189, %188 : vector<2x16xf32>
    %191 = arith.divf %189, %190 : vector<2x16xf32>
    %192 = vector.extract_strided_slice %171 {offsets = [0, 32], sizes = [2, 16], strides = [1, 1]} : vector<2x48xf32> to vector<2x16xf32>
    %193 = vector.extract_strided_slice %175 {offsets = [0, 32], sizes = [2, 16], strides = [1, 1]} : vector<2x48xf32> to vector<2x16xf32>
    %194 = arith.mulf %183, %193 : vector<2x16xf32>
    %195 = arith.addf %192, %194 : vector<2x16xf32>
    %196 = math.tanh %195 : vector<2x16xf32>
    %cst_57 = arith.constant 1.000000e+00 : f32
    %197 = vector.broadcast %cst_57 : f32 to vector<2x16xf32>
    %198 = arith.subf %197, %191 : vector<2x16xf32>
    %199 = arith.mulf %198, %196 : vector<2x16xf32>
    %200 = arith.mulf %191, %162 : vector<2x16xf32>
    %201 = arith.addf %199, %200 : vector<2x16xf32>
    %c0_58 = arith.constant 0 : index
    %202 = arith.index_cast %168 : i32 to index
    %c0_59 = arith.constant 0 : index
    %c0_60 = arith.constant 0 : index
    %203 = vector.load %arg5[%c0_58, %202, %c0_59, %c0_60] : memref<1x8x2x16xf32, #tpu.memory_space<vmem>>, vector<1x1x2x16xf32>
    %204 = vector.shape_cast %203 : vector<1x1x2x16xf32> to vector<2x16xf32>
    %205 = vector.shape_cast %201 : vector<2x16xf32> to vector<1x1x2x16xf32>
    tpu.vector_store %arg5[%c0_58, %202, %c0_59, %c0_60], %205 {strides = array<i32>} : memref<1x8x2x16xf32, #tpu.memory_space<vmem>>, vector<1x1x2x16xf32>,
    %c5_i32 = arith.constant 5 : i32
    %206 = arith.muli %9, %c5_i32 : i32
    %207 = arith.addi %8, %206 : i32
    %c0_61 = arith.constant 0 : index
    %208 = arith.index_cast %207 : i32 to index
    %c0_62 = arith.constant 0 : index
    %c0_63 = arith.constant 0 : index
    %209 = vector.load %arg2[%c0_61, %208, %c0_62, %c0_63] : memref<1x8x2x48xf32, #tpu.memory_space<vmem>>, vector<1x1x2x48xf32>
    %210 = vector.shape_cast %209 : vector<1x1x2x48xf32> to vector<2x48xf32>
    %211 = arith.truncf %201 : vector<2x16xf32> to vector<2x16xbf16>
    %cst_64 = arith.constant dense<0.000000e+00> : vector<2x48xf32>
    %212 = tpu.matmul %211, %4, %cst_64 {dimension_numbers = #tpu.dot_dimension_numbers<[1], [0], [0], [1], [0, 0, 1, 1], [], []>} : vector<2x16xbf16>, vector<16x48xbf16>, vector<2x48xf32> -> vector<2x48xf32>
    %213 = vector.broadcast %6 : vector<1x48xf32> to vector<2x48xf32>
    %214 = arith.addf %212, %213 : vector<2x48xf32>
    %215 = vector.extract_strided_slice %210 {offsets = [0, 0], sizes = [2, 16], strides = [1, 1]} : vector<2x48xf32> to vector<2x16xf32>
    %216 = vector.extract_strided_slice %214 {offsets = [0, 0], sizes = [2, 16], strides = [1, 1]} : vector<2x48xf32> to vector<2x16xf32>
    %217 = arith.addf %215, %216 : vector<2x16xf32>
    %218 = arith.negf %217 : vector<2x16xf32>
    %219 = math.exp %218 : vector<2x16xf32>
    %cst_65 = arith.constant 1.000000e+00 : f32
    %220 = vector.broadcast %cst_65 : f32 to vector<2x16xf32>
    %221 = arith.addf %220, %219 : vector<2x16xf32>
    %222 = arith.divf %220, %221 : vector<2x16xf32>
    %223 = vector.extract_strided_slice %210 {offsets = [0, 16], sizes = [2, 16], strides = [1, 1]} : vector<2x48xf32> to vector<2x16xf32>
    %224 = vector.extract_strided_slice %214 {offsets = [0, 16], sizes = [2, 16], strides = [1, 1]} : vector<2x48xf32> to vector<2x16xf32>
    %225 = arith.addf %223, %224 : vector<2x16xf32>
    %226 = arith.negf %225 : vector<2x16xf32>
    %227 = math.exp %226 : vector<2x16xf32>
    %cst_66 = arith.constant 1.000000e+00 : f32
    %228 = vector.broadcast %cst_66 : f32 to vector<2x16xf32>
    %229 = arith.addf %228, %227 : vector<2x16xf32>
    %230 = arith.divf %228, %229 : vector<2x16xf32>
    %231 = vector.extract_strided_slice %210 {offsets = [0, 32], sizes = [2, 16], strides = [1, 1]} : vector<2x48xf32> to vector<2x16xf32>
    %232 = vector.extract_strided_slice %214 {offsets = [0, 32], sizes = [2, 16], strides = [1, 1]} : vector<2x48xf32> to vector<2x16xf32>
    %233 = arith.mulf %222, %232 : vector<2x16xf32>
    %234 = arith.addf %231, %233 : vector<2x16xf32>
    %235 = math.tanh %234 : vector<2x16xf32>
    %cst_67 = arith.constant 1.000000e+00 : f32
    %236 = vector.broadcast %cst_67 : f32 to vector<2x16xf32>
    %237 = arith.subf %236, %230 : vector<2x16xf32>
    %238 = arith.mulf %237, %235 : vector<2x16xf32>
    %239 = arith.mulf %230, %201 : vector<2x16xf32>
    %240 = arith.addf %238, %239 : vector<2x16xf32>
    %c0_68 = arith.constant 0 : index
    %241 = arith.index_cast %207 : i32 to index
    %c0_69 = arith.constant 0 : index
    %c0_70 = arith.constant 0 : index
    %242 = vector.load %arg5[%c0_68, %241, %c0_69, %c0_70] : memref<1x8x2x16xf32, #tpu.memory_space<vmem>>, vector<1x1x2x16xf32>
    %243 = vector.shape_cast %242 : vector<1x1x2x16xf32> to vector<2x16xf32>
    %244 = vector.shape_cast %240 : vector<2x16xf32> to vector<1x1x2x16xf32>
    tpu.vector_store %arg5[%c0_68, %241, %c0_69, %c0_70], %244 {strides = array<i32>} : memref<1x8x2x16xf32, #tpu.memory_space<vmem>>, vector<1x1x2x16xf32>,
    %c6_i32 = arith.constant 6 : i32
    %245 = arith.muli %9, %c6_i32 : i32
    %246 = arith.addi %8, %245 : i32
    %c0_71 = arith.constant 0 : index
    %247 = arith.index_cast %246 : i32 to index
    %c0_72 = arith.constant 0 : index
    %c0_73 = arith.constant 0 : index
    %248 = vector.load %arg2[%c0_71, %247, %c0_72, %c0_73] : memref<1x8x2x48xf32, #tpu.memory_space<vmem>>, vector<1x1x2x48xf32>
    %249 = vector.shape_cast %248 : vector<1x1x2x48xf32> to vector<2x48xf32>
    %250 = arith.truncf %240 : vector<2x16xf32> to vector<2x16xbf16>
    %cst_74 = arith.constant dense<0.000000e+00> : vector<2x48xf32>
    %251 = tpu.matmul %250, %4, %cst_74 {dimension_numbers = #tpu.dot_dimension_numbers<[1], [0], [0], [1], [0, 0, 1, 1], [], []>} : vector<2x16xbf16>, vector<16x48xbf16>, vector<2x48xf32> -> vector<2x48xf32>
    %252 = vector.broadcast %6 : vector<1x48xf32> to vector<2x48xf32>
    %253 = arith.addf %251, %252 : vector<2x48xf32>
    %254 = vector.extract_strided_slice %249 {offsets = [0, 0], sizes = [2, 16], strides = [1, 1]} : vector<2x48xf32> to vector<2x16xf32>
    %255 = vector.extract_strided_slice %253 {offsets = [0, 0], sizes = [2, 16], strides = [1, 1]} : vector<2x48xf32> to vector<2x16xf32>
    %256 = arith.addf %254, %255 : vector<2x16xf32>
    %257 = arith.negf %256 : vector<2x16xf32>
    %258 = math.exp %257 : vector<2x16xf32>
    %cst_75 = arith.constant 1.000000e+00 : f32
    %259 = vector.broadcast %cst_75 : f32 to vector<2x16xf32>
    %260 = arith.addf %259, %258 : vector<2x16xf32>
    %261 = arith.divf %259, %260 : vector<2x16xf32>
    %262 = vector.extract_strided_slice %249 {offsets = [0, 16], sizes = [2, 16], strides = [1, 1]} : vector<2x48xf32> to vector<2x16xf32>
    %263 = vector.extract_strided_slice %253 {offsets = [0, 16], sizes = [2, 16], strides = [1, 1]} : vector<2x48xf32> to vector<2x16xf32>
    %264 = arith.addf %262, %263 : vector<2x16xf32>
    %265 = arith.negf %264 : vector<2x16xf32>
    %266 = math.exp %265 : vector<2x16xf32>
    %cst_76 = arith.constant 1.000000e+00 : f32
    %267 = vector.broadcast %cst_76 : f32 to vector<2x16xf32>
    %268 = arith.addf %267, %266 : vector<2x16xf32>
    %269 = arith.divf %267, %268 : vector<2x16xf32>
    %270 = vector.extract_strided_slice %249 {offsets = [0, 32], sizes = [2, 16], strides = [1, 1]} : vector<2x48xf32> to vector<2x16xf32>
    %271 = vector.extract_strided_slice %253 {offsets = [0, 32], sizes = [2, 16], strides = [1, 1]} : vector<2x48xf32> to vector<2x16xf32>
    %272 = arith.mulf %261, %271 : vector<2x16xf32>
    %273 = arith.addf %270, %272 : vector<2x16xf32>
    %274 = math.tanh %273 : vector<2x16xf32>
    %cst_77 = arith.constant 1.000000e+00 : f32
    %275 = vector.broadcast %cst_77 : f32 to vector<2x16xf32>
    %276 = arith.subf %275, %269 : vector<2x16xf32>
    %277 = arith.mulf %276, %274 : vector<2x16xf32>
    %278 = arith.mulf %269, %240 : vector<2x16xf32>
    %279 = arith.addf %277, %278 : vector<2x16xf32>
    %c0_78 = arith.constant 0 : index
    %280 = arith.index_cast %246 : i32 to index
    %c0_79 = arith.constant 0 : index
    %c0_80 = arith.constant 0 : index
    %281 = vector.load %arg5[%c0_78, %280, %c0_79, %c0_80] : memref<1x8x2x16xf32, #tpu.memory_space<vmem>>, vector<1x1x2x16xf32>
    %282 = vector.shape_cast %281 : vector<1x1x2x16xf32> to vector<2x16xf32>
    %283 = vector.shape_cast %279 : vector<2x16xf32> to vector<1x1x2x16xf32>
    tpu.vector_store %arg5[%c0_78, %280, %c0_79, %c0_80], %283 {strides = array<i32>} : memref<1x8x2x16xf32, #tpu.memory_space<vmem>>, vector<1x1x2x16xf32>,
    %c7_i32_81 = arith.constant 7 : i32
    %284 = arith.muli %9, %c7_i32_81 : i32
    %285 = arith.addi %8, %284 : i32
    %c0_82 = arith.constant 0 : index
    %286 = arith.index_cast %285 : i32 to index
    %c0_83 = arith.constant 0 : index
    %c0_84 = arith.constant 0 : index
    %287 = vector.load %arg2[%c0_82, %286, %c0_83, %c0_84] : memref<1x8x2x48xf32, #tpu.memory_space<vmem>>, vector<1x1x2x48xf32>
    %288 = vector.shape_cast %287 : vector<1x1x2x48xf32> to vector<2x48xf32>
    %289 = arith.truncf %279 : vector<2x16xf32> to vector<2x16xbf16>
    %cst_85 = arith.constant dense<0.000000e+00> : vector<2x48xf32>
    %290 = tpu.matmul %289, %4, %cst_85 {dimension_numbers = #tpu.dot_dimension_numbers<[1], [0], [0], [1], [0, 0, 1, 1], [], []>} : vector<2x16xbf16>, vector<16x48xbf16>, vector<2x48xf32> -> vector<2x48xf32>
    %291 = vector.broadcast %6 : vector<1x48xf32> to vector<2x48xf32>
    %292 = arith.addf %290, %291 : vector<2x48xf32>
    %293 = vector.extract_strided_slice %288 {offsets = [0, 0], sizes = [2, 16], strides = [1, 1]} : vector<2x48xf32> to vector<2x16xf32>
    %294 = vector.extract_strided_slice %292 {offsets = [0, 0], sizes = [2, 16], strides = [1, 1]} : vector<2x48xf32> to vector<2x16xf32>
    %295 = arith.addf %293, %294 : vector<2x16xf32>
    %296 = arith.negf %295 : vector<2x16xf32>
    %297 = math.exp %296 : vector<2x16xf32>
    %cst_86 = arith.constant 1.000000e+00 : f32
    %298 = vector.broadcast %cst_86 : f32 to vector<2x16xf32>
    %299 = arith.addf %298, %297 : vector<2x16xf32>
    %300 = arith.divf %298, %299 : vector<2x16xf32>
    %301 = vector.extract_strided_slice %288 {offsets = [0, 16], sizes = [2, 16], strides = [1, 1]} : vector<2x48xf32> to vector<2x16xf32>
    %302 = vector.extract_strided_slice %292 {offsets = [0, 16], sizes = [2, 16], strides = [1, 1]} : vector<2x48xf32> to vector<2x16xf32>
    %303 = arith.addf %301, %302 : vector<2x16xf32>
    %304 = arith.negf %303 : vector<2x16xf32>
    %305 = math.exp %304 : vector<2x16xf32>
    %cst_87 = arith.constant 1.000000e+00 : f32
    %306 = vector.broadcast %cst_87 : f32 to vector<2x16xf32>
    %307 = arith.addf %306, %305 : vector<2x16xf32>
    %308 = arith.divf %306, %307 : vector<2x16xf32>
    %309 = vector.extract_strided_slice %288 {offsets = [0, 32], sizes = [2, 16], strides = [1, 1]} : vector<2x48xf32> to vector<2x16xf32>
    %310 = vector.extract_strided_slice %292 {offsets = [0, 32], sizes = [2, 16], strides = [1, 1]} : vector<2x48xf32> to vector<2x16xf32>
    %311 = arith.mulf %300, %310 : vector<2x16xf32>
    %312 = arith.addf %309, %311 : vector<2x16xf32>
    %313 = math.tanh %312 : vector<2x16xf32>
    %cst_88 = arith.constant 1.000000e+00 : f32
    %314 = vector.broadcast %cst_88 : f32 to vector<2x16xf32>
    %315 = arith.subf %314, %308 : vector<2x16xf32>
    %316 = arith.mulf %315, %313 : vector<2x16xf32>
    %317 = arith.mulf %308, %279 : vector<2x16xf32>
    %318 = arith.addf %316, %317 : vector<2x16xf32>
    %c0_89 = arith.constant 0 : index
    %319 = arith.index_cast %285 : i32 to index
    %c0_90 = arith.constant 0 : index
    %c0_91 = arith.constant 0 : index
    %320 = vector.load %arg5[%c0_89, %319, %c0_90, %c0_91] : memref<1x8x2x16xf32, #tpu.memory_space<vmem>>, vector<1x1x2x16xf32>
    %321 = vector.shape_cast %320 : vector<1x1x2x16xf32> to vector<2x16xf32>
    %322 = vector.shape_cast %318 : vector<2x16xf32> to vector<1x1x2x16xf32>
    tpu.vector_store %arg5[%c0_89, %319, %c0_90, %c0_91], %322 {strides = array<i32>} : memref<1x8x2x16xf32, #tpu.memory_space<vmem>>, vector<1x1x2x16xf32>,
    %c8_i32 = arith.constant 8 : i32
    %c0_92 = arith.constant 0 : index
    %c0_93 = arith.constant 0 : index
    %323 = vector.load %arg7[%c0_92, %c0_93] : memref<2x16xf32, #tpu.memory_space<vmem>>, vector<2x16xf32>
    tpu.vector_store %arg7[%c0_92, %c0_93], %318 {strides = array<i32>} : memref<2x16xf32, #tpu.memory_space<vmem>>, vector<2x16xf32>,
    %c0_i32_94 = arith.constant 0 : i32
    %324 = arith.cmpi eq, %arg1, %c0_i32_94 : i32
    %325 = arith.extui %324 : i1 to i32
    %c0_i32_95 = arith.constant 0 : i32
    %326 = arith.cmpi ne, %325, %c0_i32_95 : i32
    scf.if %326 {
      %c0_96 = arith.constant 0 : index
      %c0_97 = arith.constant 0 : index
      %c0_98 = arith.constant 0 : index
      %327 = vector.load %arg6[%c0_96, %c0_97, %c0_98] : memref<1x2x16xf32, #tpu.memory_space<vmem>>, vector<1x2x16xf32>
      %328 = vector.shape_cast %327 : vector<1x2x16xf32> to vector<2x16xf32>
      %329 = vector.shape_cast %318 : vector<2x16xf32> to vector<1x2x16xf32>
      tpu.vector_store %arg6[%c0_96, %c0_97, %c0_98], %329 {strides = array<i32>} : memref<1x2x16xf32, #tpu.memory_space<vmem>>, vector<1x2x16xf32>,
    } else {
    }
    return
  }
  func.func @transform_0(%arg0: i32, %arg1: i32) -> (i32, i32, i32, i32) {
    %c2_i32 = arith.constant 2 : i32
    %0 = arith.muli %c2_i32, %arg1 : i32
    %c0_i32 = arith.constant 0 : i32
    %1 = arith.subi %c0_i32, %0 : i32
    %2 = arith.muli %arg0, %1 : i32
    %3 = arith.addi %arg1, %2 : i32
    %c0_i32_0 = arith.constant 0 : i32
    %c0_i32_1 = arith.constant 0 : i32
    %c0_i32_2 = arith.constant 0 : i32
    return %arg0, %3, %c0_i32_0, %c0_i32_1 : i32, i32, i32, i32
  }
  func.func @transform_1(%arg0: i32, %arg1: i32) -> (i32, i32, i32) {
    %c0_i32 = arith.constant 0 : i32
    %c0_i32_0 = arith.constant 0 : i32
    %c0_i32_1 = arith.constant 0 : i32
    return %arg0, %c0_i32, %c0_i32_0 : i32, i32, i32
  }
  func.func @transform_2(%arg0: i32, %arg1: i32) -> (i32, i32, i32) {
    %c0_i32 = arith.constant 0 : i32
    %c0_i32_0 = arith.constant 0 : i32
    %c0_i32_1 = arith.constant 0 : i32
    return %arg0, %c0_i32, %c0_i32_0 : i32, i32, i32
  }
  func.func @transform_3(%arg0: i32, %arg1: i32) -> (i32, i32, i32, i32) {
    %c2_i32 = arith.constant 2 : i32
    %0 = arith.muli %c2_i32, %arg1 : i32
    %c0_i32 = arith.constant 0 : i32
    %1 = arith.subi %c0_i32, %0 : i32
    %2 = arith.muli %arg0, %1 : i32
    %3 = arith.addi %arg1, %2 : i32
    %c0_i32_0 = arith.constant 0 : i32
    %c0_i32_1 = arith.constant 0 : i32
    %c0_i32_2 = arith.constant 0 : i32
    return %arg0, %3, %c0_i32_0, %c0_i32_1 : i32, i32, i32, i32
  }
  func.func @transform_4(%arg0: i32, %arg1: i32) -> (i32, i32, i32) {
    %c0_i32 = arith.constant 0 : i32
    %c0_i32_0 = arith.constant 0 : i32
    %c0_i32_1 = arith.constant 0 : i32
    return %arg0, %c0_i32, %c0_i32_0 : i32, i32, i32
  }
}

module attributes {stable_mosaic.version = 11 : i64} {
  func.func @matmul_bias_kernel(%arg0: i32, %arg1: i32, %arg2: i32, %arg3: memref<16x24xbf16, #tpu.memory_space<vmem>>, %arg4: memref<24x48xbf16, #tpu.memory_space<vmem>>, %arg5: memref<1x48xf32, #tpu.memory_space<vmem>>, %arg6: memref<16x48xf32, #tpu.memory_space<vmem>>, %arg7: memref<16x48xf32, #tpu.memory_space<vmem>>) attributes {dimension_semantics = [#tpu.dimension_semantics<parallel>, #tpu.dimension_semantics<parallel>, #tpu.dimension_semantics<arbitrary>], iteration_bounds = array<i64: 1, 1, 1>, scalar_prefetch = 0 : i64, scratch_operands = 1 : i64, tpu.core_type = #tpu.core_type<tc>, window_params = [{transform_indices = @transform_0, window_bounds = array<i64: 16, 24>}, {transform_indices = @transform_1, window_bounds = array<i64: 24, 48>}, {transform_indices = @transform_2, window_bounds = array<i64: 1, 48>}, {transform_indices = @transform_3, window_bounds = array<i64: 16, 48>}]} {
    %c0_i32 = arith.constant 0 : i32
    %0 = arith.cmpi eq, %arg2, %c0_i32 : i32
    %1 = arith.extui %0 : i1 to i32
    %c0_i32_0 = arith.constant 0 : i32
    %2 = arith.cmpi ne, %1, %c0_i32_0 : i32
    scf.if %2 {
      %cst_10 = arith.constant 0.000000e+00 : f32
      %12 = vector.broadcast %cst_10 : f32 to vector<16x48xf32>
      %c0_11 = arith.constant 0 : index
      %c0_12 = arith.constant 0 : index
      %13 = vector.load %arg7[%c0_11, %c0_12] : memref<16x48xf32, #tpu.memory_space<vmem>>, vector<16x48xf32>
      tpu.vector_store %arg7[%c0_11, %c0_12], %12 {strides = array<i32>} : memref<16x48xf32, #tpu.memory_space<vmem>>, vector<16x48xf32>,
    } else {
    }
    %c0 = arith.constant 0 : index
    %c0_1 = arith.constant 0 : index
    %3 = vector.load %arg7[%c0, %c0_1] : memref<16x48xf32, #tpu.memory_space<vmem>>, vector<16x48xf32>
    %c0_2 = arith.constant 0 : index
    %c0_3 = arith.constant 0 : index
    %4 = vector.load %arg3[%c0_2, %c0_3] : memref<16x24xbf16, #tpu.memory_space<vmem>>, vector<16x24xbf16>
    %c0_4 = arith.constant 0 : index
    %c0_5 = arith.constant 0 : index
    %5 = vector.load %arg4[%c0_4, %c0_5] : memref<24x48xbf16, #tpu.memory_space<vmem>>, vector<24x48xbf16>
    %cst = arith.constant dense<0.000000e+00> : vector<16x48xf32>
    %6 = tpu.matmul %4, %5, %cst {dimension_numbers = #tpu.dot_dimension_numbers<[1], [0], [0], [1], [0, 0, 1, 1], [], []>} : vector<16x24xbf16>, vector<24x48xbf16>, vector<16x48xf32> -> vector<16x48xf32>
    %7 = arith.addf %3, %6 : vector<16x48xf32>
    %c0_6 = arith.constant 0 : index
    %c0_7 = arith.constant 0 : index
    %8 = vector.load %arg7[%c0_6, %c0_7] : memref<16x48xf32, #tpu.memory_space<vmem>>, vector<16x48xf32>
    tpu.vector_store %arg7[%c0_6, %c0_7], %7 {strides = array<i32>} : memref<16x48xf32, #tpu.memory_space<vmem>>, vector<16x48xf32>,
    %c0_i32_8 = arith.constant 0 : i32
    %9 = arith.cmpi eq, %arg2, %c0_i32_8 : i32
    %10 = arith.extui %9 : i1 to i32
    %c0_i32_9 = arith.constant 0 : i32
    %11 = arith.cmpi ne, %10, %c0_i32_9 : i32
    scf.if %11 {
      %c0_10 = arith.constant 0 : index
      %c0_11 = arith.constant 0 : index
      %12 = vector.load %arg7[%c0_10, %c0_11] : memref<16x48xf32, #tpu.memory_space<vmem>>, vector<16x48xf32>
      %c0_12 = arith.constant 0 : index
      %c0_13 = arith.constant 0 : index
      %13 = vector.load %arg5[%c0_12, %c0_13] : memref<1x48xf32, #tpu.memory_space<vmem>>, vector<1x48xf32>
      %14 = vector.broadcast %13 : vector<1x48xf32> to vector<16x48xf32>
      %15 = arith.addf %12, %14 : vector<16x48xf32>
      %c0_14 = arith.constant 0 : index
      %c0_15 = arith.constant 0 : index
      %16 = vector.load %arg6[%c0_14, %c0_15] : memref<16x48xf32, #tpu.memory_space<vmem>>, vector<16x48xf32>
      tpu.vector_store %arg6[%c0_14, %c0_15], %15 {strides = array<i32>} : memref<16x48xf32, #tpu.memory_space<vmem>>, vector<16x48xf32>,
    } else {
    }
    return
  }
  func.func @transform_0(%arg0: i32, %arg1: i32, %arg2: i32) -> (i32, i32) {
    %c0_i32 = arith.constant 0 : i32
    return %arg0, %arg2 : i32, i32
  }
  func.func @transform_1(%arg0: i32, %arg1: i32, %arg2: i32) -> (i32, i32) {
    %c0_i32 = arith.constant 0 : i32
    return %arg2, %arg1 : i32, i32
  }
  func.func @transform_2(%arg0: i32, %arg1: i32, %arg2: i32) -> (i32, i32) {
    %c0_i32 = arith.constant 0 : i32
    %c0_i32_0 = arith.constant 0 : i32
    return %c0_i32, %arg1 : i32, i32
  }
  func.func @transform_3(%arg0: i32, %arg1: i32, %arg2: i32) -> (i32, i32) {
    %c0_i32 = arith.constant 0 : i32
    return %arg0, %arg1 : i32, i32
  }
}

module attributes {stable_mosaic.version = 11 : i64} {
  func.func @matmul_bias_kernel(%arg0: i32, %arg1: i32, %arg2: i32, %arg3: memref<16x16xbf16, #tpu.memory_space<vmem>>, %arg4: memref<16x32xbf16, #tpu.memory_space<vmem>>, %arg5: memref<1x32xf32, #tpu.memory_space<vmem>>, %arg6: memref<16x32xf32, #tpu.memory_space<vmem>>, %arg7: memref<16x32xf32, #tpu.memory_space<vmem>>) attributes {dimension_semantics = [#tpu.dimension_semantics<parallel>, #tpu.dimension_semantics<parallel>, #tpu.dimension_semantics<arbitrary>], iteration_bounds = array<i64: 1, 1, 1>, scalar_prefetch = 0 : i64, scratch_operands = 1 : i64, tpu.core_type = #tpu.core_type<tc>, window_params = [{transform_indices = @transform_0, window_bounds = array<i64: 16, 16>}, {transform_indices = @transform_1, window_bounds = array<i64: 16, 32>}, {transform_indices = @transform_2, window_bounds = array<i64: 1, 32>}, {transform_indices = @transform_3, window_bounds = array<i64: 16, 32>}]} {
    %c0_i32 = arith.constant 0 : i32
    %0 = arith.cmpi eq, %arg2, %c0_i32 : i32
    %1 = arith.extui %0 : i1 to i32
    %c0_i32_0 = arith.constant 0 : i32
    %2 = arith.cmpi ne, %1, %c0_i32_0 : i32
    scf.if %2 {
      %cst_10 = arith.constant 0.000000e+00 : f32
      %12 = vector.broadcast %cst_10 : f32 to vector<16x32xf32>
      %c0_11 = arith.constant 0 : index
      %c0_12 = arith.constant 0 : index
      %13 = vector.load %arg7[%c0_11, %c0_12] : memref<16x32xf32, #tpu.memory_space<vmem>>, vector<16x32xf32>
      tpu.vector_store %arg7[%c0_11, %c0_12], %12 {strides = array<i32>} : memref<16x32xf32, #tpu.memory_space<vmem>>, vector<16x32xf32>,
    } else {
    }
    %c0 = arith.constant 0 : index
    %c0_1 = arith.constant 0 : index
    %3 = vector.load %arg7[%c0, %c0_1] : memref<16x32xf32, #tpu.memory_space<vmem>>, vector<16x32xf32>
    %c0_2 = arith.constant 0 : index
    %c0_3 = arith.constant 0 : index
    %4 = vector.load %arg3[%c0_2, %c0_3] : memref<16x16xbf16, #tpu.memory_space<vmem>>, vector<16x16xbf16>
    %c0_4 = arith.constant 0 : index
    %c0_5 = arith.constant 0 : index
    %5 = vector.load %arg4[%c0_4, %c0_5] : memref<16x32xbf16, #tpu.memory_space<vmem>>, vector<16x32xbf16>
    %cst = arith.constant dense<0.000000e+00> : vector<16x32xf32>
    %6 = tpu.matmul %4, %5, %cst {dimension_numbers = #tpu.dot_dimension_numbers<[1], [0], [0], [1], [0, 0, 1, 1], [], []>} : vector<16x16xbf16>, vector<16x32xbf16>, vector<16x32xf32> -> vector<16x32xf32>
    %7 = arith.addf %3, %6 : vector<16x32xf32>
    %c0_6 = arith.constant 0 : index
    %c0_7 = arith.constant 0 : index
    %8 = vector.load %arg7[%c0_6, %c0_7] : memref<16x32xf32, #tpu.memory_space<vmem>>, vector<16x32xf32>
    tpu.vector_store %arg7[%c0_6, %c0_7], %7 {strides = array<i32>} : memref<16x32xf32, #tpu.memory_space<vmem>>, vector<16x32xf32>,
    %c0_i32_8 = arith.constant 0 : i32
    %9 = arith.cmpi eq, %arg2, %c0_i32_8 : i32
    %10 = arith.extui %9 : i1 to i32
    %c0_i32_9 = arith.constant 0 : i32
    %11 = arith.cmpi ne, %10, %c0_i32_9 : i32
    scf.if %11 {
      %c0_10 = arith.constant 0 : index
      %c0_11 = arith.constant 0 : index
      %12 = vector.load %arg7[%c0_10, %c0_11] : memref<16x32xf32, #tpu.memory_space<vmem>>, vector<16x32xf32>
      %c0_12 = arith.constant 0 : index
      %c0_13 = arith.constant 0 : index
      %13 = vector.load %arg5[%c0_12, %c0_13] : memref<1x32xf32, #tpu.memory_space<vmem>>, vector<1x32xf32>
      %14 = vector.broadcast %13 : vector<1x32xf32> to vector<16x32xf32>
      %15 = arith.addf %12, %14 : vector<16x32xf32>
      %c0_14 = arith.constant 0 : index
      %c0_15 = arith.constant 0 : index
      %16 = vector.load %arg6[%c0_14, %c0_15] : memref<16x32xf32, #tpu.memory_space<vmem>>, vector<16x32xf32>
      tpu.vector_store %arg6[%c0_14, %c0_15], %15 {strides = array<i32>} : memref<16x32xf32, #tpu.memory_space<vmem>>, vector<16x32xf32>,
    } else {
    }
    return
  }
  func.func @transform_0(%arg0: i32, %arg1: i32, %arg2: i32) -> (i32, i32) {
    %c0_i32 = arith.constant 0 : i32
    return %arg0, %arg2 : i32, i32
  }
  func.func @transform_1(%arg0: i32, %arg1: i32, %arg2: i32) -> (i32, i32) {
    %c0_i32 = arith.constant 0 : i32
    return %arg2, %arg1 : i32, i32
  }
  func.func @transform_2(%arg0: i32, %arg1: i32, %arg2: i32) -> (i32, i32) {
    %c0_i32 = arith.constant 0 : i32
    %c0_i32_0 = arith.constant 0 : i32
    return %c0_i32, %arg1 : i32, i32
  }
  func.func @transform_3(%arg0: i32, %arg1: i32, %arg2: i32) -> (i32, i32) {
    %c0_i32 = arith.constant 0 : i32
    return %arg0, %arg1 : i32, i32
  }
}

module attributes {stable_mosaic.version = 11 : i64} {
  func.func @gru_chunk_kernel(%arg0: i32, %arg1: i32, %arg2: memref<1x8x2x48xf32, #tpu.memory_space<vmem>>, %arg3: memref<1x16x48xbf16, #tpu.memory_space<vmem>>, %arg4: memref<1x1x48xf32, #tpu.memory_space<vmem>>, %arg5: memref<1x8x2x16xf32, #tpu.memory_space<vmem>>, %arg6: memref<1x2x16xf32, #tpu.memory_space<vmem>>, %arg7: memref<2x16xf32, #tpu.memory_space<vmem>>) attributes {dimension_semantics = [#tpu.dimension_semantics<parallel>, #tpu.dimension_semantics<arbitrary>], iteration_bounds = array<i64: 1, 1>, scalar_prefetch = 0 : i64, scratch_operands = 1 : i64, tpu.core_type = #tpu.core_type<tc>, window_params = [{transform_indices = @transform_0, window_bounds = array<i64: 1, 8, 2, 48>}, {transform_indices = @transform_1, window_bounds = array<i64: 1, 16, 48>}, {transform_indices = @transform_2, window_bounds = array<i64: 1, 1, 48>}, {transform_indices = @transform_3, window_bounds = array<i64: 1, 8, 2, 16>}, {transform_indices = @transform_4, window_bounds = array<i64: 1, 2, 16>}]} {
    %c0_i32 = arith.constant 0 : i32
    %0 = arith.cmpi eq, %arg1, %c0_i32 : i32
    %1 = arith.extui %0 : i1 to i32
    %c0_i32_0 = arith.constant 0 : i32
    %2 = arith.cmpi ne, %1, %c0_i32_0 : i32
    scf.if %2 {
      %cst_96 = arith.constant 0.000000e+00 : f32
      %327 = vector.broadcast %cst_96 : f32 to vector<2x16xf32>
      %c0_97 = arith.constant 0 : index
      %c0_98 = arith.constant 0 : index
      %328 = vector.load %arg7[%c0_97, %c0_98] : memref<2x16xf32, #tpu.memory_space<vmem>>, vector<2x16xf32>
      tpu.vector_store %arg7[%c0_97, %c0_98], %327 {strides = array<i32>} : memref<2x16xf32, #tpu.memory_space<vmem>>, vector<2x16xf32>,
    } else {
    }
    %c0 = arith.constant 0 : index
    %c0_1 = arith.constant 0 : index
    %c0_2 = arith.constant 0 : index
    %3 = vector.load %arg3[%c0, %c0_1, %c0_2] : memref<1x16x48xbf16, #tpu.memory_space<vmem>>, vector<1x16x48xbf16>
    %4 = vector.shape_cast %3 : vector<1x16x48xbf16> to vector<16x48xbf16>
    %c0_3 = arith.constant 0 : index
    %c0_4 = arith.constant 0 : index
    %c0_5 = arith.constant 0 : index
    %5 = vector.load %arg4[%c0_3, %c0_4, %c0_5] : memref<1x1x48xf32, #tpu.memory_space<vmem>>, vector<1x1x48xf32>
    %6 = vector.shape_cast %5 : vector<1x1x48xf32> to vector<1x48xf32>
    %c1_i32 = arith.constant 1 : i32
    %7 = arith.cmpi eq, %arg0, %c1_i32 : i32
    %c7_i32 = arith.constant 7 : i32
    %c0_i32_6 = arith.constant 0 : i32
    %8 = arith.select %7, %c7_i32, %c0_i32_6 : i32
    %c-1_i32 = arith.constant -1 : i32
    %c1_i32_7 = arith.constant 1 : i32
    %9 = arith.select %7, %c-1_i32, %c1_i32_7 : i32
    %c0_8 = arith.constant 0 : index
    %c0_9 = arith.constant 0 : index
    %10 = vector.load %arg7[%c0_8, %c0_9] : memref<2x16xf32, #tpu.memory_space<vmem>>, vector<2x16xf32>
    %c0_i32_10 = arith.constant 0 : i32
    %11 = arith.muli %9, %c0_i32_10 : i32
    %12 = arith.addi %8, %11 : i32
    %c0_11 = arith.constant 0 : index
    %13 = arith.index_cast %12 : i32 to index
    %c0_12 = arith.constant 0 : index
    %c0_13 = arith.constant 0 : index
    %14 = vector.load %arg2[%c0_11, %13, %c0_12, %c0_13] : memref<1x8x2x48xf32, #tpu.memory_space<vmem>>, vector<1x1x2x48xf32>
    %15 = vector.shape_cast %14 : vector<1x1x2x48xf32> to vector<2x48xf32>
    %16 = arith.truncf %10 : vector<2x16xf32> to vector<2x16xbf16>
    %cst = arith.constant dense<0.000000e+00> : vector<2x48xf32>
    %17 = tpu.matmul %16, %4, %cst {dimension_numbers = #tpu.dot_dimension_numbers<[1], [0], [0], [1], [0, 0, 1, 1], [], []>} : vector<2x16xbf16>, vector<16x48xbf16>, vector<2x48xf32> -> vector<2x48xf32>
    %18 = vector.broadcast %6 : vector<1x48xf32> to vector<2x48xf32>
    %19 = arith.addf %17, %18 : vector<2x48xf32>
    %20 = vector.extract_strided_slice %15 {offsets = [0, 0], sizes = [2, 16], strides = [1, 1]} : vector<2x48xf32> to vector<2x16xf32>
    %21 = vector.extract_strided_slice %19 {offsets = [0, 0], sizes = [2, 16], strides = [1, 1]} : vector<2x48xf32> to vector<2x16xf32>
    %22 = arith.addf %20, %21 : vector<2x16xf32>
    %23 = arith.negf %22 : vector<2x16xf32>
    %24 = math.exp %23 : vector<2x16xf32>
    %cst_14 = arith.constant 1.000000e+00 : f32
    %25 = vector.broadcast %cst_14 : f32 to vector<2x16xf32>
    %26 = arith.addf %25, %24 : vector<2x16xf32>
    %27 = arith.divf %25, %26 : vector<2x16xf32>
    %28 = vector.extract_strided_slice %15 {offsets = [0, 16], sizes = [2, 16], strides = [1, 1]} : vector<2x48xf32> to vector<2x16xf32>
    %29 = vector.extract_strided_slice %19 {offsets = [0, 16], sizes = [2, 16], strides = [1, 1]} : vector<2x48xf32> to vector<2x16xf32>
    %30 = arith.addf %28, %29 : vector<2x16xf32>
    %31 = arith.negf %30 : vector<2x16xf32>
    %32 = math.exp %31 : vector<2x16xf32>
    %cst_15 = arith.constant 1.000000e+00 : f32
    %33 = vector.broadcast %cst_15 : f32 to vector<2x16xf32>
    %34 = arith.addf %33, %32 : vector<2x16xf32>
    %35 = arith.divf %33, %34 : vector<2x16xf32>
    %36 = vector.extract_strided_slice %15 {offsets = [0, 32], sizes = [2, 16], strides = [1, 1]} : vector<2x48xf32> to vector<2x16xf32>
    %37 = vector.extract_strided_slice %19 {offsets = [0, 32], sizes = [2, 16], strides = [1, 1]} : vector<2x48xf32> to vector<2x16xf32>
    %38 = arith.mulf %27, %37 : vector<2x16xf32>
    %39 = arith.addf %36, %38 : vector<2x16xf32>
    %40 = math.tanh %39 : vector<2x16xf32>
    %cst_16 = arith.constant 1.000000e+00 : f32
    %41 = vector.broadcast %cst_16 : f32 to vector<2x16xf32>
    %42 = arith.subf %41, %35 : vector<2x16xf32>
    %43 = arith.mulf %42, %40 : vector<2x16xf32>
    %44 = arith.mulf %35, %10 : vector<2x16xf32>
    %45 = arith.addf %43, %44 : vector<2x16xf32>
    %c0_17 = arith.constant 0 : index
    %46 = arith.index_cast %12 : i32 to index
    %c0_18 = arith.constant 0 : index
    %c0_19 = arith.constant 0 : index
    %47 = vector.load %arg5[%c0_17, %46, %c0_18, %c0_19] : memref<1x8x2x16xf32, #tpu.memory_space<vmem>>, vector<1x1x2x16xf32>
    %48 = vector.shape_cast %47 : vector<1x1x2x16xf32> to vector<2x16xf32>
    %49 = vector.shape_cast %45 : vector<2x16xf32> to vector<1x1x2x16xf32>
    tpu.vector_store %arg5[%c0_17, %46, %c0_18, %c0_19], %49 {strides = array<i32>} : memref<1x8x2x16xf32, #tpu.memory_space<vmem>>, vector<1x1x2x16xf32>,
    %c1_i32_20 = arith.constant 1 : i32
    %50 = arith.muli %9, %c1_i32_20 : i32
    %51 = arith.addi %8, %50 : i32
    %c0_21 = arith.constant 0 : index
    %52 = arith.index_cast %51 : i32 to index
    %c0_22 = arith.constant 0 : index
    %c0_23 = arith.constant 0 : index
    %53 = vector.load %arg2[%c0_21, %52, %c0_22, %c0_23] : memref<1x8x2x48xf32, #tpu.memory_space<vmem>>, vector<1x1x2x48xf32>
    %54 = vector.shape_cast %53 : vector<1x1x2x48xf32> to vector<2x48xf32>
    %55 = arith.truncf %45 : vector<2x16xf32> to vector<2x16xbf16>
    %cst_24 = arith.constant dense<0.000000e+00> : vector<2x48xf32>
    %56 = tpu.matmul %55, %4, %cst_24 {dimension_numbers = #tpu.dot_dimension_numbers<[1], [0], [0], [1], [0, 0, 1, 1], [], []>} : vector<2x16xbf16>, vector<16x48xbf16>, vector<2x48xf32> -> vector<2x48xf32>
    %57 = vector.broadcast %6 : vector<1x48xf32> to vector<2x48xf32>
    %58 = arith.addf %56, %57 : vector<2x48xf32>
    %59 = vector.extract_strided_slice %54 {offsets = [0, 0], sizes = [2, 16], strides = [1, 1]} : vector<2x48xf32> to vector<2x16xf32>
    %60 = vector.extract_strided_slice %58 {offsets = [0, 0], sizes = [2, 16], strides = [1, 1]} : vector<2x48xf32> to vector<2x16xf32>
    %61 = arith.addf %59, %60 : vector<2x16xf32>
    %62 = arith.negf %61 : vector<2x16xf32>
    %63 = math.exp %62 : vector<2x16xf32>
    %cst_25 = arith.constant 1.000000e+00 : f32
    %64 = vector.broadcast %cst_25 : f32 to vector<2x16xf32>
    %65 = arith.addf %64, %63 : vector<2x16xf32>
    %66 = arith.divf %64, %65 : vector<2x16xf32>
    %67 = vector.extract_strided_slice %54 {offsets = [0, 16], sizes = [2, 16], strides = [1, 1]} : vector<2x48xf32> to vector<2x16xf32>
    %68 = vector.extract_strided_slice %58 {offsets = [0, 16], sizes = [2, 16], strides = [1, 1]} : vector<2x48xf32> to vector<2x16xf32>
    %69 = arith.addf %67, %68 : vector<2x16xf32>
    %70 = arith.negf %69 : vector<2x16xf32>
    %71 = math.exp %70 : vector<2x16xf32>
    %cst_26 = arith.constant 1.000000e+00 : f32
    %72 = vector.broadcast %cst_26 : f32 to vector<2x16xf32>
    %73 = arith.addf %72, %71 : vector<2x16xf32>
    %74 = arith.divf %72, %73 : vector<2x16xf32>
    %75 = vector.extract_strided_slice %54 {offsets = [0, 32], sizes = [2, 16], strides = [1, 1]} : vector<2x48xf32> to vector<2x16xf32>
    %76 = vector.extract_strided_slice %58 {offsets = [0, 32], sizes = [2, 16], strides = [1, 1]} : vector<2x48xf32> to vector<2x16xf32>
    %77 = arith.mulf %66, %76 : vector<2x16xf32>
    %78 = arith.addf %75, %77 : vector<2x16xf32>
    %79 = math.tanh %78 : vector<2x16xf32>
    %cst_27 = arith.constant 1.000000e+00 : f32
    %80 = vector.broadcast %cst_27 : f32 to vector<2x16xf32>
    %81 = arith.subf %80, %74 : vector<2x16xf32>
    %82 = arith.mulf %81, %79 : vector<2x16xf32>
    %83 = arith.mulf %74, %45 : vector<2x16xf32>
    %84 = arith.addf %82, %83 : vector<2x16xf32>
    %c0_28 = arith.constant 0 : index
    %85 = arith.index_cast %51 : i32 to index
    %c0_29 = arith.constant 0 : index
    %c0_30 = arith.constant 0 : index
    %86 = vector.load %arg5[%c0_28, %85, %c0_29, %c0_30] : memref<1x8x2x16xf32, #tpu.memory_space<vmem>>, vector<1x1x2x16xf32>
    %87 = vector.shape_cast %86 : vector<1x1x2x16xf32> to vector<2x16xf32>
    %88 = vector.shape_cast %84 : vector<2x16xf32> to vector<1x1x2x16xf32>
    tpu.vector_store %arg5[%c0_28, %85, %c0_29, %c0_30], %88 {strides = array<i32>} : memref<1x8x2x16xf32, #tpu.memory_space<vmem>>, vector<1x1x2x16xf32>,
    %c2_i32 = arith.constant 2 : i32
    %89 = arith.muli %9, %c2_i32 : i32
    %90 = arith.addi %8, %89 : i32
    %c0_31 = arith.constant 0 : index
    %91 = arith.index_cast %90 : i32 to index
    %c0_32 = arith.constant 0 : index
    %c0_33 = arith.constant 0 : index
    %92 = vector.load %arg2[%c0_31, %91, %c0_32, %c0_33] : memref<1x8x2x48xf32, #tpu.memory_space<vmem>>, vector<1x1x2x48xf32>
    %93 = vector.shape_cast %92 : vector<1x1x2x48xf32> to vector<2x48xf32>
    %94 = arith.truncf %84 : vector<2x16xf32> to vector<2x16xbf16>
    %cst_34 = arith.constant dense<0.000000e+00> : vector<2x48xf32>
    %95 = tpu.matmul %94, %4, %cst_34 {dimension_numbers = #tpu.dot_dimension_numbers<[1], [0], [0], [1], [0, 0, 1, 1], [], []>} : vector<2x16xbf16>, vector<16x48xbf16>, vector<2x48xf32> -> vector<2x48xf32>
    %96 = vector.broadcast %6 : vector<1x48xf32> to vector<2x48xf32>
    %97 = arith.addf %95, %96 : vector<2x48xf32>
    %98 = vector.extract_strided_slice %93 {offsets = [0, 0], sizes = [2, 16], strides = [1, 1]} : vector<2x48xf32> to vector<2x16xf32>
    %99 = vector.extract_strided_slice %97 {offsets = [0, 0], sizes = [2, 16], strides = [1, 1]} : vector<2x48xf32> to vector<2x16xf32>
    %100 = arith.addf %98, %99 : vector<2x16xf32>
    %101 = arith.negf %100 : vector<2x16xf32>
    %102 = math.exp %101 : vector<2x16xf32>
    %cst_35 = arith.constant 1.000000e+00 : f32
    %103 = vector.broadcast %cst_35 : f32 to vector<2x16xf32>
    %104 = arith.addf %103, %102 : vector<2x16xf32>
    %105 = arith.divf %103, %104 : vector<2x16xf32>
    %106 = vector.extract_strided_slice %93 {offsets = [0, 16], sizes = [2, 16], strides = [1, 1]} : vector<2x48xf32> to vector<2x16xf32>
    %107 = vector.extract_strided_slice %97 {offsets = [0, 16], sizes = [2, 16], strides = [1, 1]} : vector<2x48xf32> to vector<2x16xf32>
    %108 = arith.addf %106, %107 : vector<2x16xf32>
    %109 = arith.negf %108 : vector<2x16xf32>
    %110 = math.exp %109 : vector<2x16xf32>
    %cst_36 = arith.constant 1.000000e+00 : f32
    %111 = vector.broadcast %cst_36 : f32 to vector<2x16xf32>
    %112 = arith.addf %111, %110 : vector<2x16xf32>
    %113 = arith.divf %111, %112 : vector<2x16xf32>
    %114 = vector.extract_strided_slice %93 {offsets = [0, 32], sizes = [2, 16], strides = [1, 1]} : vector<2x48xf32> to vector<2x16xf32>
    %115 = vector.extract_strided_slice %97 {offsets = [0, 32], sizes = [2, 16], strides = [1, 1]} : vector<2x48xf32> to vector<2x16xf32>
    %116 = arith.mulf %105, %115 : vector<2x16xf32>
    %117 = arith.addf %114, %116 : vector<2x16xf32>
    %118 = math.tanh %117 : vector<2x16xf32>
    %cst_37 = arith.constant 1.000000e+00 : f32
    %119 = vector.broadcast %cst_37 : f32 to vector<2x16xf32>
    %120 = arith.subf %119, %113 : vector<2x16xf32>
    %121 = arith.mulf %120, %118 : vector<2x16xf32>
    %122 = arith.mulf %113, %84 : vector<2x16xf32>
    %123 = arith.addf %121, %122 : vector<2x16xf32>
    %c0_38 = arith.constant 0 : index
    %124 = arith.index_cast %90 : i32 to index
    %c0_39 = arith.constant 0 : index
    %c0_40 = arith.constant 0 : index
    %125 = vector.load %arg5[%c0_38, %124, %c0_39, %c0_40] : memref<1x8x2x16xf32, #tpu.memory_space<vmem>>, vector<1x1x2x16xf32>
    %126 = vector.shape_cast %125 : vector<1x1x2x16xf32> to vector<2x16xf32>
    %127 = vector.shape_cast %123 : vector<2x16xf32> to vector<1x1x2x16xf32>
    tpu.vector_store %arg5[%c0_38, %124, %c0_39, %c0_40], %127 {strides = array<i32>} : memref<1x8x2x16xf32, #tpu.memory_space<vmem>>, vector<1x1x2x16xf32>,
    %c3_i32 = arith.constant 3 : i32
    %128 = arith.muli %9, %c3_i32 : i32
    %129 = arith.addi %8, %128 : i32
    %c0_41 = arith.constant 0 : index
    %130 = arith.index_cast %129 : i32 to index
    %c0_42 = arith.constant 0 : index
    %c0_43 = arith.constant 0 : index
    %131 = vector.load %arg2[%c0_41, %130, %c0_42, %c0_43] : memref<1x8x2x48xf32, #tpu.memory_space<vmem>>, vector<1x1x2x48xf32>
    %132 = vector.shape_cast %131 : vector<1x1x2x48xf32> to vector<2x48xf32>
    %133 = arith.truncf %123 : vector<2x16xf32> to vector<2x16xbf16>
    %cst_44 = arith.constant dense<0.000000e+00> : vector<2x48xf32>
    %134 = tpu.matmul %133, %4, %cst_44 {dimension_numbers = #tpu.dot_dimension_numbers<[1], [0], [0], [1], [0, 0, 1, 1], [], []>} : vector<2x16xbf16>, vector<16x48xbf16>, vector<2x48xf32> -> vector<2x48xf32>
    %135 = vector.broadcast %6 : vector<1x48xf32> to vector<2x48xf32>
    %136 = arith.addf %134, %135 : vector<2x48xf32>
    %137 = vector.extract_strided_slice %132 {offsets = [0, 0], sizes = [2, 16], strides = [1, 1]} : vector<2x48xf32> to vector<2x16xf32>
    %138 = vector.extract_strided_slice %136 {offsets = [0, 0], sizes = [2, 16], strides = [1, 1]} : vector<2x48xf32> to vector<2x16xf32>
    %139 = arith.addf %137, %138 : vector<2x16xf32>
    %140 = arith.negf %139 : vector<2x16xf32>
    %141 = math.exp %140 : vector<2x16xf32>
    %cst_45 = arith.constant 1.000000e+00 : f32
    %142 = vector.broadcast %cst_45 : f32 to vector<2x16xf32>
    %143 = arith.addf %142, %141 : vector<2x16xf32>
    %144 = arith.divf %142, %143 : vector<2x16xf32>
    %145 = vector.extract_strided_slice %132 {offsets = [0, 16], sizes = [2, 16], strides = [1, 1]} : vector<2x48xf32> to vector<2x16xf32>
    %146 = vector.extract_strided_slice %136 {offsets = [0, 16], sizes = [2, 16], strides = [1, 1]} : vector<2x48xf32> to vector<2x16xf32>
    %147 = arith.addf %145, %146 : vector<2x16xf32>
    %148 = arith.negf %147 : vector<2x16xf32>
    %149 = math.exp %148 : vector<2x16xf32>
    %cst_46 = arith.constant 1.000000e+00 : f32
    %150 = vector.broadcast %cst_46 : f32 to vector<2x16xf32>
    %151 = arith.addf %150, %149 : vector<2x16xf32>
    %152 = arith.divf %150, %151 : vector<2x16xf32>
    %153 = vector.extract_strided_slice %132 {offsets = [0, 32], sizes = [2, 16], strides = [1, 1]} : vector<2x48xf32> to vector<2x16xf32>
    %154 = vector.extract_strided_slice %136 {offsets = [0, 32], sizes = [2, 16], strides = [1, 1]} : vector<2x48xf32> to vector<2x16xf32>
    %155 = arith.mulf %144, %154 : vector<2x16xf32>
    %156 = arith.addf %153, %155 : vector<2x16xf32>
    %157 = math.tanh %156 : vector<2x16xf32>
    %cst_47 = arith.constant 1.000000e+00 : f32
    %158 = vector.broadcast %cst_47 : f32 to vector<2x16xf32>
    %159 = arith.subf %158, %152 : vector<2x16xf32>
    %160 = arith.mulf %159, %157 : vector<2x16xf32>
    %161 = arith.mulf %152, %123 : vector<2x16xf32>
    %162 = arith.addf %160, %161 : vector<2x16xf32>
    %c0_48 = arith.constant 0 : index
    %163 = arith.index_cast %129 : i32 to index
    %c0_49 = arith.constant 0 : index
    %c0_50 = arith.constant 0 : index
    %164 = vector.load %arg5[%c0_48, %163, %c0_49, %c0_50] : memref<1x8x2x16xf32, #tpu.memory_space<vmem>>, vector<1x1x2x16xf32>
    %165 = vector.shape_cast %164 : vector<1x1x2x16xf32> to vector<2x16xf32>
    %166 = vector.shape_cast %162 : vector<2x16xf32> to vector<1x1x2x16xf32>
    tpu.vector_store %arg5[%c0_48, %163, %c0_49, %c0_50], %166 {strides = array<i32>} : memref<1x8x2x16xf32, #tpu.memory_space<vmem>>, vector<1x1x2x16xf32>,
    %c4_i32 = arith.constant 4 : i32
    %167 = arith.muli %9, %c4_i32 : i32
    %168 = arith.addi %8, %167 : i32
    %c0_51 = arith.constant 0 : index
    %169 = arith.index_cast %168 : i32 to index
    %c0_52 = arith.constant 0 : index
    %c0_53 = arith.constant 0 : index
    %170 = vector.load %arg2[%c0_51, %169, %c0_52, %c0_53] : memref<1x8x2x48xf32, #tpu.memory_space<vmem>>, vector<1x1x2x48xf32>
    %171 = vector.shape_cast %170 : vector<1x1x2x48xf32> to vector<2x48xf32>
    %172 = arith.truncf %162 : vector<2x16xf32> to vector<2x16xbf16>
    %cst_54 = arith.constant dense<0.000000e+00> : vector<2x48xf32>
    %173 = tpu.matmul %172, %4, %cst_54 {dimension_numbers = #tpu.dot_dimension_numbers<[1], [0], [0], [1], [0, 0, 1, 1], [], []>} : vector<2x16xbf16>, vector<16x48xbf16>, vector<2x48xf32> -> vector<2x48xf32>
    %174 = vector.broadcast %6 : vector<1x48xf32> to vector<2x48xf32>
    %175 = arith.addf %173, %174 : vector<2x48xf32>
    %176 = vector.extract_strided_slice %171 {offsets = [0, 0], sizes = [2, 16], strides = [1, 1]} : vector<2x48xf32> to vector<2x16xf32>
    %177 = vector.extract_strided_slice %175 {offsets = [0, 0], sizes = [2, 16], strides = [1, 1]} : vector<2x48xf32> to vector<2x16xf32>
    %178 = arith.addf %176, %177 : vector<2x16xf32>
    %179 = arith.negf %178 : vector<2x16xf32>
    %180 = math.exp %179 : vector<2x16xf32>
    %cst_55 = arith.constant 1.000000e+00 : f32
    %181 = vector.broadcast %cst_55 : f32 to vector<2x16xf32>
    %182 = arith.addf %181, %180 : vector<2x16xf32>
    %183 = arith.divf %181, %182 : vector<2x16xf32>
    %184 = vector.extract_strided_slice %171 {offsets = [0, 16], sizes = [2, 16], strides = [1, 1]} : vector<2x48xf32> to vector<2x16xf32>
    %185 = vector.extract_strided_slice %175 {offsets = [0, 16], sizes = [2, 16], strides = [1, 1]} : vector<2x48xf32> to vector<2x16xf32>
    %186 = arith.addf %184, %185 : vector<2x16xf32>
    %187 = arith.negf %186 : vector<2x16xf32>
    %188 = math.exp %187 : vector<2x16xf32>
    %cst_56 = arith.constant 1.000000e+00 : f32
    %189 = vector.broadcast %cst_56 : f32 to vector<2x16xf32>
    %190 = arith.addf %189, %188 : vector<2x16xf32>
    %191 = arith.divf %189, %190 : vector<2x16xf32>
    %192 = vector.extract_strided_slice %171 {offsets = [0, 32], sizes = [2, 16], strides = [1, 1]} : vector<2x48xf32> to vector<2x16xf32>
    %193 = vector.extract_strided_slice %175 {offsets = [0, 32], sizes = [2, 16], strides = [1, 1]} : vector<2x48xf32> to vector<2x16xf32>
    %194 = arith.mulf %183, %193 : vector<2x16xf32>
    %195 = arith.addf %192, %194 : vector<2x16xf32>
    %196 = math.tanh %195 : vector<2x16xf32>
    %cst_57 = arith.constant 1.000000e+00 : f32
    %197 = vector.broadcast %cst_57 : f32 to vector<2x16xf32>
    %198 = arith.subf %197, %191 : vector<2x16xf32>
    %199 = arith.mulf %198, %196 : vector<2x16xf32>
    %200 = arith.mulf %191, %162 : vector<2x16xf32>
    %201 = arith.addf %199, %200 : vector<2x16xf32>
    %c0_58 = arith.constant 0 : index
    %202 = arith.index_cast %168 : i32 to index
    %c0_59 = arith.constant 0 : index
    %c0_60 = arith.constant 0 : index
    %203 = vector.load %arg5[%c0_58, %202, %c0_59, %c0_60] : memref<1x8x2x16xf32, #tpu.memory_space<vmem>>, vector<1x1x2x16xf32>
    %204 = vector.shape_cast %203 : vector<1x1x2x16xf32> to vector<2x16xf32>
    %205 = vector.shape_cast %201 : vector<2x16xf32> to vector<1x1x2x16xf32>
    tpu.vector_store %arg5[%c0_58, %202, %c0_59, %c0_60], %205 {strides = array<i32>} : memref<1x8x2x16xf32, #tpu.memory_space<vmem>>, vector<1x1x2x16xf32>,
    %c5_i32 = arith.constant 5 : i32
    %206 = arith.muli %9, %c5_i32 : i32
    %207 = arith.addi %8, %206 : i32
    %c0_61 = arith.constant 0 : index
    %208 = arith.index_cast %207 : i32 to index
    %c0_62 = arith.constant 0 : index
    %c0_63 = arith.constant 0 : index
    %209 = vector.load %arg2[%c0_61, %208, %c0_62, %c0_63] : memref<1x8x2x48xf32, #tpu.memory_space<vmem>>, vector<1x1x2x48xf32>
    %210 = vector.shape_cast %209 : vector<1x1x2x48xf32> to vector<2x48xf32>
    %211 = arith.truncf %201 : vector<2x16xf32> to vector<2x16xbf16>
    %cst_64 = arith.constant dense<0.000000e+00> : vector<2x48xf32>
    %212 = tpu.matmul %211, %4, %cst_64 {dimension_numbers = #tpu.dot_dimension_numbers<[1], [0], [0], [1], [0, 0, 1, 1], [], []>} : vector<2x16xbf16>, vector<16x48xbf16>, vector<2x48xf32> -> vector<2x48xf32>
    %213 = vector.broadcast %6 : vector<1x48xf32> to vector<2x48xf32>
    %214 = arith.addf %212, %213 : vector<2x48xf32>
    %215 = vector.extract_strided_slice %210 {offsets = [0, 0], sizes = [2, 16], strides = [1, 1]} : vector<2x48xf32> to vector<2x16xf32>
    %216 = vector.extract_strided_slice %214 {offsets = [0, 0], sizes = [2, 16], strides = [1, 1]} : vector<2x48xf32> to vector<2x16xf32>
    %217 = arith.addf %215, %216 : vector<2x16xf32>
    %218 = arith.negf %217 : vector<2x16xf32>
    %219 = math.exp %218 : vector<2x16xf32>
    %cst_65 = arith.constant 1.000000e+00 : f32
    %220 = vector.broadcast %cst_65 : f32 to vector<2x16xf32>
    %221 = arith.addf %220, %219 : vector<2x16xf32>
    %222 = arith.divf %220, %221 : vector<2x16xf32>
    %223 = vector.extract_strided_slice %210 {offsets = [0, 16], sizes = [2, 16], strides = [1, 1]} : vector<2x48xf32> to vector<2x16xf32>
    %224 = vector.extract_strided_slice %214 {offsets = [0, 16], sizes = [2, 16], strides = [1, 1]} : vector<2x48xf32> to vector<2x16xf32>
    %225 = arith.addf %223, %224 : vector<2x16xf32>
    %226 = arith.negf %225 : vector<2x16xf32>
    %227 = math.exp %226 : vector<2x16xf32>
    %cst_66 = arith.constant 1.000000e+00 : f32
    %228 = vector.broadcast %cst_66 : f32 to vector<2x16xf32>
    %229 = arith.addf %228, %227 : vector<2x16xf32>
    %230 = arith.divf %228, %229 : vector<2x16xf32>
    %231 = vector.extract_strided_slice %210 {offsets = [0, 32], sizes = [2, 16], strides = [1, 1]} : vector<2x48xf32> to vector<2x16xf32>
    %232 = vector.extract_strided_slice %214 {offsets = [0, 32], sizes = [2, 16], strides = [1, 1]} : vector<2x48xf32> to vector<2x16xf32>
    %233 = arith.mulf %222, %232 : vector<2x16xf32>
    %234 = arith.addf %231, %233 : vector<2x16xf32>
    %235 = math.tanh %234 : vector<2x16xf32>
    %cst_67 = arith.constant 1.000000e+00 : f32
    %236 = vector.broadcast %cst_67 : f32 to vector<2x16xf32>
    %237 = arith.subf %236, %230 : vector<2x16xf32>
    %238 = arith.mulf %237, %235 : vector<2x16xf32>
    %239 = arith.mulf %230, %201 : vector<2x16xf32>
    %240 = arith.addf %238, %239 : vector<2x16xf32>
    %c0_68 = arith.constant 0 : index
    %241 = arith.index_cast %207 : i32 to index
    %c0_69 = arith.constant 0 : index
    %c0_70 = arith.constant 0 : index
    %242 = vector.load %arg5[%c0_68, %241, %c0_69, %c0_70] : memref<1x8x2x16xf32, #tpu.memory_space<vmem>>, vector<1x1x2x16xf32>
    %243 = vector.shape_cast %242 : vector<1x1x2x16xf32> to vector<2x16xf32>
    %244 = vector.shape_cast %240 : vector<2x16xf32> to vector<1x1x2x16xf32>
    tpu.vector_store %arg5[%c0_68, %241, %c0_69, %c0_70], %244 {strides = array<i32>} : memref<1x8x2x16xf32, #tpu.memory_space<vmem>>, vector<1x1x2x16xf32>,
    %c6_i32 = arith.constant 6 : i32
    %245 = arith.muli %9, %c6_i32 : i32
    %246 = arith.addi %8, %245 : i32
    %c0_71 = arith.constant 0 : index
    %247 = arith.index_cast %246 : i32 to index
    %c0_72 = arith.constant 0 : index
    %c0_73 = arith.constant 0 : index
    %248 = vector.load %arg2[%c0_71, %247, %c0_72, %c0_73] : memref<1x8x2x48xf32, #tpu.memory_space<vmem>>, vector<1x1x2x48xf32>
    %249 = vector.shape_cast %248 : vector<1x1x2x48xf32> to vector<2x48xf32>
    %250 = arith.truncf %240 : vector<2x16xf32> to vector<2x16xbf16>
    %cst_74 = arith.constant dense<0.000000e+00> : vector<2x48xf32>
    %251 = tpu.matmul %250, %4, %cst_74 {dimension_numbers = #tpu.dot_dimension_numbers<[1], [0], [0], [1], [0, 0, 1, 1], [], []>} : vector<2x16xbf16>, vector<16x48xbf16>, vector<2x48xf32> -> vector<2x48xf32>
    %252 = vector.broadcast %6 : vector<1x48xf32> to vector<2x48xf32>
    %253 = arith.addf %251, %252 : vector<2x48xf32>
    %254 = vector.extract_strided_slice %249 {offsets = [0, 0], sizes = [2, 16], strides = [1, 1]} : vector<2x48xf32> to vector<2x16xf32>
    %255 = vector.extract_strided_slice %253 {offsets = [0, 0], sizes = [2, 16], strides = [1, 1]} : vector<2x48xf32> to vector<2x16xf32>
    %256 = arith.addf %254, %255 : vector<2x16xf32>
    %257 = arith.negf %256 : vector<2x16xf32>
    %258 = math.exp %257 : vector<2x16xf32>
    %cst_75 = arith.constant 1.000000e+00 : f32
    %259 = vector.broadcast %cst_75 : f32 to vector<2x16xf32>
    %260 = arith.addf %259, %258 : vector<2x16xf32>
    %261 = arith.divf %259, %260 : vector<2x16xf32>
    %262 = vector.extract_strided_slice %249 {offsets = [0, 16], sizes = [2, 16], strides = [1, 1]} : vector<2x48xf32> to vector<2x16xf32>
    %263 = vector.extract_strided_slice %253 {offsets = [0, 16], sizes = [2, 16], strides = [1, 1]} : vector<2x48xf32> to vector<2x16xf32>
    %264 = arith.addf %262, %263 : vector<2x16xf32>
    %265 = arith.negf %264 : vector<2x16xf32>
    %266 = math.exp %265 : vector<2x16xf32>
    %cst_76 = arith.constant 1.000000e+00 : f32
    %267 = vector.broadcast %cst_76 : f32 to vector<2x16xf32>
    %268 = arith.addf %267, %266 : vector<2x16xf32>
    %269 = arith.divf %267, %268 : vector<2x16xf32>
    %270 = vector.extract_strided_slice %249 {offsets = [0, 32], sizes = [2, 16], strides = [1, 1]} : vector<2x48xf32> to vector<2x16xf32>
    %271 = vector.extract_strided_slice %253 {offsets = [0, 32], sizes = [2, 16], strides = [1, 1]} : vector<2x48xf32> to vector<2x16xf32>
    %272 = arith.mulf %261, %271 : vector<2x16xf32>
    %273 = arith.addf %270, %272 : vector<2x16xf32>
    %274 = math.tanh %273 : vector<2x16xf32>
    %cst_77 = arith.constant 1.000000e+00 : f32
    %275 = vector.broadcast %cst_77 : f32 to vector<2x16xf32>
    %276 = arith.subf %275, %269 : vector<2x16xf32>
    %277 = arith.mulf %276, %274 : vector<2x16xf32>
    %278 = arith.mulf %269, %240 : vector<2x16xf32>
    %279 = arith.addf %277, %278 : vector<2x16xf32>
    %c0_78 = arith.constant 0 : index
    %280 = arith.index_cast %246 : i32 to index
    %c0_79 = arith.constant 0 : index
    %c0_80 = arith.constant 0 : index
    %281 = vector.load %arg5[%c0_78, %280, %c0_79, %c0_80] : memref<1x8x2x16xf32, #tpu.memory_space<vmem>>, vector<1x1x2x16xf32>
    %282 = vector.shape_cast %281 : vector<1x1x2x16xf32> to vector<2x16xf32>
    %283 = vector.shape_cast %279 : vector<2x16xf32> to vector<1x1x2x16xf32>
    tpu.vector_store %arg5[%c0_78, %280, %c0_79, %c0_80], %283 {strides = array<i32>} : memref<1x8x2x16xf32, #tpu.memory_space<vmem>>, vector<1x1x2x16xf32>,
    %c7_i32_81 = arith.constant 7 : i32
    %284 = arith.muli %9, %c7_i32_81 : i32
    %285 = arith.addi %8, %284 : i32
    %c0_82 = arith.constant 0 : index
    %286 = arith.index_cast %285 : i32 to index
    %c0_83 = arith.constant 0 : index
    %c0_84 = arith.constant 0 : index
    %287 = vector.load %arg2[%c0_82, %286, %c0_83, %c0_84] : memref<1x8x2x48xf32, #tpu.memory_space<vmem>>, vector<1x1x2x48xf32>
    %288 = vector.shape_cast %287 : vector<1x1x2x48xf32> to vector<2x48xf32>
    %289 = arith.truncf %279 : vector<2x16xf32> to vector<2x16xbf16>
    %cst_85 = arith.constant dense<0.000000e+00> : vector<2x48xf32>
    %290 = tpu.matmul %289, %4, %cst_85 {dimension_numbers = #tpu.dot_dimension_numbers<[1], [0], [0], [1], [0, 0, 1, 1], [], []>} : vector<2x16xbf16>, vector<16x48xbf16>, vector<2x48xf32> -> vector<2x48xf32>
    %291 = vector.broadcast %6 : vector<1x48xf32> to vector<2x48xf32>
    %292 = arith.addf %290, %291 : vector<2x48xf32>
    %293 = vector.extract_strided_slice %288 {offsets = [0, 0], sizes = [2, 16], strides = [1, 1]} : vector<2x48xf32> to vector<2x16xf32>
    %294 = vector.extract_strided_slice %292 {offsets = [0, 0], sizes = [2, 16], strides = [1, 1]} : vector<2x48xf32> to vector<2x16xf32>
    %295 = arith.addf %293, %294 : vector<2x16xf32>
    %296 = arith.negf %295 : vector<2x16xf32>
    %297 = math.exp %296 : vector<2x16xf32>
    %cst_86 = arith.constant 1.000000e+00 : f32
    %298 = vector.broadcast %cst_86 : f32 to vector<2x16xf32>
    %299 = arith.addf %298, %297 : vector<2x16xf32>
    %300 = arith.divf %298, %299 : vector<2x16xf32>
    %301 = vector.extract_strided_slice %288 {offsets = [0, 16], sizes = [2, 16], strides = [1, 1]} : vector<2x48xf32> to vector<2x16xf32>
    %302 = vector.extract_strided_slice %292 {offsets = [0, 16], sizes = [2, 16], strides = [1, 1]} : vector<2x48xf32> to vector<2x16xf32>
    %303 = arith.addf %301, %302 : vector<2x16xf32>
    %304 = arith.negf %303 : vector<2x16xf32>
    %305 = math.exp %304 : vector<2x16xf32>
    %cst_87 = arith.constant 1.000000e+00 : f32
    %306 = vector.broadcast %cst_87 : f32 to vector<2x16xf32>
    %307 = arith.addf %306, %305 : vector<2x16xf32>
    %308 = arith.divf %306, %307 : vector<2x16xf32>
    %309 = vector.extract_strided_slice %288 {offsets = [0, 32], sizes = [2, 16], strides = [1, 1]} : vector<2x48xf32> to vector<2x16xf32>
    %310 = vector.extract_strided_slice %292 {offsets = [0, 32], sizes = [2, 16], strides = [1, 1]} : vector<2x48xf32> to vector<2x16xf32>
    %311 = arith.mulf %300, %310 : vector<2x16xf32>
    %312 = arith.addf %309, %311 : vector<2x16xf32>
    %313 = math.tanh %312 : vector<2x16xf32>
    %cst_88 = arith.constant 1.000000e+00 : f32
    %314 = vector.broadcast %cst_88 : f32 to vector<2x16xf32>
    %315 = arith.subf %314, %308 : vector<2x16xf32>
    %316 = arith.mulf %315, %313 : vector<2x16xf32>
    %317 = arith.mulf %308, %279 : vector<2x16xf32>
    %318 = arith.addf %316, %317 : vector<2x16xf32>
    %c0_89 = arith.constant 0 : index
    %319 = arith.index_cast %285 : i32 to index
    %c0_90 = arith.constant 0 : index
    %c0_91 = arith.constant 0 : index
    %320 = vector.load %arg5[%c0_89, %319, %c0_90, %c0_91] : memref<1x8x2x16xf32, #tpu.memory_space<vmem>>, vector<1x1x2x16xf32>
    %321 = vector.shape_cast %320 : vector<1x1x2x16xf32> to vector<2x16xf32>
    %322 = vector.shape_cast %318 : vector<2x16xf32> to vector<1x1x2x16xf32>
    tpu.vector_store %arg5[%c0_89, %319, %c0_90, %c0_91], %322 {strides = array<i32>} : memref<1x8x2x16xf32, #tpu.memory_space<vmem>>, vector<1x1x2x16xf32>,
    %c8_i32 = arith.constant 8 : i32
    %c0_92 = arith.constant 0 : index
    %c0_93 = arith.constant 0 : index
    %323 = vector.load %arg7[%c0_92, %c0_93] : memref<2x16xf32, #tpu.memory_space<vmem>>, vector<2x16xf32>
    tpu.vector_store %arg7[%c0_92, %c0_93], %318 {strides = array<i32>} : memref<2x16xf32, #tpu.memory_space<vmem>>, vector<2x16xf32>,
    %c0_i32_94 = arith.constant 0 : i32
    %324 = arith.cmpi eq, %arg1, %c0_i32_94 : i32
    %325 = arith.extui %324 : i1 to i32
    %c0_i32_95 = arith.constant 0 : i32
    %326 = arith.cmpi ne, %325, %c0_i32_95 : i32
    scf.if %326 {
      %c0_96 = arith.constant 0 : index
      %c0_97 = arith.constant 0 : index
      %c0_98 = arith.constant 0 : index
      %327 = vector.load %arg6[%c0_96, %c0_97, %c0_98] : memref<1x2x16xf32, #tpu.memory_space<vmem>>, vector<1x2x16xf32>
      %328 = vector.shape_cast %327 : vector<1x2x16xf32> to vector<2x16xf32>
      %329 = vector.shape_cast %318 : vector<2x16xf32> to vector<1x2x16xf32>
      tpu.vector_store %arg6[%c0_96, %c0_97, %c0_98], %329 {strides = array<i32>} : memref<1x2x16xf32, #tpu.memory_space<vmem>>, vector<1x2x16xf32>,
    } else {
    }
    return
  }
  func.func @transform_0(%arg0: i32, %arg1: i32) -> (i32, i32, i32, i32) {
    %c2_i32 = arith.constant 2 : i32
    %0 = arith.muli %c2_i32, %arg1 : i32
    %c0_i32 = arith.constant 0 : i32
    %1 = arith.subi %c0_i32, %0 : i32
    %2 = arith.muli %arg0, %1 : i32
    %3 = arith.addi %arg1, %2 : i32
    %c0_i32_0 = arith.constant 0 : i32
    %c0_i32_1 = arith.constant 0 : i32
    %c0_i32_2 = arith.constant 0 : i32
    return %arg0, %3, %c0_i32_0, %c0_i32_1 : i32, i32, i32, i32
  }
  func.func @transform_1(%arg0: i32, %arg1: i32) -> (i32, i32, i32) {
    %c0_i32 = arith.constant 0 : i32
    %c0_i32_0 = arith.constant 0 : i32
    %c0_i32_1 = arith.constant 0 : i32
    return %arg0, %c0_i32, %c0_i32_0 : i32, i32, i32
  }
  func.func @transform_2(%arg0: i32, %arg1: i32) -> (i32, i32, i32) {
    %c0_i32 = arith.constant 0 : i32
    %c0_i32_0 = arith.constant 0 : i32
    %c0_i32_1 = arith.constant 0 : i32
    return %arg0, %c0_i32, %c0_i32_0 : i32, i32, i32
  }
  func.func @transform_3(%arg0: i32, %arg1: i32) -> (i32, i32, i32, i32) {
    %c2_i32 = arith.constant 2 : i32
    %0 = arith.muli %c2_i32, %arg1 : i32
    %c0_i32 = arith.constant 0 : i32
    %1 = arith.subi %c0_i32, %0 : i32
    %2 = arith.muli %arg0, %1 : i32
    %3 = arith.addi %arg1, %2 : i32
    %c0_i32_0 = arith.constant 0 : i32
    %c0_i32_1 = arith.constant 0 : i32
    %c0_i32_2 = arith.constant 0 : i32
    return %arg0, %3, %c0_i32_0, %c0_i32_1 : i32, i32, i32, i32
  }
  func.func @transform_4(%arg0: i32, %arg1: i32) -> (i32, i32, i32) {
    %c0_i32 = arith.constant 0 : i32
    %c0_i32_0 = arith.constant 0 : i32
    %c0_i32_1 = arith.constant 0 : i32
    return %arg0, %c0_i32, %c0_i32_0 : i32, i32, i32
  }
}

</mosaic_0001>

<bundles_post_ra>
// kernel: cdvae_forward.24
= control target key start
LH: loop header
LB: loop body
LE: loop exit
PB: predicated region body
PF: predicated region fallthrough
CT: control target
= control target key end

     0   :  { %vm43_vm0 = vcmask 261120   ;;  %vm60_vm1 = vcmask 58368   ;;  %s168_s1 = inlined_call_operand.vmem [shape: bf16[32,16], index: 1, kind: input, shape index: {}]   ;;  %s169_s0 = inlined_call_operand.vmem [shape: f32[2,32], index: 0, kind: input, shape index: {}]   ;;  %s170_s2 = inlined_call_operand.vmem [shape: f32[1,16], index: 2, kind: input, shape index: {}]   ;;  %s171_s4 = inlined_call_operand.vmem [shape: f32[2,8], index: 4, kind: output, shape index: {0}]   ;;  %s172_s3 = inlined_call_operand.vmem [shape: f32[2,8], index: 3, kind: input, shape index: {}]   ;;  %s173_s6 = inlined_call_operand.vmem [shape: f32[2,8], index: 6, kind: output, shape index: {2}]   ;;  %s174_s5 = inlined_call_operand.vmem [shape: f32[2,8], index: 5, kind: output, shape index: {1}]  }
   0x1   :  { %v100_v0 = vld [vmem:[%s168_s1 + $0x8] sm:$0xff]  ;;  %v99_v1 = vld [vmem:[%s168_s1] sm:$0xff] }
   0x2   :  { %53 = vmatpush.bf16.msra.mxu0 %v100_v0  ;;  %v21_v2 = vld [vmem:[%s169_s0] sm:$0x3]  ;;  %s105_s0 = smov 120  }
   0x3   :  { %v22_v3 = vpack.c.bf16 %v21_v2, %v21_v2  ;;  %v102_v4 = vld [vmem:[%s170_s2] ss:$0 sm:$0xff] }
   0x4   :  { %v67_v11 = vld [vmem:[%s172_s3] sm:$0x3] }
   0x6   :  { %54 = vmatpush.bf16.msra.mxu0 %v99_v1 }
   0x9   :  { %98 = vmatmul.msk.bf16.vlgmr.msra.gmra.mxu0 %vm43_vm0, %v22_v3 }
  0x86   :  { %v56_v5 = vpop.f32.mrf.mxu0 }
  0x87   :  { %v57_v6 = vadd.f32 %v102_v4, %v56_v5 }
  0x89   :  { %v68_v7 = vmul.f32 0.5, %v57_v6  ;;  %61 = vst.msk [vmem:[%s171_s4] sm:$0x3] %vm60_vm1, %v57_v6 }
  0x8b   :  { %v69_v8 = vmul.f32 1.442695, %v68_v7 }
  0x8d   :  { %103 = vpow2.f32 %v69_v8 }
  0x8e   :  { %v58_v9 = vpop.f32.mrf.mxu0 }
  0x93   :  { %v104_v10 = vpop.eup %103 }
  0x94   :  { %72 = vrot.lane.b32.xlu0 %v104_v10, %s105_s0 }
  0x9c   :  { %63 = vrot.lane.b32.xlu0 %v57_v6, %s105_s0 }
 0x106   :  { %v73_v12 = vpop.permute.xlu0 %72 }
 0x107   :  { %v75_v13 = vmul.f32 %v73_v12, %v67_v11 }
 0x109   :  { %v76_v14 = vadd.f32 %v75_v13, %v57_v6 }
 0x10b   :  { %77 = vst.msk [vmem:[%s173_s6] sm:$0x3] %vm60_vm1, %v76_v14 }
 0x10e   :  { %v64_v15 = vpop.permute.xlu0 %63 }
 0x10f   :  { %66 = vst.msk [vmem:[%s174_s5] sm:$0x3] %vm60_vm1, %v64_v15 }

// kernel: cdvae_forward.21
= control target key start
LH: loop header
LB: loop body
LE: loop exit
PB: predicated region body
PF: predicated region fallthrough
CT: control target
= control target key end

     0   :  { %vm19_vm0 = vcmask 392192   ;;  %v92_v1 = vmov 0.0   ;;  %vm39_vm1 = vcmask 130048   ;;  %s134_s1 = inlined_call_operand.vmem [shape: bf16[16,48], index: 1, kind: input, shape index: {}]   ;;  %s135_s0 = inlined_call_operand.vmem [shape: bf16[16,16], index: 0, kind: input, shape index: {}]   ;;  %s136_s2 = inlined_call_operand.vmem [shape: f32[1,48], index: 2, kind: input, shape index: {}]   ;;  %s137_s3 = inlined_call_operand.vmem [shape: f32[16,48], index: 3, kind: output, shape index: {}]  }
   0x1   :  { %v89_v0 = vld [vmem:[%s134_s1] sm:$0xff]  ;;  %20 = vst.msk [vmem:[#allocation2] sm:$0xff] %vm19_vm0, %v92_v1 }
   0x2   :  { %v88_v2 = vld [vmem:[%s135_s0] sm:$0xff]  ;;  %21 = vst.msk [vmem:[#allocation2 + $0x8] sm:$0xff] %vm19_vm0, %v92_v1  ;;  %50 = vmatpush.bf16.msra.mxu0 %v89_v0 }
   0x3   :  { %v91_v7 = vld [vmem:[%s136_s2] ss:$0 sm:$0xff] }
   0x5   :  { %87 = vmatmul.msk.bf16.vlgmr.msra.gmra.mxu0 %vm39_vm1, %v88_v2 }
   0x8   :  { %v22_v3 = vld [vmem:[#allocation2] sm:$0xff] }
   0x9   :  { %v23_v6 = vld [vmem:[#allocation2 + $0x8] sm:$0xff] }
  0x82   :  { %v52_v4 = vpop.f32.mrf.mxu0 }
  0x83   :  { %v57_v5 = vadd.f32 %v52_v4, %v22_v3 }
  0x85   :  { %60 = vst.msk [vmem:[#allocation2] sm:$0xff] %vm19_vm0, %v57_v5 }
  0x8a   :  { %v54_v8 = vpop.f32.mrf.mxu0 }
  0x8b   :  { %v58_v9 = vadd.f32 %v54_v8, %v23_v6 }
  0x8c   :  { %v65_v10 = vld [vmem:[#allocation2] sm:$0xff] }
  0x8d   :  { %v71_v11 = vadd.f32 %v91_v7, %v65_v10  ;;  %61 = vst.msk [vmem:[#allocation2 + $0x8] sm:$0xff] %vm19_vm0, %v58_v9 }
  0x8f   :  { %73 = vst.msk [vmem:[%s137_s3] sm:$0xff] %vm19_vm0, %v71_v11 }
  0x94   :  { %v66_v12 = vld [vmem:[#allocation2 + $0x8] sm:$0xff] }
  0x95   :  { %v72_v13 = vadd.f32 %v91_v7, %v66_v12 }
  0x97   :  { %74 = vst.msk [vmem:[%s137_s3 + $0x8] sm:$0xff] %vm19_vm0, %v72_v13 }

// kernel: cdvae_forward.25
= control target key start
LH: loop header
LB: loop body
LE: loop exit
PB: predicated region body
PF: predicated region fallthrough
CT: control target
= control target key end

     0   :  { %vm19_vm0 = vcmask 392192   ;;  %v100_v1 = vmov 0.0   ;;  %vm47_vm1 = vcmask 1043456   ;;  %vm43_vm2 = vcmask 195584   ;;  %s145_s1 = inlined_call_operand.vmem [shape: bf16[24,48], index: 1, kind: input, shape index: {}]   ;;  %s146_s2 = inlined_call_operand.vmem [shape: f32[1,48], index: 2, kind: input, shape index: {}]   ;;  %s147_s0 = inlined_call_operand.vmem [shape: bf16[16,24], index: 0, kind: input, shape index: {}]   ;;  %s148_s3 = inlined_call_operand.vmem [shape: f32[16,48], index: 3, kind: output, shape index: {}]  }
   0x1   :  { %v28_v0 = vld [vmem:[%s145_s1 + $0x8] sm:$0xf]  ;;  %20 = vst.msk [vmem:[#allocation2] sm:$0xff] %vm19_vm0, %v100_v1  ;;  %v97_v5 = vld [vmem:[%s145_s1] sm:$0xff] }
   0x2   :  { %v39_v2 = vunpack.c.l.b16 %v28_v0  ;;  %21 = vst.msk [vmem:[#allocation2 + $0x8] sm:$0xff] %vm19_vm0, %v100_v1  ;;  %v96_v6 = vld [vmem:[%s147_s0] sm:$0xff] }
   0x3   :  { %v99_v11 = vld [vmem:[%s146_s2] ss:$0 sm:$0xff] }
   0x4   :  { %v41_v3 = vpack.c.b16 %v39_v2, %v39_v2 }
   0x6   :  { %v49_v4 = vsel %vm47_vm1, %v41_v3, 0 }
   0x7   :  { %57 = vmatpush.bf16.msra.mxu0 %v49_v4 }
   0x8   :  { %v22_v7 = vld [vmem:[#allocation2] sm:$0xff] }
   0x9   :  { %v23_v10 = vld [vmem:[#allocation2 + $0x8] sm:$0xff] }
   0xb   :  { %58 = vmatpush.bf16.msra.mxu0 %v97_v5 }
   0xe   :  { %95 = vmatmul.msk.bf16.vlgmr.msra.gmra.mxu0 %vm43_vm2, %v96_v6 }
  0x8b   :  { %v60_v8 = vpop.f32.mrf.mxu0 }
  0x8c   :  { %v65_v9 = vadd.f32 %v60_v8, %v22_v7 }
  0x8e   :  { %68 = vst.msk [vmem:[#allocation2] sm:$0xff] %vm19_vm0, %v65_v9 }
  0x93   :  { %v62_v12 = vpop.f32.mrf.mxu0 }
  0x94   :  { %v66_v13 = vadd.f32 %v62_v12, %v23_v10 }
  0x95   :  { %v73_v14 = vld [vmem:[#allocation2] sm:$0xff] }
  0x96   :  { %v79_v15 = vadd.f32 %v99_v11, %v73_v14  ;;  %69 = vst.msk [vmem:[#allocation2 + $0x8] sm:$0xff] %vm19_vm0, %v66_v13 }
  0x98   :  { %81 = vst.msk [vmem:[%s148_s3] sm:$0xff] %vm19_vm0, %v79_v15 }
  0x9d   :  { %v74_v16 = vld [vmem:[#allocation2 + $0x8] sm:$0xff] }
  0x9e   :  { %v80_v17 = vadd.f32 %v99_v11, %v74_v16 }
  0xa0   :  { %82 = vst.msk [vmem:[%s148_s3 + $0x8] sm:$0xff] %vm19_vm0, %v80_v17 }

// kernel: cdvae_forward.23
= control target key start
LH: loop header
LB: loop body
LE: loop exit
PB: predicated region body
PF: predicated region fallthrough
CT: control target
= control target key end

     0   :  { %s1700_s0 = inlined_call_operand.vmem [shape: f32[2,8,2,48], index: 0, kind: input, shape index: {}]   ;;  %s1701_s1 = inlined_call_operand.vmem [shape: bf16[2,16,48], index: 1, kind: input, shape index: {}]   ;;  %s1702_s2 = inlined_call_operand.vmem [shape: f32[2,1,48], index: 2, kind: input, shape index: {}]   ;;  %s1703_s3 = inlined_call_operand.hbm [shape: f32[2,8,2,16], index: 3, kind: output, shape index: {0}]   ;;  %s1704_s4 = inlined_call_operand.vmem [shape: f32[2,2,16], index: 4, kind: output, shape index: {1}]  }
   0x1   :  { %1715 = sst [smem:[#allocation6_spill]] %s1700_s0 }
   0x2   :  { %1716 = sst [smem:[#allocation7_spill]] %s1701_s1 }
   0x3   :  { %10 = vsyncpa [#allocation4], 0 }
   0x4   :  { %12 = vsyncpa [#allocation4 + $0x1], 0  ;;  %s1383_s15 = smov 0   ;;  %s1385_s16 = smov 0  }
   0x5   :  { %s1387_s17 = smov 0   ;;  %s1389_s18 = smov 0  }
   0x6   :  { %s1391_s19 = smov 0   ;;  %s1393_s20 = smov 0  }
   0x7 LB: > { %s1112_s21 = sadd.s32 4294967295, %s1350_s20   ;;  %s1113_s22 = sadd.s32 4294967294, %s1350_s20   ;;  %s1350_s20 = sphi %s1393_s20, %s18_s20   ;;  %s1346_s19 = sphi %s1391_s19, %s1734_s19   ;;  %s1342_s18 = sphi %s1389_s18, %s1733_s18   ;;  %s1338_s17 = sphi %s1387_s17, %s1732_s17   ;;  %s1334_s16 = sphi %s1385_s16, %s1731_s16   ;;  %s1330_s15 = sphi %s1383_s15, %s1730_s15  }
   0x8   : > { %s30_s23 = sadd.s32 1, %s1346_s19  ;;  %s135_s24 = sadd.s32 1, %s1338_s17 }
   0x9   : > { %p32_p0 = scmp.ge.s32.totalorder %s30_s23, 2  ;;  %p145_p1 = scmp.ne.s32.totalorder %s1338_s17, %s1334_s16 }
   0xa   : > { %p146_p2 = scmp.eq.s32.totalorder %s1112_s21, 1  ;;  %p151_p3 = scmp.ne.s32.totalorder %s1334_s16, %s1330_s15 }
   0xb   : > { %s1736_s23 = smov (%p32_p0, %s30_s23), 0  ;;  %p152_p5 = scmp.eq.s32.totalorder %s1113_s22, 1 }
   0xc   : > { %p1423_p4 = por %p146_p2, %p145_p1  ;;  %s130_s26 = ssub.s32 %s1346_s19, %s1736_s23 }
   0xd   : > { %p1116_p6 = scmp.ge.s32.totalorder %s1350_s20, 1  ;;  %p133_p7 = scmp.eq.s32.totalorder %s130_s26, 0 }
   0xe   : > { %p1430_p8 = por %p152_p5, %p151_p3  ;;  %p231_p9 = scmp.lt.s32.totalorder %s1350_s20, 3 }
   0xf   : > { %s1436_s28 = scalar_select %p133_p7, %s1338_s17, %s135_s24  }
  0x10   : > { %p232_p10 = pnand %p1116_p6, %p231_p9 }
  0x11   : > { %p282_p11 = scmp.lt.s32.totalorder (!%p232_p10), %s1342_s18, 1  ;;  %s1719_s1 = sld [smem:[#allocation7_spill]] (!%p232_p10) }
  0x12   : > { %235 = sbr.rel (%p232_p10) target bundleno = 4669 (0x123d), region = 32  ;;  %s1353_s11 = smov (!%p232_p10), 96  }
  0x13   : > { %p322_p12 = scmp.eq.s32.totalorder (!%p232_p10), %s1342_s18, 1  ;;  %s1720_s0 = sld [smem:[#allocation6_spill]] (!%p232_p10) }
  0x14   : > { %s1355_s5 = smov (!%p232_p10), 112   ;;  %s1356_s6 = smov (!%p232_p10), 16  }
  0x17   : > { %vm317_vm0 = vcmask 123904   ;;  %v1352_v0 = vmov 0.0   ;;  %s1441_s29 = scalar_select %p282_p11, %s1342_s18, 1  ;;  %vm339_vm1 = vcmask 130048  }
  0x18   : > { %318 = vst.msk [vmem:[#allocation2] sm:$0x3] %vm317_vm0, %v1352_v0  ;;  %s1459_s12 = scalar_select %p322_p12, 7, 0 }
  0x19   : > { %s1159_s30 = sshll.u32 %s1441_s29, 3  ;;  %s302_s10 = scalar_lea.vmem %s1702_s2, %s1441_s29 }
  0x1a   : > { %s299_s7 = scalar_lea.vmem %s1719_s1, %s1159_s30  ;;  %v1452_v4 = vld [vmem:[%s302_s10] ss:$0 sm:$0xff]  ;;  %s1158_s13 = sshll.u32 %s1441_s29, 4 }
  0x1b   : > { %v1160_v1 = vld [vmem:[%s299_s7] sm:$0xff]  ;;  %s1465_s22 = scalar_lea.vmem %s1720_s0, %s1158_s13  ;;  %s1709_s24 = sshll.u32 %s1459_s12, 1 }
  0x1c   : > { %350 = vmatpush.bf16.msra.mxu0 %v1160_v1  ;;  %424 = vmatpush.bf16.msra.mxu1 %v1160_v1  ;;  %s327_s26 = scalar_lea.vmem %s1465_s22, %s1709_s24  ;;  %s1711_s30 = smov 32  }
  0x1d   : > { %494 = vmatpush.bf16.msra.mxu2 %v1160_v1  ;;  %564 = vmatpush.bf16.msra.mxu3 %v1160_v1  ;;  %v328_v8 = vld [vmem:[%s327_s26] sm:$0x3]  ;;  %s1483_s7 = scalar_select %p322_p12, 4294967295, 1 }
  0x1f   : > { %v325_v2 = vld [vmem:[#allocation2] sm:$0x3]  ;;  %s406_s8 = sadd.s32 %s1483_s7, %s1459_s12  ;;  %s1133_s13 = sshll.u32 %s1483_s7, 1 }
  0x20   : > { %v329_v3 = vpack.c.bf16 %v325_v2, %v325_v2  ;;  %634 = vmatpush.bf16.msrb.mxu0 %v1160_v1  ;;  %704 = vmatpush.bf16.msrb.mxu1 %v1160_v1  ;;  %s1487_s9 = sshll.u32 %s406_s8, 1  ;;  %s1504_s14 = sadd.s32 %s1133_s13, %s1459_s12 }
  0x21   : > { %774 = vmatpush.bf16.msrb.mxu2 %v1160_v1  ;;  %844 = vmatpush.bf16.msrb.mxu3 %v1160_v1  ;;  %s408_s10 = scalar_lea.vmem %s1465_s22, %s1487_s9  ;;  %s1707_s21 = sshll.u32 %s1504_s14, 1 }
  0x22   : > { %1128 = vmatmul.msk.bf16.vlgmr.msra.gmra.mxu0 %vm339_vm1, %v329_v3  ;;  %v409_v39 = vld [vmem:[%s408_s10] sm:$0x3]  ;;  %s478_s26 = scalar_lea.vmem %s1465_s22, %s1707_s21 }
  0x9f   : > { %v352_v5 = vpop.f32.mrf.mxu0 }
  0xa0   : > { %v353_v6 = vadd.f32 %v1452_v4, %v352_v5 }
  0xa2   : > { %377 = vrot.lane.b32.xlu0 %v353_v6, %s1353_s11  ;;  %v356_v9 = vadd.f32 %v353_v6, %v328_v8  ;;  %v479_v6 = vld [vmem:[%s478_s26] sm:$0x3]  ;;  %s1140_s26 = sshll.u32 %s1483_s7, 2 }
  0xa4   : > { %v1129_v10 = vmul.f32 -1.442695, %v356_v9 }
  0xa6   : > { %1224 = vpow2.f32 %v1129_v10 }
  0xa7   : > { %v354_v7 = vpop.f32.mrf.mxu0 }
  0xac   : > { %v1225_v11 = vpop.eup %1224 }
  0xad   : > { %v360_v12 = vadd.f32 1.0, %v1225_v11 }
  0xaf   : > { %1226 = vrcp.f32 %v360_v12  ;;  %v372_v18 = vand.u32 2147483648, %v360_v12  ;;  %vm366_vm3 = vweird.f32 %v360_v12  ;;  %v370_v19 = vand.u32 2147483647, %v360_v12 }
  0xb1   : > { %v373_v21 = vor.u32 1.1754944e-38, %v372_v18  ;;  %vm371_vm5 = vcmp.eq.f32.partialorder %v370_v19, 8.507059e+37 }
  0xb5   : > { %v1227_v13 = vpop.eup %1226 }
  0xb6   : > { %v362_v14 = vmul.f32 %v1227_v13, %v360_v12  ;;  %vm367_vm2 = vweird.f32 %v1227_v13 }
  0xb7   : > { %vm368_vm4 = vmor %vm366_vm3, %vm367_vm2 }
  0xb8   : > { %v363_v15 = vsub.f32 1.0, %v362_v14 }
  0xba   : > { %v364_v16 = vmul.f32 %v1227_v13, %v363_v15 }
  0xbc   : > { %v365_v17 = vadd.f32 %v1227_v13, %v364_v16 }
  0xbe   : > { %v369_v20 = vsel %vm368_vm4, %v1227_v13, %v365_v17 }
  0xbf   : > { %v374_v23 = vsel %vm371_vm5, %v373_v21, %v369_v20 }
  0xc0   : > { %v387_v29 = vsub.f32 1.0, %v374_v23 }
 0x114   : > { %v378_v22 = vpop.permute.xlu0 %377 }
 0x115   : > { %v380_v24 = vmul.f32 %v378_v22, %v374_v23 }
 0x117   : > { %382 = vrot.lane.b32.xlu0 %v380_v24, %s1711_s30 }
 0x189   : > { %v383_v25 = vpop.permute.xlu0 %382 }
 0x18a   : > { %v385_v26 = vadd.f32 %v383_v25, %v328_v8 }
 0x18c   : > { %1228 = vtanh.f32 %v385_v26 }
 0x192   : > { %v1229_v27 = vpop.eup %1228 }
 0x193   : > { %389 = vrot.lane.b32.xlu1 %v1229_v27, %s1355_s5 }
 0x19b   : > { %394 = vrot.lane.b32.xlu1 %v325_v2, %s1356_s6  ;;  %s545_s6 = smul.u32 3, %s1483_s7 }
 0x19d   : > { %s1523_s8 = sadd.s32 %s545_s6, %s1459_s12  ;;  %s1542_s6 = sadd.s32 %s1140_s26, %s1459_s12 }
 0x19e   : > { %s1705_s10 = sshll.u32 %s1523_s8, 1 }
 0x19f   : > { %s548_s13 = scalar_lea.vmem %s1465_s22, %s1705_s10 }
 0x205   : > { %v390_v28 = vpop.permute.xlu1 %389 }
 0x206   : > { %v392_v31 = vmul.f32 %v390_v28, %v387_v29 }
 0x20d   : > { %v395_v30 = vpop.permute.xlu1 %394 }
 0x20e   : > { %v397_v32 = vmul.f32 %v395_v30, %v374_v23 }
 0x210   : > { %v1473_v33 = vadd.f32 %v397_v32, %v392_v31 }
 0x212   : > { %v410_v34 = vpack.c.bf16 %v1473_v33, %v1473_v33 }
 0x214   : > { %412 = vrot.lane.b32.xlu2 %v410_v34, %s1355_s5 }
 0x26e   : > { %v413_v35 = vpop.permute.xlu2 %412 }
 0x26f   : > { %1131 = vmatmul.msk.bf16.vlgmr.msra.gmra.mxu1 %vm339_vm1, %v413_v35 }
 0x2ec   : > { %v426_v36 = vpop.f32.mrf.mxu1 }
 0x2ed   : > { %v427_v37 = vadd.f32 %v1452_v4, %v426_v36 }
 0x2ef   : > { %451 = vrot.lane.b32.xlu2 %v427_v37, %s1353_s11  ;;  %v430_v40 = vadd.f32 %v427_v37, %v409_v39  ;;  %v549_v37 = vld [vmem:[%s548_s13] sm:$0x3]  ;;  %s1706_s13 = sshll.u32 %s1542_s6, 1 }
 0x2f0   : > { %s618_s10 = scalar_lea.vmem %s1465_s22, %s1706_s13 }
 0x2f1   : > { %v1132_v41 = vmul.f32 -1.442695, %v430_v40 }
 0x2f3   : > { %1230 = vpow2.f32 %v1132_v41 }
 0x2f4   : > { %v428_v38 = vpop.f32.mrf.mxu1 }
 0x2f9   : > { %v1231_v42 = vpop.eup %1230 }
 0x2fa   : > { %v434_v43 = vadd.f32 1.0, %v1231_v42 }
 0x2fc   : > { %1232 = vrcp.f32 %v434_v43  ;;  %v446_v49 = vand.u32 2147483648, %v434_v43  ;;  %vm440_vm7 = vweird.f32 %v434_v43  ;;  %v444_v50 = vand.u32 2147483647, %v434_v43 }
 0x2fe   : > { %v447_v52 = vor.u32 1.1754944e-38, %v446_v49  ;;  %vm445_vm9 = vcmp.eq.f32.partialorder %v444_v50, 8.507059e+37 }
 0x302   : > { %v1233_v44 = vpop.eup %1232 }
 0x303   : > { %v436_v45 = vmul.f32 %v1233_v44, %v434_v43  ;;  %vm441_vm6 = vweird.f32 %v1233_v44 }
 0x304   : > { %vm442_vm8 = vmor %vm440_vm7, %vm441_vm6 }
 0x305   : > { %v437_v46 = vsub.f32 1.0, %v436_v45 }
 0x307   : > { %v438_v47 = vmul.f32 %v1233_v44, %v437_v46 }
 0x309   : > { %v439_v48 = vadd.f32 %v1233_v44, %v438_v47 }
 0x30b   : > { %v443_v51 = vsel %vm442_vm8, %v1233_v44, %v439_v48 }
 0x30c   : > { %v448_v54 = vsel %vm445_vm9, %v447_v52, %v443_v51 }
 0x30d   : > { %v461_v59 = vsub.f32 1.0, %v448_v54  ;;  %v467_v61 = vmul.f32 %v448_v54, %v1473_v33 }
 0x349   : > { %v452_v53 = vpop.permute.xlu2 %451 }
 0x34a   : > { %v454_v55 = vmul.f32 %v452_v53, %v448_v54 }
 0x34c   : > { %456 = vrot.lane.b32.xlu0 %v454_v55, %s1711_s30 }
 0x3be   : > { %v457_v56 = vpop.permute.xlu0 %456 }
 0x3bf   : > { %v459_v57 = vadd.f32 %v457_v56, %v409_v39 }
 0x3c1   : > { %1234 = vtanh.f32 %v459_v57 }
 0x3c7   : > { %v1235_v58 = vpop.eup %1234 }
 0x3c8   : > { %463 = vrot.lane.b32.xlu1 %v1235_v58, %s1355_s5 }
 0x43a   : > { %v464_v60 = vpop.permute.xlu1 %463 }
 0x43b   : > { %v466_v62 = vmul.f32 %v464_v60, %v461_v59 }
 0x43d   : > { %v1494_v63 = vadd.f32 %v467_v61, %v466_v62 }
 0x43f   : > { %v480_v0 = vpack.c.bf16 %v1494_v63, %v1494_v63 }
 0x441   : > { %482 = vrot.lane.b32.xlu2 %v480_v0, %s1355_s5 }
 0x49b   : > { %v483_v1 = vpop.permute.xlu2 %482 }
 0x49c   : > { %1135 = vmatmul.msk.bf16.vlgmr.msra.gmra.mxu2 %vm339_vm1, %v483_v1 }
 0x51f   : > { %v496_v2 = vpop.f32.mrf.mxu2 }
 0x520   : > { %v497_v3 = vadd.f32 %v1452_v4, %v496_v2 }
 0x522   : > { %521 = vrot.lane.b32.xlu0 %v497_v3, %s1353_s11  ;;  %v500_v7 = vadd.f32 %v497_v3, %v479_v6 }
 0x524   : > { %v1136_v8 = vmul.f32 -1.442695, %v500_v7 }
 0x526   : > { %1236 = vpow2.f32 %v1136_v8 }
 0x527   : > { %v498_v5 = vpop.f32.mrf.mxu2 }
 0x528   : > { %v619_v5 = vld [vmem:[%s618_s10] sm:$0x3]  ;;  %s685_s10 = smul.u32 5, %s1483_s7 }
 0x52a   : > { %s1561_s26 = sadd.s32 %s685_s10, %s1459_s12 }
 0x52b   : > { %s1708_s13 = sshll.u32 %s1561_s26, 1 }
 0x52c   : > { %v1237_v9 = vpop.eup %1236  ;;  %s688_s21 = scalar_lea.vmem %s1465_s22, %s1708_s13 }
 0x52d   : > { %v504_v10 = vadd.f32 1.0, %v1237_v9 }
 0x52f   : > { %1238 = vrcp.f32 %v504_v10  ;;  %v516_v16 = vand.u32 2147483648, %v504_v10  ;;  %vm510_vm11 = vweird.f32 %v504_v10  ;;  %v514_v17 = vand.u32 2147483647, %v504_v10 }
 0x531   : > { %v517_v19 = vor.u32 1.1754944e-38, %v516_v16  ;;  %vm515_vm13 = vcmp.eq.f32.partialorder %v514_v17, 8.507059e+37 }
 0x535   : > { %v1239_v11 = vpop.eup %1238 }
 0x536   : > { %v506_v12 = vmul.f32 %v1239_v11, %v504_v10  ;;  %vm511_vm10 = vweird.f32 %v1239_v11 }
 0x537   : > { %vm512_vm12 = vmor %vm510_vm11, %vm511_vm10 }
 0x538   : > { %v507_v13 = vsub.f32 1.0, %v506_v12 }
 0x53a   : > { %v508_v14 = vmul.f32 %v1239_v11, %v507_v13 }
 0x53c   : > { %v509_v15 = vadd.f32 %v1239_v11, %v508_v14 }
 0x53e   : > { %v513_v18 = vsel %vm512_vm12, %v1239_v11, %v509_v15 }
 0x53f   : > { %v518_v21 = vsel %vm515_vm13, %v517_v19, %v513_v18 }
 0x540   : > { %v531_v26 = vsub.f32 1.0, %v518_v21  ;;  %v537_v28 = vmul.f32 %v518_v21, %v1494_v63 }
 0x594   : > { %v522_v20 = vpop.permute.xlu0 %521 }
 0x595   : > { %v524_v22 = vmul.f32 %v522_v20, %v518_v21 }
 0x597   : > { %526 = vrot.lane.b32.xlu1 %v524_v22, %s1711_s30 }
 0x609   : > { %v527_v23 = vpop.permute.xlu1 %526 }
 0x60a   : > { %v529_v24 = vadd.f32 %v527_v23, %v479_v6 }
 0x60c   : > { %1240 = vtanh.f32 %v529_v24 }
 0x612   : > { %v1241_v25 = vpop.eup %1240 }
 0x613   : > { %533 = vrot.lane.b32.xlu2 %v1241_v25, %s1355_s5 }
 0x66d   : > { %v534_v27 = vpop.permute.xlu2 %533 }
 0x66e   : > { %v536_v29 = vmul.f32 %v534_v27, %v531_v26 }
 0x670   : > { %v1513_v30 = vadd.f32 %v537_v28, %v536_v29 }
 0x672   : > { %v550_v31 = vpack.c.bf16 %v1513_v30, %v1513_v30 }
 0x674   : > { %552 = vrot.lane.b32.xlu0 %v550_v31, %s1355_s5 }
 0x6e6   : > { %v553_v32 = vpop.permute.xlu0 %552 }
 0x6e7   : > { %1138 = vmatmul.msk.bf16.vlgmr.msra.gmra.mxu3 %vm339_vm1, %v553_v32 }
 0x76a   : > { %v566_v34 = vpop.f32.mrf.mxu3 }
 0x76b   : > { %v567_v35 = vadd.f32 %v1452_v4, %v566_v34 }
 0x76d   : > { %591 = vrot.lane.b32.xlu1 %v567_v35, %s1353_s11  ;;  %v570_v38 = vadd.f32 %v567_v35, %v549_v37 }
 0x76f   : > { %v1139_v39 = vmul.f32 -1.442695, %v570_v38 }
 0x771   : > { %1242 = vpow2.f32 %v1139_v39 }
 0x772   : > { %v568_v36 = vpop.f32.mrf.mxu3 }
 0x777   : > { %v1243_v40 = vpop.eup %1242 }
 0x778   : > { %v574_v41 = vadd.f32 1.0, %v1243_v40 }
 0x77a   : > { %1244 = vrcp.f32 %v574_v41  ;;  %v586_v47 = vand.u32 2147483648, %v574_v41  ;;  %vm580_vm15 = vweird.f32 %v574_v41  ;;  %v584_v48 = vand.u32 2147483647, %v574_v41 }
 0x77c   : > { %v587_v50 = vor.u32 1.1754944e-38, %v586_v47  ;;  %vm585_vm3 = vcmp.eq.f32.partialorder %v584_v48, 8.507059e+37 }
 0x780   : > { %v1245_v42 = vpop.eup %1244 }
 0x781   : > { %v576_v43 = vmul.f32 %v1245_v42, %v574_v41  ;;  %vm581_vm14 = vweird.f32 %v1245_v42 }
 0x782   : > { %vm582_vm2 = vmor %vm580_vm15, %vm581_vm14 }
 0x783   : > { %v577_v44 = vsub.f32 1.0, %v576_v43 }
 0x785   : > { %v578_v45 = vmul.f32 %v1245_v42, %v577_v44 }
 0x787   : > { %v579_v46 = vadd.f32 %v1245_v42, %v578_v45 }
 0x789   : > { %v583_v49 = vsel %vm582_vm2, %v1245_v42, %v579_v46 }
 0x78a   : > { %v588_v52 = vsel %vm585_vm3, %v587_v50, %v583_v49 }
 0x78b   : > { %v601_v57 = vsub.f32 1.0, %v588_v52  ;;  %v607_v59 = vmul.f32 %v588_v52, %v1513_v30 }
 0x7df   : > { %v592_v51 = vpop.permute.xlu1 %591 }
 0x7e0   : > { %v594_v53 = vmul.f32 %v592_v51, %v588_v52 }
 0x7e2   : > { %596 = vrot.lane.b32.xlu2 %v594_v53, %s1711_s30 }
 0x83c   : > { %v597_v54 = vpop.permute.xlu2 %596 }
 0x83d   : > { %v599_v55 = vadd.f32 %v597_v54, %v549_v37  ;;  %v689_v37 = vld [vmem:[%s688_s21] sm:$0x3]  ;;  %s755_s21 = smul.u32 6, %s1483_s7 }
 0x83f   : > { %1246 = vtanh.f32 %v599_v55  ;;  %s1580_s10 = sadd.s32 %s755_s21, %s1459_s12 }
 0x840   : > { %s1710_s13 = sshll.u32 %s1580_s10, 1 }
 0x841   : > { %s758_s24 = scalar_lea.vmem %s1465_s22, %s1710_s13 }
 0x845   : > { %v1247_v56 = vpop.eup %1246 }
 0x846   : > { %603 = vrot.lane.b32.xlu0 %v1247_v56, %s1355_s5 }
 0x8b8   : > { %v604_v58 = vpop.permute.xlu0 %603 }
 0x8b9   : > { %v606_v60 = vmul.f32 %v604_v58, %v601_v57 }
 0x8bb   : > { %v1532_v61 = vadd.f32 %v607_v59, %v606_v60 }
 0x8bd   : > { %v620_v62 = vpack.c.bf16 %v1532_v61, %v1532_v61 }
 0x8bf   : > { %622 = vrot.lane.b32.xlu1 %v620_v62, %s1355_s5 }
 0x931   : > { %v623_v0 = vpop.permute.xlu1 %622 }
 0x932   : > { %1142 = vmatmul.msk.bf16.vlgmr.msrb.gmra.mxu0 %vm339_vm1, %v623_v0 }
 0x9af   : > { %v636_v1 = vpop.f32.mrf.mxu0 }
 0x9b0   : > { %v637_v2 = vadd.f32 %v1452_v4, %v636_v1 }
 0x9b2   : > { %661 = vrot.lane.b32.xlu2 %v637_v2, %s1353_s11  ;;  %v640_v6 = vadd.f32 %v637_v2, %v619_v5 }
 0x9b4   : > { %v1143_v7 = vmul.f32 -1.442695, %v640_v6  ;;  %v759_v6 = vld [vmem:[%s758_s24] sm:$0x3]  ;;  %s825_s24 = smul.u32 7, %s1483_s7 }
 0x9b6   : > { %1248 = vpow2.f32 %v1143_v7  ;;  %s1600_s21 = sadd.s32 %s825_s24, %s1459_s12  ;;  %s1722_s24 = sshll.u32 %s1459_s12, 1 }
 0x9b7   : > { %v638_v3 = vpop.f32.mrf.mxu0  ;;  %s1713_s13 = sshll.u32 %s1600_s21, 1 }
 0x9bc   : > { %v1249_v8 = vpop.eup %1248 }
 0x9bd   : > { %v644_v9 = vadd.f32 1.0, %v1249_v8 }
 0x9bf   : > { %1250 = vrcp.f32 %v644_v9  ;;  %v656_v15 = vand.u32 2147483648, %v644_v9  ;;  %vm650_vm5 = vweird.f32 %v644_v9  ;;  %v654_v16 = vand.u32 2147483647, %v644_v9 }
 0x9c1   : > { %v657_v18 = vor.u32 1.1754944e-38, %v656_v15  ;;  %vm655_vm7 = vcmp.eq.f32.partialorder %v654_v16, 8.507059e+37 }
 0x9c5   : > { %v1251_v10 = vpop.eup %1250 }
 0x9c6   : > { %v646_v11 = vmul.f32 %v1251_v10, %v644_v9  ;;  %vm651_vm4 = vweird.f32 %v1251_v10 }
 0x9c7   : > { %vm652_vm6 = vmor %vm650_vm5, %vm651_vm4 }
 0x9c8   : > { %v647_v12 = vsub.f32 1.0, %v646_v11 }
 0x9ca   : > { %v648_v13 = vmul.f32 %v1251_v10, %v647_v12 }
 0x9cc   : > { %v649_v14 = vadd.f32 %v1251_v10, %v648_v13 }
 0x9ce   : > { %v653_v17 = vsel %vm652_vm6, %v1251_v10, %v649_v14 }
 0x9cf   : > { %v658_v20 = vsel %vm655_vm7, %v657_v18, %v653_v17 }
 0x9d0   : > { %v671_v25 = vsub.f32 1.0, %v658_v20  ;;  %v677_v27 = vmul.f32 %v658_v20, %v1532_v61 }
 0xa0c   : > { %v662_v19 = vpop.permute.xlu2 %661 }
 0xa0d   : > { %v664_v21 = vmul.f32 %v662_v19, %v658_v20 }
 0xa0f   : > { %666 = vrot.lane.b32.xlu0 %v664_v21, %s1711_s30 }
 0xa81   : > { %v667_v22 = vpop.permute.xlu0 %666 }
 0xa82   : > { %v669_v23 = vadd.f32 %v667_v22, %v619_v5 }
 0xa84   : > { %1252 = vtanh.f32 %v669_v23 }
 0xa8a   : > { %v1253_v24 = vpop.eup %1252 }
 0xa8b   : > { %673 = vrot.lane.b32.xlu1 %v1253_v24, %s1355_s5 }
 0xafd   : > { %v674_v26 = vpop.permute.xlu1 %673 }
 0xafe   : > { %v676_v28 = vmul.f32 %v674_v26, %v671_v25 }
 0xb00   : > { %v1551_v29 = vadd.f32 %v677_v27, %v676_v28 }
 0xb02   : > { %v690_v31 = vpack.c.bf16 %v1551_v29, %v1551_v29 }
 0xb04   : > { %692 = vrot.lane.b32.xlu2 %v690_v31, %s1355_s5 }
 0xb5e   : > { %v693_v32 = vpop.permute.xlu2 %692 }
 0xb5f   : > { %1145 = vmatmul.msk.bf16.vlgmr.msrb.gmra.mxu1 %vm339_vm1, %v693_v32 }
 0xbdc   : > { %v706_v34 = vpop.f32.mrf.mxu1 }
 0xbdd   : > { %v707_v35 = vadd.f32 %v1452_v4, %v706_v34 }
 0xbdf   : > { %731 = vrot.lane.b32.xlu0 %v707_v35, %s1353_s11  ;;  %v710_v38 = vadd.f32 %v707_v35, %v689_v37 }
 0xbe1   : > { %v1146_v39 = vmul.f32 -1.442695, %v710_v38 }
 0xbe3   : > { %1254 = vpow2.f32 %v1146_v39 }
 0xbe4   : > { %v708_v36 = vpop.f32.mrf.mxu1 }
 0xbe9   : > { %v1255_v40 = vpop.eup %1254 }
 0xbea   : > { %v714_v41 = vadd.f32 1.0, %v1255_v40 }
 0xbec   : > { %1256 = vrcp.f32 %v714_v41  ;;  %v726_v47 = vand.u32 2147483648, %v714_v41  ;;  %vm720_vm9 = vweird.f32 %v714_v41  ;;  %v724_v48 = vand.u32 2147483647, %v714_v41 }
 0xbee   : > { %v727_v50 = vor.u32 1.1754944e-38, %v726_v47  ;;  %vm725_vm11 = vcmp.eq.f32.partialorder %v724_v48, 8.507059e+37 }
 0xbf2   : > { %v1257_v42 = vpop.eup %1256 }
 0xbf3   : > { %v716_v43 = vmul.f32 %v1257_v42, %v714_v41  ;;  %vm721_vm8 = vweird.f32 %v1257_v42 }
 0xbf4   : > { %vm722_vm10 = vmor %vm720_vm9, %vm721_vm8 }
 0xbf5   : > { %v717_v44 = vsub.f32 1.0, %v716_v43 }
 0xbf7   : > { %v718_v45 = vmul.f32 %v1257_v42, %v717_v44 }
 0xbf9   : > { %v719_v46 = vadd.f32 %v1257_v42, %v718_v45 }
 0xbfb   : > { %v723_v49 = vsel %vm722_vm10, %v1257_v42, %v719_v46 }
 0xbfc   : > { %v728_v52 = vsel %vm725_vm11, %v727_v50, %v723_v49 }
 0xbfd   : > { %v741_v57 = vsub.f32 1.0, %v728_v52  ;;  %v747_v59 = vmul.f32 %v728_v52, %v1551_v29 }
 0xc51   : > { %v732_v51 = vpop.permute.xlu0 %731 }
 0xc52   : > { %v734_v53 = vmul.f32 %v732_v51, %v728_v52 }
 0xc54   : > { %736 = vrot.lane.b32.xlu1 %v734_v53, %s1711_s30 }
 0xcc6   : > { %v737_v54 = vpop.permute.xlu1 %736 }
 0xcc7   : > { %v739_v55 = vadd.f32 %v737_v54, %v689_v37 }
 0xcc9   : > { %1258 = vtanh.f32 %v739_v55 }
 0xccf   : > { %v1259_v56 = vpop.eup %1258 }
 0xcd0   : > { %743 = vrot.lane.b32.xlu2 %v1259_v56, %s1355_s5 }
 0xd2a   : > { %v744_v58 = vpop.permute.xlu2 %743 }
 0xd2b   : > { %v746_v60 = vmul.f32 %v744_v58, %v741_v57 }
 0xd2d   : > { %v1570_v62 = vadd.f32 %v747_v59, %v746_v60 }
 0xd2f   : > { %v760_v0 = vpack.c.bf16 %v1570_v62, %v1570_v62 }
 0xd31   : > { %762 = vrot.lane.b32.xlu0 %v760_v0, %s1355_s5 }
 0xda3   : > { %v763_v1 = vpop.permute.xlu0 %762 }
 0xda4   : > { %1148 = vmatmul.msk.bf16.vlgmr.msrb.gmra.mxu2 %vm339_vm1, %v763_v1 }
 0xe27   : > { %v776_v2 = vpop.f32.mrf.mxu2 }
 0xe28   : > { %v777_v3 = vadd.f32 %v1452_v4, %v776_v2 }
 0xe2a   : > { %801 = vrot.lane.b32.xlu1 %v777_v3, %s1353_s11  ;;  %v780_v7 = vadd.f32 %v777_v3, %v759_v6 }
 0xe2c   : > { %v1149_v8 = vmul.f32 -1.442695, %v780_v7 }
 0xe2e   : > { %1260 = vpow2.f32 %v1149_v8 }
 0xe2f   : > { %v778_v5 = vpop.f32.mrf.mxu2 }
 0xe34   : > { %v1261_v9 = vpop.eup %1260 }
 0xe35   : > { %v784_v10 = vadd.f32 1.0, %v1261_v9 }
 0xe37   : > { %1262 = vrcp.f32 %v784_v10  ;;  %v796_v16 = vand.u32 2147483648, %v784_v10  ;;  %vm790_vm13 = vweird.f32 %v784_v10  ;;  %v794_v17 = vand.u32 2147483647, %v784_v10 }
 0xe39   : > { %v797_v19 = vor.u32 1.1754944e-38, %v796_v16  ;;  %vm795_vm15 = vcmp.eq.f32.partialorder %v794_v17, 8.507059e+37 }
 0xe3d   : > { %v1263_v11 = vpop.eup %1262 }
 0xe3e   : > { %v786_v12 = vmul.f32 %v1263_v11, %v784_v10  ;;  %vm791_vm12 = vweird.f32 %v1263_v11 }
 0xe3f   : > { %vm792_vm14 = vmor %vm790_vm13, %vm791_vm12 }
 0xe40   : > { %v787_v13 = vsub.f32 1.0, %v786_v12 }
 0xe42   : > { %v788_v14 = vmul.f32 %v1263_v11, %v787_v13 }
 0xe44   : > { %v789_v15 = vadd.f32 %v1263_v11, %v788_v14 }
 0xe46   : > { %v793_v18 = vsel %vm792_vm14, %v1263_v11, %v789_v15 }
 0xe47   : > { %v798_v21 = vsel %vm795_vm15, %v797_v19, %v793_v18 }
 0xe48   : > { %v811_v26 = vsub.f32 1.0, %v798_v21  ;;  %v817_v28 = vmul.f32 %v798_v21, %v1570_v62 }
 0xe9c   : > { %v802_v20 = vpop.permute.xlu1 %801 }
 0xe9d   : > { %v804_v22 = vmul.f32 %v802_v20, %v798_v21 }
 0xe9f   : > { %806 = vrot.lane.b32.xlu2 %v804_v22, %s1711_s30  ;;  %s828_s30 = scalar_lea.vmem %s1465_s22, %s1713_s13 }
 0xef9   : > { %v807_v23 = vpop.permute.xlu2 %806 }
 0xefa   : > { %v809_v24 = vadd.f32 %v807_v23, %v759_v6 }
 0xefc   : > { %1264 = vtanh.f32 %v809_v24 }
 0xf02   : > { %v1265_v25 = vpop.eup %1264 }
 0xf03   : > { %813 = vrot.lane.b32.xlu0 %v1265_v25, %s1355_s5 }
 0xf75   : > { %v814_v27 = vpop.permute.xlu0 %813 }
 0xf76   : > { %v816_v31 = vmul.f32 %v814_v27, %v811_v26 }
 0xf78   : > { %v818_v32 = vadd.f32 %v817_v28, %v816_v31 }
 0xf7a   : > { %v830_v34 = vpack.c.bf16 %v818_v32, %v818_v32 }
 0xf7c   : > { %832 = vrot.lane.b32.xlu1 %v830_v34, %s1355_s5 }
 0xfee   : > { %v833_v35 = vpop.permute.xlu1 %832 }
 0xfef   : > { %1151 = vmatmul.msk.bf16.vlgmr.msrb.gmra.mxu3 %vm339_vm1, %v833_v35 }
0x1072   : > { %v846_v36 = vpop.f32.mrf.mxu3 }
0x1073   : > { %v847_v37 = vadd.f32 %v1452_v4, %v846_v36  ;;  %v829_v4 = vld [vmem:[%s828_s30] sm:$0x3]  ;;  %s1721_s30 = smov 32  }
0x1075   : > { %871 = vrot.lane.b32.xlu2 %v847_v37, %s1353_s11  ;;  %v850_v39 = vadd.f32 %v847_v37, %v829_v4  ;;  %s1714_s11 = sand.u32 1, %s1334_s16  }
0x1076   : > { %s1117_s22 = sshll.u32 %s1714_s11, 4 }
0x1077   : > { %v1152_v40 = vmul.f32 -1.442695, %v850_v39  ;;  %s1610_s7 = scalar_lea.vmem [#allocation3], %s1117_s22  ;;  %s1724_s22 = sshll.u32 %s1523_s8, 1 }
0x1078   : > { %s403_s13 = scalar_lea.vmem %s1610_s7, %s1722_s24 [#allocation3]  ;;  %s473_s12 = scalar_lea.vmem %s1610_s7, %s1487_s9 [#allocation3] }
0x1079   : > { %1266 = vpow2.f32 %v1152_v40  ;;  %s1723_s9 = sshll.u32 %s1504_s14, 1  ;;  %s613_s24 = scalar_lea.vmem %s1610_s7, %s1724_s22 [#allocation3] }
0x107a   : > { %v848_v38 = vpop.f32.mrf.mxu3 }
0x107d   : > { %400 = vrot.lane.b32.xlu2 %v1473_v33, %s1355_s5 }
0x107f   : > { %v1267_v41 = vpop.eup %1266 }
0x1080   : > { %v854_v33 = vadd.f32 1.0, %v1267_v41 }
0x1082   : > { %1268 = vrcp.f32 %v854_v33  ;;  %v866_v46 = vand.u32 2147483648, %v854_v33  ;;  %vm860_vm2 = vweird.f32 %v854_v33  ;;  %v864_v47 = vand.u32 2147483647, %v854_v33 }
0x1084   : > { %v867_v49 = vor.u32 1.1754944e-38, %v866_v46  ;;  %vm865_vm4 = vcmp.eq.f32.partialorder %v864_v47, 8.507059e+37 }
0x1085   : > { %610 = vrot.lane.b32.xlu2 %v1532_v61, %s1355_s5 }
0x1088   : > { %v1269_v61 = vpop.eup %1268 }
0x1089   : > { %v856_v42 = vmul.f32 %v1269_v61, %v854_v33  ;;  %vm861_vm1 = vweird.f32 %v1269_v61 }
0x108a   : > { %vm862_vm3 = vmor %vm860_vm2, %vm861_vm1 }
0x108b   : > { %v857_v43 = vsub.f32 1.0, %v856_v42 }
0x108d   : > { %820 = vrot.lane.b32.xlu2 %v818_v32, %s1355_s5  ;;  %v858_v44 = vmul.f32 %v1269_v61, %v857_v43 }
0x108f   : > { %v859_v45 = vadd.f32 %v1269_v61, %v858_v44 }
0x1091   : > { %v863_v48 = vsel %vm862_vm3, %v1269_v61, %v859_v45 }
0x1092   : > { %v868_v51 = vsel %vm865_vm4, %v867_v49, %v863_v48 }
0x1093   : > { %v887_v58 = vmul.f32 %v868_v51, %v818_v32 }
0x10cf   : > { %v872_v50 = vpop.permute.xlu2 %871 }
0x10d0   : > { %v874_v52 = vmul.f32 %v872_v50, %v868_v51 }
0x10d2   : > { %876 = vrot.lane.b32.xlu0 %v874_v52, %s1721_s30 }
0x10d7   : > { %v401_v53 = vpop.permute.xlu2 %400 }
0x10d8   : > { %405 = vst.msk [vmem:[%s403_s13] sm:$0x3] %vm317_vm0, %v401_v53  ;;  %s543_s13 = scalar_lea.vmem %s1610_s7, %s1723_s9 [#allocation3]  ;;  %s1727_s9 = sshll.u32 %s1580_s10, 1 }
0x10d9   : > { %s823_s8 = scalar_lea.vmem %s1610_s7, %s1727_s9 [#allocation3] }
0x10da   : > { %470 = vrot.lane.b32.xlu0 %v1494_v63, %s1355_s5  ;;  %v881_v63 = vsub.f32 1.0, %v868_v51 }
0x10e2   : > { %680 = vrot.lane.b32.xlu0 %v1551_v29, %s1355_s5 }
0x1144   : > { %v877_v54 = vpop.permute.xlu0 %876 }
0x1145   : > { %v879_v55 = vadd.f32 %v877_v54, %v829_v4 }
0x1147   : > { %1270 = vtanh.f32 %v879_v55 }
0x114c   : > { %v471_v56 = vpop.permute.xlu0 %470 }
0x114d   : > { %v1271_v57 = vpop.eup %1270  ;;  %474 = vst.msk [vmem:[%s473_s12] sm:$0x3] %vm317_vm0, %v471_v56  ;;  %s1725_s12 = sshll.u32 %s1542_s6, 1  ;;  %s1161_s6 = sshll.u32 %s1342_s18, 4 }
0x114e   : > { %883 = vrot.lane.b32.xlu1 %v1271_v57, %s1355_s5  ;;  %s683_s11 = scalar_lea.vmem %s1610_s7, %s1725_s12 [#allocation3]  ;;  %s1729_s18 = sand.u32 1, %s1334_s16  }
0x1154   : > { %v681_v0 = vpop.permute.xlu0 %680 }
0x1156   : > { %540 = vrot.lane.b32.xlu1 %v1513_v30, %s1355_s5  ;;  %v611_v30 = vpop.permute.xlu2 %610 }
0x115e   : > { %750 = vrot.lane.b32.xlu1 %v1570_v62, %s1355_s5  ;;  %v821_v2 = vpop.permute.xlu2 %820 }
0x11c0   : > { %v884_v29 = vpop.permute.xlu1 %883 }
0x11c1   : > { %v886_v59 = vmul.f32 %v884_v29, %v881_v63 }
0x11c3   : > { %v888_v60 = vadd.f32 %v887_v58, %v886_v59 }
0x11c5   : > { %890 = vrot.lane.b32.xlu0 %v888_v60, %s1355_s5  ;;  %s1726_s5 = sshll.u32 %s1561_s26, 1  ;;  %s1728_s26 = sshll.u32 %s1600_s21, 1 }
0x11c6   : > { %s753_s14 = scalar_lea.vmem %s1610_s7, %s1726_s5 [#allocation3]  ;;  %s893_s5 = scalar_lea.vmem %s1610_s7, %s1728_s26 [#allocation3] }
0x11c8   : > { %v541_v62 = vpop.permute.xlu1 %540 }
0x11c9   : > { %544 = vst.msk [vmem:[%s543_s13] sm:$0x3] %vm317_vm0, %v541_v62  ;;  %s922_s13 = scalar_lea.hbm %s1703_s3, %s1161_s6 }
0x11ca   : > { %614 = vst.msk [vmem:[%s613_s24] sm:$0x3] %vm317_vm0, %v611_v30  ;;  %s923_s24 = sshll.u32 %s1610_s7, 4  ;;  %s925_s0 = sshll.u32 %s922_s13, 4  ;;  %s924_s24 = int_to_ptr.vmem [resolvable:$true] %s923_s24  ;;  %s926_s0 = int_to_ptr.hbm [resolvable:$true] %s925_s0 }
0x11cb   : > { %684 = vst.msk [vmem:[%s683_s11] sm:$0x3] %vm317_vm0, %v681_v0  ;;  %s1122_s11 = sshll.u32 %s1441_s29, 1  ;;  %s1292_s7 = scalar_lea.hbm %s1703_s3, 32 }
0x11cc   : > { %s311_s1 = scalar_lea.vmem %s1704_s4, %s1122_s11 }
0x11d0   : > { %v751_v1 = vpop.permute.xlu1 %750 }
0x11d1   : > { %754 = vst.msk [vmem:[%s753_s14] sm:$0x3] %vm317_vm0, %v751_v1  ;;  %s901_s14 = scalar_lea.sflag [#allocation4], %s1729_s18 }
0x11d2   : > { %824 = vst.msk [vmem:[%s823_s8] sm:$0x3] %vm317_vm0, %v821_v2  ;;  %s1286_s8 = sshra.s32 %s926_s0, 4  ;;  %s1287_s8 = int_to_ptr.hbm [resolvable:$true] %s1286_s8 }
0x11d3   : > { %s1288_s6 = scalar_lea.hbm %s1287_s8, 16  ;;  %p1293_p2 = scmp.lt.s32.totalorder %s1287_s8, %s1703_s3 }
0x11d4   : > { %p1289_p13 = scmp.ne.s32.totalorder %s1287_s8, %s1288_s6  ;;  %p1294_p3 = scmp.lt.s32.totalorder %s1292_s7, %s1288_s6 }
0x11d6   : > { %p1290_p0 = pnand %p1289_p13, %p1423_p4  ;;  %p1295_p5 = por %p1294_p3, %p1293_p2 }
0x11d8   : > { %p1291_p1 = pneg %p1290_p0 }
0x11da   : > { %p1296_p6 = pnand %p1295_p5, %p1291_p1 }
0x1237   : > { %v891_v3 = vpop.permute.xlu0 %890 }
0x1238   : > { %894 = vst.msk [vmem:[%s893_s5] sm:$0x3] %vm317_vm0, %v891_v3 }
0x1239   : > { %895 = vst.msk [vmem:[#allocation2] sm:$0x3] %vm317_vm0, %v891_v3 }
0x123a   : > { %1299 = shalt.err (!%p1296_p6)
}
0x123b   : > { %s1357_s13 = smov 2   ;;  %899 = vst.msk [vmem:[%s311_s1] sm:$0x3] %vm317_vm0, %v891_v3 }
0x123c   : > { %1162 = dma.vmem_to_hbm [thread:$0]  (%p1423_p4), %s924_s24, 256, %s926_s0, %s901_s14, %s1721_s30, %s1721_s30, %s1357_s13  }
0x123d PF: > { %p1168_p7 = scmp.ge.s32.totalorder %s1350_s20, 2  ;;  %s943_s11 = sand.u32 1, %s1330_s15  }
0x123e   : > { %s944_s26 = scalar_lea.sflag [#allocation4], %s943_s11 }
0x123f   : > { %p1165_p9 = pnand %p1168_p7, %p1430_p8 }
0x1241   : > { %p1166_p10 = pneg %p1165_p9 }
0x1243   : > { %1325 = dma.done.wait (%p1166_p10), %s944_s26, 256  }
0x1244   : > { %1327 = vsyncadd (%p1166_p10), %s944_s26, 4294967040  ;;  %s18_s20 = sadd.s32 1, %s1350_s20   ;;  %s1730_s15 = smov %s1334_s16 }
0x1245   : > { %p15_p11 = scmp.ge.s32.totalorder %s18_s20, 4   ;;  %s1731_s16 = smov %s1338_s17 }
0x1246   : > { %s1732_s17 = smov %s1436_s28  ;;  %s1733_s18 = smov %s1346_s19 }
0x1247   : > { %s1734_s19 = smov %s1736_s23  ;;  %17 = sbr.rel (!%p15_p11) target bundleno = 7 (0x7), region = 109 }
0x124c   :  { %957 = vsyncpa [#allocation4], 1 }
0x124d   :  { %959 = vsyncpa [#allocation4 + $0x1], 1 }

// kernel: cdvae_forward.27
= control target key start
LH: loop header
LB: loop body
LE: loop exit
PB: predicated region body
PF: predicated region fallthrough
CT: control target
= control target key end

     0   :  { %vm19_vm0 = vcmask 261120   ;;  %v92_v1 = vmov 0.0   ;;  %vm39_vm1 = vcmask 130048   ;;  %s134_s1 = inlined_call_operand.vmem [shape: bf16[16,32], index: 1, kind: input, shape index: {}]   ;;  %s135_s0 = inlined_call_operand.vmem [shape: bf16[16,16], index: 0, kind: input, shape index: {}]   ;;  %s136_s2 = inlined_call_operand.vmem [shape: f32[1,32], index: 2, kind: input, shape index: {}]   ;;  %s137_s3 = inlined_call_operand.vmem [shape: f32[16,32], index: 3, kind: output, shape index: {}]  }
   0x1   :  { %v89_v0 = vld [vmem:[%s134_s1] sm:$0xff]  ;;  %20 = vst.msk [vmem:[#allocation2] sm:$0xff] %vm19_vm0, %v92_v1 }
   0x2   :  { %v88_v2 = vld [vmem:[%s135_s0] sm:$0xff]  ;;  %21 = vst.msk [vmem:[#allocation2 + $0x8] sm:$0xff] %vm19_vm0, %v92_v1  ;;  %50 = vmatpush.bf16.msra.mxu0 %v89_v0 }
   0x3   :  { %v91_v7 = vld [vmem:[%s136_s2] ss:$0 sm:$0xff] }
   0x5   :  { %87 = vmatmul.msk.bf16.vlgmr.msra.gmra.mxu0 %vm39_vm1, %v88_v2 }
   0x8   :  { %v22_v3 = vld [vmem:[#allocation2] sm:$0xff] }
   0x9   :  { %v23_v6 = vld [vmem:[#allocation2 + $0x8] sm:$0xff] }
  0x82   :  { %v52_v4 = vpop.f32.mrf.mxu0 }
  0x83   :  { %v57_v5 = vadd.f32 %v52_v4, %v22_v3 }
  0x85   :  { %60 = vst.msk [vmem:[#allocation2] sm:$0xff] %vm19_vm0, %v57_v5 }
  0x8a   :  { %v54_v8 = vpop.f32.mrf.mxu0 }
  0x8b   :  { %v58_v9 = vadd.f32 %v54_v8, %v23_v6 }
  0x8c   :  { %v65_v10 = vld [vmem:[#allocation2] sm:$0xff] }
  0x8d   :  { %v71_v11 = vadd.f32 %v91_v7, %v65_v10  ;;  %61 = vst.msk [vmem:[#allocation2 + $0x8] sm:$0xff] %vm19_vm0, %v58_v9 }
  0x8f   :  { %73 = vst.msk [vmem:[%s137_s3] sm:$0xff] %vm19_vm0, %v71_v11 }
  0x94   :  { %v66_v12 = vld [vmem:[#allocation2 + $0x8] sm:$0xff] }
  0x95   :  { %v72_v13 = vadd.f32 %v91_v7, %v66_v12 }
  0x97   :  { %74 = vst.msk [vmem:[%s137_s3 + $0x8] sm:$0xff] %vm19_vm0, %v72_v13 }

// kernel: cdvae_forward.26
= control target key start
LH: loop header
LB: loop body
LE: loop exit
PB: predicated region body
PF: predicated region fallthrough
CT: control target
= control target key end

     0   :  { %vm82_vm0 = vcmask 123904   ;;  %v896_v1 = vmov 0.0   ;;  %s1088_s0 = inlined_call_operand.vmem [shape: f32[1,8,2,48], index: 0, kind: input, shape index: {}]   ;;  %s1089_s1 = inlined_call_operand.vmem [shape: bf16[1,16,48], index: 1, kind: input, shape index: {}]   ;;  %s1090_s2 = inlined_call_operand.vmem [shape: f32[1,1,48], index: 2, kind: input, shape index: {}]   ;;  %s1091_s3 = inlined_call_operand.vmem [shape: f32[1,8,2,16], index: 3, kind: output, shape index: {0}]   ;;  %s1092_s4 = inlined_call_operand.hbm [shape: f32[1,2,16], index: 4, kind: output, shape index: {1}]  }
   0x1   :  { %v814_v0 = vld [vmem:[%s1089_s1] sm:$0xff]  ;;  %83 = vst.msk [vmem:[#allocation2] sm:$0x3] %vm82_vm0, %v896_v1 }
   0x2   :  { %115 = vmatpush.bf16.msra.mxu0 %v814_v0  ;;  %189 = vmatpush.bf16.msra.mxu1 %v814_v0 }
   0x3   :  { %10 = vsyncpa [#allocation4], 0  ;;  %259 = vmatpush.bf16.msra.mxu2 %v814_v0  ;;  %329 = vmatpush.bf16.msra.mxu3 %v814_v0  ;;  %vm104_vm1 = vcmask 130048   ;;  %v935_v4 = vld [vmem:[%s1090_s2] ss:$0 sm:$0xff]  ;;  %s897_s18 = smov 96  }
   0x4   :  { %v93_v8 = vld [vmem:[%s1088_s0] sm:$0x3]  ;;  %s898_s2 = smov 32   ;;  %s899_s21 = smov 112   ;;  %v786_v39 = vld [vmem:[%s1088_s0 + $0x2] sm:$0x3] }
   0x5   :  { %s900_s22 = smov 16   ;;  %s688_s25 = sshll.u32 %s1092_s4, 4  ;;  %s689_s25 = int_to_ptr.hbm [resolvable:$true] %s688_s25 }
   0x6   :  { %399 = vmatpush.bf16.msrb.mxu0 %v814_v0  ;;  %469 = vmatpush.bf16.msrb.mxu1 %v814_v0 }
   0x7   :  { %539 = vmatpush.bf16.msrb.mxu2 %v814_v0  ;;  %609 = vmatpush.bf16.msrb.mxu3 %v814_v0 }
   0x8   :  { %v90_v2 = vld [vmem:[#allocation2] sm:$0x3] }
   0x9   :  { %v94_v3 = vpack.c.bf16 %v90_v2, %v90_v2 }
   0xb   :  { %784 = vmatmul.msk.bf16.vlgmr.msra.gmra.mxu0 %vm104_vm1, %v94_v3 }
  0x88   :  { %v117_v5 = vpop.f32.mrf.mxu0 }
  0x89   :  { %v118_v6 = vadd.f32 %v935_v4, %v117_v5 }
  0x8b   :  { %142 = vrot.lane.b32.xlu0 %v118_v6, %s897_s18  ;;  %v121_v9 = vadd.f32 %v118_v6, %v93_v8  ;;  %v790_v6 = vld [vmem:[%s1088_s0 + $0x4] sm:$0x3] }
  0x8d   :  { %v785_v10 = vmul.f32 -1.442695, %v121_v9 }
  0x8f   :  { %822 = vpow2.f32 %v785_v10 }
  0x90   :  { %v119_v7 = vpop.f32.mrf.mxu0 }
  0x95   :  { %v823_v11 = vpop.eup %822 }
  0x96   :  { %v125_v12 = vadd.f32 1.0, %v823_v11 }
  0x98   :  { %824 = vrcp.f32 %v125_v12  ;;  %v137_v18 = vand.u32 2147483648, %v125_v12  ;;  %vm131_vm3 = vweird.f32 %v125_v12  ;;  %v135_v19 = vand.u32 2147483647, %v125_v12 }
  0x9a   :  { %v138_v21 = vor.u32 1.1754944e-38, %v137_v18  ;;  %vm136_vm5 = vcmp.eq.f32.partialorder %v135_v19, 8.507059e+37 }
  0x9e   :  { %v825_v13 = vpop.eup %824 }
  0x9f   :  { %v127_v14 = vmul.f32 %v825_v13, %v125_v12  ;;  %vm132_vm2 = vweird.f32 %v825_v13 }
  0xa0   :  { %vm133_vm4 = vmor %vm131_vm3, %vm132_vm2 }
  0xa1   :  { %v128_v15 = vsub.f32 1.0, %v127_v14 }
  0xa3   :  { %v129_v16 = vmul.f32 %v825_v13, %v128_v15 }
  0xa5   :  { %v130_v17 = vadd.f32 %v825_v13, %v129_v16 }
  0xa7   :  { %v134_v20 = vsel %vm133_vm4, %v825_v13, %v130_v17 }
  0xa8   :  { %v139_v23 = vsel %vm136_vm5, %v138_v21, %v134_v20 }
  0xa9   :  { %v152_v29 = vsub.f32 1.0, %v139_v23 }
  0xfd   :  { %v143_v22 = vpop.permute.xlu0 %142 }
  0xfe   :  { %v145_v24 = vmul.f32 %v143_v22, %v139_v23 }
 0x100   :  { %147 = vrot.lane.b32.xlu0 %v145_v24, %s898_s2 }
 0x172   :  { %v148_v25 = vpop.permute.xlu0 %147 }
 0x173   :  { %v150_v26 = vadd.f32 %v148_v25, %v93_v8 }
 0x175   :  { %826 = vtanh.f32 %v150_v26 }
 0x17b   :  { %v827_v27 = vpop.eup %826 }
 0x17c   :  { %154 = vrot.lane.b32.xlu1 %v827_v27, %s899_s21 }
 0x184   :  { %159 = vrot.lane.b32.xlu1 %v90_v2, %s900_s22 }
 0x1ee   :  { %v155_v28 = vpop.permute.xlu1 %154 }
 0x1ef   :  { %v157_v31 = vmul.f32 %v155_v28, %v152_v29 }
 0x1f6   :  { %v160_v30 = vpop.permute.xlu1 %159 }
 0x1f7   :  { %v162_v32 = vmul.f32 %v160_v30, %v139_v23 }
 0x1f9   :  { %v944_v33 = vadd.f32 %v162_v32, %v157_v31 }
 0x1fb   :  { %v175_v34 = vpack.c.bf16 %v944_v33, %v944_v33 }
 0x1fd   :  { %177 = vrot.lane.b32.xlu2 %v175_v34, %s899_s21 }
 0x257   :  { %v178_v35 = vpop.permute.xlu2 %177 }
 0x258   :  { %787 = vmatmul.msk.bf16.vlgmr.msra.gmra.mxu1 %vm104_vm1, %v178_v35 }
 0x2d5   :  { %v191_v36 = vpop.f32.mrf.mxu1 }
 0x2d6   :  { %v192_v37 = vadd.f32 %v935_v4, %v191_v36 }
 0x2d8   :  { %216 = vrot.lane.b32.xlu2 %v192_v37, %s897_s18  ;;  %v195_v40 = vadd.f32 %v786_v39, %v192_v37  ;;  %v794_v37 = vld [vmem:[%s1088_s0 + $0x6] sm:$0x3] }
 0x2da   :  { %v788_v41 = vmul.f32 -1.442695, %v195_v40 }
 0x2dc   :  { %828 = vpow2.f32 %v788_v41 }
 0x2dd   :  { %v193_v38 = vpop.f32.mrf.mxu1 }
 0x2e2   :  { %v829_v42 = vpop.eup %828 }
 0x2e3   :  { %v199_v43 = vadd.f32 1.0, %v829_v42 }
 0x2e5   :  { %830 = vrcp.f32 %v199_v43  ;;  %v211_v49 = vand.u32 2147483648, %v199_v43  ;;  %vm205_vm7 = vweird.f32 %v199_v43  ;;  %v209_v50 = vand.u32 2147483647, %v199_v43 }
 0x2e7   :  { %v212_v52 = vor.u32 1.1754944e-38, %v211_v49  ;;  %vm210_vm9 = vcmp.eq.f32.partialorder %v209_v50, 8.507059e+37 }
 0x2eb   :  { %v831_v44 = vpop.eup %830 }
 0x2ec   :  { %v201_v45 = vmul.f32 %v831_v44, %v199_v43  ;;  %vm206_vm6 = vweird.f32 %v831_v44 }
 0x2ed   :  { %vm207_vm8 = vmor %vm205_vm7, %vm206_vm6 }
 0x2ee   :  { %v202_v46 = vsub.f32 1.0, %v201_v45 }
 0x2f0   :  { %v203_v47 = vmul.f32 %v831_v44, %v202_v46 }
 0x2f2   :  { %v204_v48 = vadd.f32 %v831_v44, %v203_v47 }
 0x2f4   :  { %v208_v51 = vsel %vm207_vm8, %v831_v44, %v204_v48 }
 0x2f5   :  { %v213_v54 = vsel %vm210_vm9, %v212_v52, %v208_v51 }
 0x2f6   :  { %v226_v59 = vsub.f32 1.0, %v213_v54  ;;  %v232_v61 = vmul.f32 %v213_v54, %v944_v33 }
 0x332   :  { %v217_v53 = vpop.permute.xlu2 %216 }
 0x333   :  { %v219_v55 = vmul.f32 %v217_v53, %v213_v54 }
 0x335   :  { %221 = vrot.lane.b32.xlu0 %v219_v55, %s898_s2 }
 0x3a7   :  { %v222_v56 = vpop.permute.xlu0 %221 }
 0x3a8   :  { %v224_v57 = vadd.f32 %v786_v39, %v222_v56 }
 0x3aa   :  { %832 = vtanh.f32 %v224_v57 }
 0x3b0   :  { %v833_v58 = vpop.eup %832 }
 0x3b1   :  { %228 = vrot.lane.b32.xlu1 %v833_v58, %s899_s21 }
 0x423   :  { %v229_v60 = vpop.permute.xlu1 %228 }
 0x424   :  { %v231_v62 = vmul.f32 %v229_v60, %v226_v59 }
 0x426   :  { %v958_v63 = vadd.f32 %v232_v61, %v231_v62 }
 0x428   :  { %v245_v0 = vpack.c.bf16 %v958_v63, %v958_v63 }
 0x42a   :  { %247 = vrot.lane.b32.xlu2 %v245_v0, %s899_s21 }
 0x484   :  { %v248_v1 = vpop.permute.xlu2 %247 }
 0x485   :  { %791 = vmatmul.msk.bf16.vlgmr.msra.gmra.mxu2 %vm104_vm1, %v248_v1 }
 0x508   :  { %v261_v2 = vpop.f32.mrf.mxu2 }
 0x509   :  { %v262_v3 = vadd.f32 %v935_v4, %v261_v2 }
 0x50b   :  { %286 = vrot.lane.b32.xlu0 %v262_v3, %s897_s18  ;;  %v265_v7 = vadd.f32 %v790_v6, %v262_v3 }
 0x50d   :  { %v792_v8 = vmul.f32 -1.442695, %v265_v7 }
 0x50f   :  { %834 = vpow2.f32 %v792_v8 }
 0x510   :  { %v263_v5 = vpop.f32.mrf.mxu2 }
 0x511   :  { %v798_v5 = vld [vmem:[%s1088_s0 + $0x8] sm:$0x3] }
 0x515   :  { %v835_v9 = vpop.eup %834 }
 0x516   :  { %v269_v10 = vadd.f32 1.0, %v835_v9 }
 0x518   :  { %836 = vrcp.f32 %v269_v10  ;;  %v281_v16 = vand.u32 2147483648, %v269_v10  ;;  %vm275_vm11 = vweird.f32 %v269_v10  ;;  %v279_v17 = vand.u32 2147483647, %v269_v10 }
 0x51a   :  { %v282_v19 = vor.u32 1.1754944e-38, %v281_v16  ;;  %vm280_vm13 = vcmp.eq.f32.partialorder %v279_v17, 8.507059e+37 }
 0x51e   :  { %v837_v11 = vpop.eup %836 }
 0x51f   :  { %v271_v12 = vmul.f32 %v837_v11, %v269_v10  ;;  %vm276_vm10 = vweird.f32 %v837_v11 }
 0x520   :  { %vm277_vm12 = vmor %vm275_vm11, %vm276_vm10 }
 0x521   :  { %v272_v13 = vsub.f32 1.0, %v271_v12 }
 0x523   :  { %v273_v14 = vmul.f32 %v837_v11, %v272_v13 }
 0x525   :  { %v274_v15 = vadd.f32 %v837_v11, %v273_v14 }
 0x527   :  { %v278_v18 = vsel %vm277_vm12, %v837_v11, %v274_v15 }
 0x528   :  { %v283_v21 = vsel %vm280_vm13, %v282_v19, %v278_v18 }
 0x529   :  { %v296_v26 = vsub.f32 1.0, %v283_v21  ;;  %v302_v28 = vmul.f32 %v283_v21, %v958_v63 }
 0x57d   :  { %v287_v20 = vpop.permute.xlu0 %286 }
 0x57e   :  { %v289_v22 = vmul.f32 %v287_v20, %v283_v21 }
 0x580   :  { %291 = vrot.lane.b32.xlu1 %v289_v22, %s898_s2 }
 0x5f2   :  { %v292_v23 = vpop.permute.xlu1 %291 }
 0x5f3   :  { %v294_v24 = vadd.f32 %v790_v6, %v292_v23 }
 0x5f5   :  { %838 = vtanh.f32 %v294_v24 }
 0x5fb   :  { %v839_v25 = vpop.eup %838 }
 0x5fc   :  { %298 = vrot.lane.b32.xlu2 %v839_v25, %s899_s21 }
 0x656   :  { %v299_v27 = vpop.permute.xlu2 %298 }
 0x657   :  { %v301_v29 = vmul.f32 %v299_v27, %v296_v26 }
 0x659   :  { %v972_v30 = vadd.f32 %v302_v28, %v301_v29 }
 0x65b   :  { %v315_v31 = vpack.c.bf16 %v972_v30, %v972_v30 }
 0x65d   :  { %317 = vrot.lane.b32.xlu0 %v315_v31, %s899_s21 }
 0x6cf   :  { %v318_v32 = vpop.permute.xlu0 %317 }
 0x6d0   :  { %795 = vmatmul.msk.bf16.vlgmr.msra.gmra.mxu3 %vm104_vm1, %v318_v32 }
 0x753   :  { %v331_v34 = vpop.f32.mrf.mxu3 }
 0x754   :  { %v332_v35 = vadd.f32 %v935_v4, %v331_v34 }
 0x756   :  { %356 = vrot.lane.b32.xlu1 %v332_v35, %s897_s18  ;;  %v335_v38 = vadd.f32 %v794_v37, %v332_v35 }
 0x758   :  { %v796_v39 = vmul.f32 -1.442695, %v335_v38 }
 0x75a   :  { %840 = vpow2.f32 %v796_v39 }
 0x75b   :  { %v333_v36 = vpop.f32.mrf.mxu3 }
 0x760   :  { %v841_v40 = vpop.eup %840 }
 0x761   :  { %v339_v41 = vadd.f32 1.0, %v841_v40 }
 0x763   :  { %842 = vrcp.f32 %v339_v41  ;;  %v351_v47 = vand.u32 2147483648, %v339_v41  ;;  %vm345_vm15 = vweird.f32 %v339_v41  ;;  %v349_v48 = vand.u32 2147483647, %v339_v41 }
 0x765   :  { %v352_v50 = vor.u32 1.1754944e-38, %v351_v47  ;;  %vm350_vm3 = vcmp.eq.f32.partialorder %v349_v48, 8.507059e+37 }
 0x769   :  { %v843_v42 = vpop.eup %842 }
 0x76a   :  { %v341_v43 = vmul.f32 %v843_v42, %v339_v41  ;;  %vm346_vm14 = vweird.f32 %v843_v42 }
 0x76b   :  { %vm347_vm2 = vmor %vm345_vm15, %vm346_vm14 }
 0x76c   :  { %v342_v44 = vsub.f32 1.0, %v341_v43 }
 0x76e   :  { %v343_v45 = vmul.f32 %v843_v42, %v342_v44 }
 0x770   :  { %v344_v46 = vadd.f32 %v843_v42, %v343_v45 }
 0x772   :  { %v348_v49 = vsel %vm347_vm2, %v843_v42, %v344_v46 }
 0x773   :  { %v353_v52 = vsel %vm350_vm3, %v352_v50, %v348_v49 }
 0x774   :  { %v366_v57 = vsub.f32 1.0, %v353_v52  ;;  %v372_v59 = vmul.f32 %v353_v52, %v972_v30 }
 0x7c8   :  { %v357_v51 = vpop.permute.xlu1 %356 }
 0x7c9   :  { %v359_v53 = vmul.f32 %v357_v51, %v353_v52 }
 0x7cb   :  { %361 = vrot.lane.b32.xlu2 %v359_v53, %s898_s2 }
 0x825   :  { %v362_v54 = vpop.permute.xlu2 %361 }
 0x826   :  { %v364_v55 = vadd.f32 %v794_v37, %v362_v54  ;;  %v802_v37 = vld [vmem:[%s1088_s0 + $0xa] sm:$0x3] }
 0x828   :  { %844 = vtanh.f32 %v364_v55 }
 0x82e   :  { %v845_v56 = vpop.eup %844 }
 0x82f   :  { %368 = vrot.lane.b32.xlu0 %v845_v56, %s899_s21 }
 0x8a1   :  { %v369_v58 = vpop.permute.xlu0 %368 }
 0x8a2   :  { %v371_v60 = vmul.f32 %v369_v58, %v366_v57 }
 0x8a4   :  { %v986_v61 = vadd.f32 %v372_v59, %v371_v60 }
 0x8a6   :  { %v385_v62 = vpack.c.bf16 %v986_v61, %v986_v61 }
 0x8a8   :  { %387 = vrot.lane.b32.xlu1 %v385_v62, %s899_s21 }
 0x91a   :  { %v388_v0 = vpop.permute.xlu1 %387 }
 0x91b   :  { %799 = vmatmul.msk.bf16.vlgmr.msrb.gmra.mxu0 %vm104_vm1, %v388_v0 }
 0x998   :  { %v401_v1 = vpop.f32.mrf.mxu0 }
 0x999   :  { %v402_v2 = vadd.f32 %v935_v4, %v401_v1 }
 0x99b   :  { %426 = vrot.lane.b32.xlu2 %v402_v2, %s897_s18  ;;  %v405_v6 = vadd.f32 %v798_v5, %v402_v2 }
 0x99d   :  { %v800_v7 = vmul.f32 -1.442695, %v405_v6  ;;  %v806_v6 = vld [vmem:[%s1088_s0 + $0xc] sm:$0x3] }
 0x99f   :  { %846 = vpow2.f32 %v800_v7 }
 0x9a0   :  { %v403_v3 = vpop.f32.mrf.mxu0 }
 0x9a5   :  { %v847_v8 = vpop.eup %846 }
 0x9a6   :  { %v409_v9 = vadd.f32 1.0, %v847_v8 }
 0x9a8   :  { %848 = vrcp.f32 %v409_v9  ;;  %v421_v15 = vand.u32 2147483648, %v409_v9  ;;  %vm415_vm5 = vweird.f32 %v409_v9  ;;  %v419_v16 = vand.u32 2147483647, %v409_v9 }
 0x9aa   :  { %v422_v18 = vor.u32 1.1754944e-38, %v421_v15  ;;  %vm420_vm7 = vcmp.eq.f32.partialorder %v419_v16, 8.507059e+37 }
 0x9ae   :  { %v849_v10 = vpop.eup %848 }
 0x9af   :  { %v411_v11 = vmul.f32 %v849_v10, %v409_v9  ;;  %vm416_vm4 = vweird.f32 %v849_v10 }
 0x9b0   :  { %vm417_vm6 = vmor %vm415_vm5, %vm416_vm4 }
 0x9b1   :  { %v412_v12 = vsub.f32 1.0, %v411_v11 }
 0x9b3   :  { %v413_v13 = vmul.f32 %v849_v10, %v412_v12 }
 0x9b5   :  { %v414_v14 = vadd.f32 %v849_v10, %v413_v13 }
 0x9b7   :  { %v418_v17 = vsel %vm417_vm6, %v849_v10, %v414_v14 }
 0x9b8   :  { %v423_v20 = vsel %vm420_vm7, %v422_v18, %v418_v17 }
 0x9b9   :  { %v436_v25 = vsub.f32 1.0, %v423_v20  ;;  %v442_v27 = vmul.f32 %v423_v20, %v986_v61 }
 0x9f5   :  { %v427_v19 = vpop.permute.xlu2 %426 }
 0x9f6   :  { %v429_v21 = vmul.f32 %v427_v19, %v423_v20 }
 0x9f8   :  { %431 = vrot.lane.b32.xlu0 %v429_v21, %s898_s2 }
 0xa6a   :  { %v432_v22 = vpop.permute.xlu0 %431 }
 0xa6b   :  { %v434_v23 = vadd.f32 %v798_v5, %v432_v22 }
 0xa6d   :  { %850 = vtanh.f32 %v434_v23 }
 0xa73   :  { %v851_v24 = vpop.eup %850 }
 0xa74   :  { %438 = vrot.lane.b32.xlu1 %v851_v24, %s899_s21 }
 0xae6   :  { %v439_v26 = vpop.permute.xlu1 %438 }
 0xae7   :  { %v441_v28 = vmul.f32 %v439_v26, %v436_v25 }
 0xae9   :  { %v1000_v29 = vadd.f32 %v442_v27, %v441_v28 }
 0xaeb   :  { %v455_v31 = vpack.c.bf16 %v1000_v29, %v1000_v29 }
 0xaed   :  { %457 = vrot.lane.b32.xlu2 %v455_v31, %s899_s21 }
 0xb47   :  { %v458_v32 = vpop.permute.xlu2 %457 }
 0xb48   :  { %803 = vmatmul.msk.bf16.vlgmr.msrb.gmra.mxu1 %vm104_vm1, %v458_v32 }
 0xbc5   :  { %v471_v34 = vpop.f32.mrf.mxu1 }
 0xbc6   :  { %v472_v35 = vadd.f32 %v935_v4, %v471_v34 }
 0xbc8   :  { %496 = vrot.lane.b32.xlu0 %v472_v35, %s897_s18  ;;  %v475_v38 = vadd.f32 %v802_v37, %v472_v35 }
 0xbca   :  { %v804_v39 = vmul.f32 -1.442695, %v475_v38 }
 0xbcc   :  { %852 = vpow2.f32 %v804_v39  ;;  %v810_v39 = vld [vmem:[%s1088_s0 + $0xe] sm:$0x3] }
 0xbcd   :  { %v473_v36 = vpop.f32.mrf.mxu1 }
 0xbd2   :  { %v853_v40 = vpop.eup %852 }
 0xbd3   :  { %v479_v41 = vadd.f32 1.0, %v853_v40 }
 0xbd5   :  { %854 = vrcp.f32 %v479_v41  ;;  %v491_v47 = vand.u32 2147483648, %v479_v41  ;;  %vm485_vm9 = vweird.f32 %v479_v41  ;;  %v489_v48 = vand.u32 2147483647, %v479_v41 }
 0xbd7   :  { %v492_v50 = vor.u32 1.1754944e-38, %v491_v47  ;;  %vm490_vm11 = vcmp.eq.f32.partialorder %v489_v48, 8.507059e+37 }
 0xbdb   :  { %v855_v42 = vpop.eup %854 }
 0xbdc   :  { %v481_v43 = vmul.f32 %v855_v42, %v479_v41  ;;  %vm486_vm8 = vweird.f32 %v855_v42 }
 0xbdd   :  { %vm487_vm10 = vmor %vm485_vm9, %vm486_vm8 }
 0xbde   :  { %v482_v44 = vsub.f32 1.0, %v481_v43 }
 0xbe0   :  { %v483_v45 = vmul.f32 %v855_v42, %v482_v44 }
 0xbe2   :  { %v484_v46 = vadd.f32 %v855_v42, %v483_v45 }
 0xbe4   :  { %v488_v49 = vsel %vm487_vm10, %v855_v42, %v484_v46 }
 0xbe5   :  { %v493_v52 = vsel %vm490_vm11, %v492_v50, %v488_v49 }
 0xbe6   :  { %v506_v57 = vsub.f32 1.0, %v493_v52  ;;  %v512_v59 = vmul.f32 %v493_v52, %v1000_v29 }
 0xc3a   :  { %v497_v51 = vpop.permute.xlu0 %496 }
 0xc3b   :  { %v499_v53 = vmul.f32 %v497_v51, %v493_v52 }
 0xc3d   :  { %501 = vrot.lane.b32.xlu1 %v499_v53, %s898_s2 }
 0xcaf   :  { %v502_v54 = vpop.permute.xlu1 %501 }
 0xcb0   :  { %v504_v55 = vadd.f32 %v802_v37, %v502_v54 }
 0xcb2   :  { %856 = vtanh.f32 %v504_v55 }
 0xcb8   :  { %v857_v56 = vpop.eup %856 }
 0xcb9   :  { %508 = vrot.lane.b32.xlu2 %v857_v56, %s899_s21 }
 0xd13   :  { %v509_v58 = vpop.permute.xlu2 %508 }
 0xd14   :  { %v511_v60 = vmul.f32 %v509_v58, %v506_v57 }
 0xd16   :  { %v1014_v62 = vadd.f32 %v512_v59, %v511_v60 }
 0xd18   :  { %v525_v0 = vpack.c.bf16 %v1014_v62, %v1014_v62 }
 0xd1a   :  { %527 = vrot.lane.b32.xlu0 %v525_v0, %s899_s21 }
 0xd8c   :  { %v528_v1 = vpop.permute.xlu0 %527 }
 0xd8d   :  { %807 = vmatmul.msk.bf16.vlgmr.msrb.gmra.mxu2 %vm104_vm1, %v528_v1 }
 0xe10   :  { %v541_v2 = vpop.f32.mrf.mxu2 }
 0xe11   :  { %v542_v3 = vadd.f32 %v935_v4, %v541_v2 }
 0xe13   :  { %566 = vrot.lane.b32.xlu1 %v542_v3, %s897_s18  ;;  %v545_v7 = vadd.f32 %v806_v6, %v542_v3 }
 0xe15   :  { %v808_v8 = vmul.f32 -1.442695, %v545_v7 }
 0xe17   :  { %858 = vpow2.f32 %v808_v8 }
 0xe18   :  { %v543_v5 = vpop.f32.mrf.mxu2 }
 0xe1d   :  { %v859_v9 = vpop.eup %858 }
 0xe1e   :  { %v549_v10 = vadd.f32 1.0, %v859_v9 }
 0xe20   :  { %860 = vrcp.f32 %v549_v10  ;;  %v561_v16 = vand.u32 2147483648, %v549_v10  ;;  %vm555_vm13 = vweird.f32 %v549_v10  ;;  %v559_v17 = vand.u32 2147483647, %v549_v10 }
 0xe22   :  { %v562_v19 = vor.u32 1.1754944e-38, %v561_v16  ;;  %vm560_vm15 = vcmp.eq.f32.partialorder %v559_v17, 8.507059e+37 }
 0xe26   :  { %v861_v11 = vpop.eup %860 }
 0xe27   :  { %v551_v12 = vmul.f32 %v861_v11, %v549_v10  ;;  %vm556_vm12 = vweird.f32 %v861_v11 }
 0xe28   :  { %vm557_vm14 = vmor %vm555_vm13, %vm556_vm12 }
 0xe29   :  { %v552_v13 = vsub.f32 1.0, %v551_v12 }
 0xe2b   :  { %v553_v14 = vmul.f32 %v861_v11, %v552_v13 }
 0xe2d   :  { %v554_v15 = vadd.f32 %v861_v11, %v553_v14 }
 0xe2f   :  { %v558_v18 = vsel %vm557_vm14, %v861_v11, %v554_v15 }
 0xe30   :  { %v563_v21 = vsel %vm560_vm15, %v562_v19, %v558_v18 }
 0xe31   :  { %v576_v26 = vsub.f32 1.0, %v563_v21  ;;  %v582_v28 = vmul.f32 %v563_v21, %v1014_v62 }
 0xe85   :  { %v567_v20 = vpop.permute.xlu1 %566 }
 0xe86   :  { %v569_v22 = vmul.f32 %v567_v20, %v563_v21 }
 0xe88   :  { %571 = vrot.lane.b32.xlu2 %v569_v22, %s898_s2 }
 0xee2   :  { %v572_v23 = vpop.permute.xlu2 %571 }
 0xee3   :  { %v574_v24 = vadd.f32 %v806_v6, %v572_v23 }
 0xee5   :  { %862 = vtanh.f32 %v574_v24 }
 0xeeb   :  { %v863_v25 = vpop.eup %862 }
 0xeec   :  { %578 = vrot.lane.b32.xlu0 %v863_v25, %s899_s21 }
 0xf5e   :  { %v579_v27 = vpop.permute.xlu0 %578 }
 0xf5f   :  { %v581_v31 = vmul.f32 %v579_v27, %v576_v26 }
 0xf61   :  { %v583_v32 = vadd.f32 %v582_v28, %v581_v31 }
 0xf63   :  { %v595_v34 = vpack.c.bf16 %v583_v32, %v583_v32 }
 0xf65   :  { %597 = vrot.lane.b32.xlu1 %v595_v34, %s899_s21 }
 0xfd7   :  { %v598_v35 = vpop.permute.xlu1 %597 }
 0xfd8   :  { %811 = vmatmul.msk.bf16.vlgmr.msrb.gmra.mxu3 %vm104_vm1, %v598_v35 }
0x105b   :  { %v611_v36 = vpop.f32.mrf.mxu3 }
0x105c   :  { %v612_v37 = vadd.f32 %v935_v4, %v611_v36 }
0x105e   :  { %636 = vrot.lane.b32.xlu2 %v612_v37, %s897_s18  ;;  %v615_v40 = vadd.f32 %v810_v39, %v612_v37 }
0x1060   :  { %v812_v41 = vmul.f32 -1.442695, %v615_v40 }
0x1062   :  { %864 = vpow2.f32 %v812_v41 }
0x1063   :  { %v613_v38 = vpop.f32.mrf.mxu3 }
0x1066   :  { %305 = vrot.lane.b32.xlu2 %v972_v30, %s899_s21 }
0x1068   :  { %v865_v42 = vpop.eup %864 }
0x1069   :  { %v619_v43 = vadd.f32 1.0, %v865_v42 }
0x106b   :  { %866 = vrcp.f32 %v619_v43  ;;  %v631_v48 = vand.u32 2147483648, %v619_v43  ;;  %vm625_vm2 = vweird.f32 %v619_v43  ;;  %v629_v49 = vand.u32 2147483647, %v619_v43 }
0x106d   :  { %v632_v50 = vor.u32 1.1754944e-38, %v631_v48  ;;  %vm630_vm4 = vcmp.eq.f32.partialorder %v629_v49, 8.507059e+37 }
0x1071   :  { %v867_v44 = vpop.eup %866 }
0x1072   :  { %v621_v45 = vmul.f32 %v867_v44, %v619_v43  ;;  %vm626_vm1 = vweird.f32 %v867_v44 }
0x1073   :  { %vm627_vm3 = vmor %vm625_vm2, %vm626_vm1 }
0x1074   :  { %v622_v46 = vsub.f32 1.0, %v621_v45 }
0x1076   :  { %v623_v4 = vmul.f32 %v867_v44, %v622_v46 }
0x1078   :  { %v624_v47 = vadd.f32 %v867_v44, %v623_v4 }
0x107a   :  { %v628_v30 = vsel %vm627_vm3, %v867_v44, %v624_v47 }
0x107b   :  { %v633_v52 = vsel %vm630_vm4, %v632_v50, %v628_v30 }
0x107c   :  { %v652_v0 = vmul.f32 %v633_v52, %v583_v32 }
0x10b8   :  { %v637_v51 = vpop.permute.xlu2 %636 }
0x10b9   :  { %v639_v53 = vmul.f32 %v637_v51, %v633_v52 }
0x10bb   :  { %641 = vrot.lane.b32.xlu0 %v639_v53, %s898_s2  ;;  %s901_s2 = smov [#allocation3]  }
0x10bc   :  { %s686_s22 = sshll.u32 %s901_s2, 4  ;;  %s687_s22 = int_to_ptr.vmem [resolvable:$true] %s686_s22 }
0x10c0   :  { %v306_v54 = vpop.permute.xlu2 %305 }
0x10c1   :  { %793 = vst.msk [vmem:[%s1091_s3 + $0x4] sm:$0x3] %vm82_vm0, %v306_v54 }
0x10c3   :  { %165 = vrot.lane.b32.xlu0 %v944_v33, %s899_s21 }
0x10cb   :  { %375 = vrot.lane.b32.xlu0 %v986_v61, %s899_s21  ;;  %v646_v61 = vsub.f32 1.0, %v633_v52 }
0x10d3   :  { %585 = vrot.lane.b32.xlu0 %v583_v32, %s899_s21 }
0x112d   :  { %v642_v55 = vpop.permute.xlu0 %641 }
0x112e   :  { %v644_v56 = vadd.f32 %v810_v39, %v642_v55 }
0x1130   :  { %868 = vtanh.f32 %v644_v56 }
0x1135   :  { %v166_v57 = vpop.permute.xlu0 %165 }
0x1136   :  { %v869_v58 = vpop.eup %868  ;;  %170 = vst.msk [vmem:[%s1091_s3] sm:$0x3] %vm82_vm0, %v166_v57 }
0x1137   :  { %648 = vrot.lane.b32.xlu1 %v869_v58, %s899_s21 }
0x113d   :  { %v376_v59 = vpop.permute.xlu0 %375 }
0x113e   :  { %797 = vst.msk [vmem:[%s1091_s3 + $0x6] sm:$0x3] %vm82_vm0, %v376_v59 }
0x113f   :  { %235 = vrot.lane.b32.xlu1 %v958_v63, %s899_s21 }
0x1145   :  { %v586_v33 = vpop.permute.xlu0 %585 }
0x1146   :  { %809 = vst.msk [vmem:[%s1091_s3 + $0xc] sm:$0x3] %vm82_vm0, %v586_v33 }
0x1147   :  { %445 = vrot.lane.b32.xlu1 %v1000_v29, %s899_s21 }
0x11a9   :  { %v649_v60 = vpop.permute.xlu1 %648 }
0x11aa   :  { %v651_v1 = vmul.f32 %v649_v60, %v646_v61 }
0x11ac   :  { %v653_v2 = vadd.f32 %v652_v0, %v651_v1 }
0x11ae   :  { %655 = vrot.lane.b32.xlu2 %v653_v2, %s899_s21 }
0x11b1   :  { %v236_v3 = vpop.permute.xlu1 %235 }
0x11b2   :  { %789 = vst.msk [vmem:[%s1091_s3 + $0x2] sm:$0x3] %vm82_vm0, %v236_v3 }
0x11b6   :  { %515 = vrot.lane.b32.xlu2 %v1014_v62, %s899_s21 }
0x11b9   :  { %v446_v63 = vpop.permute.xlu1 %445 }
0x11ba   :  { %801 = vst.msk [vmem:[%s1091_s3 + $0x8] sm:$0x3] %vm82_vm0, %v446_v63 }
0x1208   :  { %v656_v29 = vpop.permute.xlu2 %655 }
0x1209   :  { %813 = vst.msk [vmem:[%s1091_s3 + $0xe] sm:$0x3] %vm82_vm0, %v656_v29 }
0x120a   :  { %660 = vst.msk [vmem:[#allocation2] sm:$0x3] %vm82_vm0, %v656_v29 }
0x120b   :  { %664 = vst.msk [vmem:[#allocation3] sm:$0x3] %vm82_vm0, %v656_v29 }
0x120c   :  { %691 = dma.vmem_to_hbm [thread:$0]  %s687_s22, 32, %s689_s25, [#allocation4]  }
0x1210   :  { %v516_v62 = vpop.permute.xlu2 %515 }
0x1211   :  { %805 = vst.msk [vmem:[%s1091_s3 + $0xa] sm:$0x3] %vm82_vm0, %v516_v62 }
0x1212   :  { %894 = dma.done.wait [#allocation4], 32  }
0x1213   :  { %895 = vsyncadd [#allocation4], 4294967264 }
0x1214   :  { %707 = vsyncpa [#allocation4], 1 }

</bundles_post_ra>
